<compile_context>
chip_gen: v5e
topology: v5e:2x2
jax: 0.10.0
libtpu: 0.0.40
codegen_flags: <defaults>
</compile_context>

<pallas_src>
import math

import jax
import jax.numpy as jnp
from jax import lax
from jax.experimental import pallas as pl
from jax.experimental.pallas import tpu as pltpu

# ---- model hyper-params (Mamba defaults; small synthetic config) ----
D_MODEL = 32
N_LAYER = 2
EXPAND = 2
D_INNER = EXPAND * D_MODEL          # 64
D_STATE = 16
D_CONV = 4
DT_RANK = math.ceil(D_MODEL / 16)   # 2
EPS = 1e-5

BATCH = 2
SEQLEN = 16

XP_OUT = D_INNER + 2 * D_STATE                      # 96
XP_COLS = XP_OUT + ((-XP_OUT) % 128)                # zero-padded to 128 (lane-dense)


def _silu(x):
    # sigmoid via EUP exp + approx reciprocal (keeps the VALU slot free for the scan)
    return x * pl.reciprocal(1.0 + jnp.exp(-x), approx=True)


def _softplus(x):
    return jnp.maximum(x, 0.0) + jnp.log(1.0 + jnp.exp(-jnp.abs(x)))


def _layernorm(x, w, b):
    mu = jnp.mean(x, axis=-1, keepdims=True)
    xc = x - mu
    var = jnp.mean(xc * xc, axis=-1, keepdims=True)
    return xc * lax.rsqrt(var + EPS) * w + b


# --------------------------------------------------------------------------
# Kernel body: one grid step == one Mamba block (final norm on the last step)
# --------------------------------------------------------------------------
def mixer_kernel(ids_ref, pos_ref,
                 ln_w_ref, ln_b_ref, in_w_ref,
                 conv_w_ref, conv_b_ref,
                 xp_w_ref, dt_b_ref, A_ref, Dp_ref, out_w_ref,
                 nf_w_ref, nf_b_ref,
                 out_ref,
                 hid_sc, res_sc):
    layer = pl.program_id(0)
    BL, D = ids_ref.shape
    di, ds = D_INNER, D_STATE
    L = SEQLEN
    B = BL // L

    # Fold "hidden = input_ids + pos" into the first residual add by seeding
    # hidden <- input_ids, residual <- pos.
    @pl.when(layer == 0)
    def _():
        hid_sc[...] = ids_ref[...]
        res_sc[...] = pos_ref[...]

    # residual add (DropPath/Dropout identity in eval) + pre-norm LayerNorm
    residual = hid_sc[...] + res_sc[...]
    res_sc[...] = residual
    xn = _layernorm(residual, ln_w_ref[0], ln_b_ref[0])

    # ---- fused in_proj: [x | z] in one (D, 2*di) matmul, batch folded on rows ----
    xz = jnp.dot(xn, in_w_ref[0], preferred_element_type=jnp.float32)    # (BL, 2*di)
    x = xz[:, :di]
    z = xz[:, di:]

    # ---- depthwise causal conv1d + SiLU ----
    # Sequences are stacked on rows; per-sequence masks give causal zero-padding
    # and block cross-batch leakage from the roll.
    row = lax.broadcasted_iota(jnp.int32, (BL, di), 0)
    if (L & (L - 1)) == 0:
        t_in_seq = jnp.bitwise_and(row, L - 1)
    else:
        t_in_seq = row % L
    conv_w = conv_w_ref[0]                                               # (D_CONV, di)
    acc = x * conv_w[D_CONV - 1:D_CONV, :] + conv_b_ref[0]
    for k in range(D_CONV - 1):
        shift = D_CONV - 1 - k
        mask = (t_in_seq >= shift).astype(jnp.float32)
        acc = acc + pltpu.roll(x, shift, axis=0) * mask * conv_w[k:k + 1, :]
    x = _silu(acc)                                                       # (BL, di)

    # ---- fused x_proj: [W_dt | B | C | 0-pad] -> lane-dense 128-wide output ----
    xbc = jnp.dot(x, xp_w_ref[0], preferred_element_type=jnp.float32)    # (BL, 128)
    dt = _softplus(xbc[:, :di] + dt_b_ref[0])                            # (BL, di)
    Bm = xbc[:, di:di + ds]                                              # (BL, ds)
    Cm = xbc[:, di + ds:di + 2 * ds]                                     # (BL, ds)

    # ---- selective scan ----
    # State-independent precompute (EUP exp, outer products), then pack batch
    # onto the lane axis: (BL, ds, di) -> (L, ds, B*di) so the serial FMA runs
    # on full 128-lane vregs.  The pack is static slices + lane concats, off
    # the serial chain.
    A_neg = A_ref[0]                                                     # (ds, di) = -exp(A_log)
    dA = jnp.exp(dt[:, None, :] * A_neg[None, :, :])                     # (BL, ds, di)
    dBu = Bm[:, :, None] * (dt * x)[:, None, :]                          # (BL, ds, di)
    Cm_e = jnp.broadcast_to(Cm[:, :, None], (BL, ds, di))                # (BL, ds, di)

    def pack(v):    # (BL, ds, di) -> (L, ds, B*di)
        return jnp.concatenate([v[b * L:(b + 1) * L] for b in range(B)], axis=-1)

    dA_p, dBu_p, Cm_p = pack(dA), pack(dBu), pack(Cm_e)

    # Serial recurrence: one (ds, B*di) VPU FMA per step; only the current state
    # stays live (C-readout folded in, no state history kept).
    # TODO(synk): for L >> 16 switch to lax.fori_loop over time-chunks and chunk
    # the dA/dBu precompute to bound VMEM (v7x: 64 MiB).
    state = jnp.zeros((ds, B * di), jnp.float32)
    ys = []
    for t in range(L):
        state = dA_p[t] * state + dBu_p[t]
        ys.append(jnp.sum(state * Cm_p[t], axis=0, keepdims=True))       # (1, B*di)
    y_p = jnp.concatenate(ys, axis=0)                                    # (L, B*di)
    # unpack lanes back to batch-major rows: (L, B*di) -> (BL, di)
    y = jnp.concatenate([y_p[:, b * di:(b + 1) * di] for b in range(B)], axis=0)

    # ---- skip (D), gate, out_proj ----
    y = y + x * Dp_ref[0]
    y = y * _silu(z)
    hidden = jnp.dot(y, out_w_ref[0], preferred_element_type=jnp.float32)   # (BL, D)
    hid_sc[...] = hidden

    # ---- final add + norm_f (last layer only; output block is resident) ----
    @pl.when(layer == N_LAYER - 1)
    def _():
        out_ref[...] = _layernorm(hidden + residual, nf_w_ref[...], nf_b_ref[...])


# --------------------------------------------------------------------------
# One-time weight packing (runs at init, NOT on the forward path)
# --------------------------------------------------------------------------
def pack_params(params):
    layers = params["layers"]
    stackm = lambda name: jnp.stack([lp[name] for lp in layers], axis=0)
    stackv = lambda name: jnp.stack([lp[name][None, :] for lp in layers], axis=0)
    # in_proj x/z halves fused into one (D, 2*di) weight per layer
    in_w = jnp.stack(
        [jnp.concatenate([lp["in_x_w"], lp["in_z_w"]], axis=1) for lp in layers], axis=0)
    # x_proj fused into one (di, 128) weight: DT_RANK bottleneck folded
    # (xp_dt_w @ dt_w, exact — no nonlinearity in between) + zero-pad to 128 lanes
    xp_w = jnp.stack(
        [jnp.pad(jnp.concatenate([lp["xp_dt_w"] @ lp["dt_w"], lp["xp_B_w"], lp["xp_C_w"]],
                                 axis=1),
                 ((0, 0), (0, XP_COLS - XP_OUT)))
         for lp in layers], axis=0)
    # A = -exp(A_log) precomputed (pure function of the weights)
    A_neg = jnp.stack([-jnp.exp(lp["A_logT"]) for lp in layers], axis=0)   # (N, ds, di)
    return (stackv("ln_w"), stackv("ln_b"), in_w,
            stackm("conv_w"), stackv("conv_b"),
            xp_w, stackv("dt_b"), A_neg, stackv("D"), stackm("out_w"),
            params["norm_f_w"][None, :], params["norm_f_b"][None, :])


# --------------------------------------------------------------------------
# Forward: single pallas_call, grid over layers, weights double-buffered
# --------------------------------------------------------------------------
@jax.jit
def mixer_model_forward(input_ids, pos, packed):
    B, L, D = input_ids.shape
    BL = B * L
    grid_spec = pltpu.PrefetchScalarGridSpec(
        num_scalar_prefetch=0,
        grid=(N_LAYER,),
        in_specs=[
            pl.BlockSpec((BL, D), lambda l: (0, 0)),                       # input_ids
            pl.BlockSpec((BL, D), lambda l: (0, 0)),                       # pos
            pl.BlockSpec((1, 1, D), lambda l: (l, 0, 0)),                  # ln_w
            pl.BlockSpec((1, 1, D), lambda l: (l, 0, 0)),                  # ln_b
            pl.BlockSpec((1, D, 2 * D_INNER), lambda l: (l, 0, 0)),        # in_w
            pl.BlockSpec((1, D_CONV, D_INNER), lambda l: (l, 0, 0)),       # conv_w
            pl.BlockSpec((1, 1, D_INNER), lambda l: (l, 0, 0)),            # conv_b
            pl.BlockSpec((1, D_INNER, XP_COLS), lambda l: (l, 0, 0)),      # xp_w
            pl.BlockSpec((1, 1, D_INNER), lambda l: (l, 0, 0)),            # dt_b
            pl.BlockSpec((1, D_STATE, D_INNER), lambda l: (l, 0, 0)),      # A_neg
            pl.BlockSpec((1, 1, D_INNER), lambda l: (l, 0, 0)),            # D (skip)
            pl.BlockSpec((1, D_INNER, D), lambda l: (l, 0, 0)),            # out_w
            pl.BlockSpec((1, D), lambda l: (0, 0)),                        # norm_f w
            pl.BlockSpec((1, D), lambda l: (0, 0)),                        # norm_f b
        ],
        out_specs=pl.BlockSpec((BL, D), lambda l: (0, 0)),                 # resident
        scratch_shapes=[pltpu.VMEM((BL, D), jnp.float32),   # hidden  (carried)
                        pltpu.VMEM((BL, D), jnp.float32)],  # residual(carried)
    )
    out = pl.pallas_call(
        mixer_kernel,
        out_shape=jax.ShapeDtypeStruct((BL, D), jnp.float32),
        grid_spec=grid_spec,
        compiler_params=pltpu.CompilerParams(dimension_semantics=("arbitrary",)),
    )(input_ids.reshape(BL, D), pos.reshape(BL, D), *packed)
    return out.reshape(B, L, D)


# --------------------------------------------------------------------------
# deterministic parameter init (synthetic, mirrors module shapes)
# --------------------------------------------------------------------------
def init_layer_params(key):
    ks = jax.random.split(key, 10)
    di, ds, D = D_INNER, D_STATE, D_MODEL
    nrm = lambda k, shape, s: s * jax.random.normal(k, shape, jnp.float32)
    p = {}
    p["ln_w"] = jnp.ones((D,), jnp.float32)
    p["ln_b"] = jnp.zeros((D,), jnp.float32)
    p["in_x_w"] = nrm(ks[0], (D, di), D ** -0.5)
    p["in_z_w"] = nrm(ks[1], (D, di), D ** -0.5)
    p["conv_w"] = nrm(ks[2], (D_CONV, di), 0.5)
    p["conv_b"] = nrm(ks[3], (di,), 0.1)
    p["xp_dt_w"] = nrm(ks[4], (di, DT_RANK), di ** -0.5)
    p["xp_B_w"] = nrm(ks[5], (di, ds), di ** -0.5)
    p["xp_C_w"] = nrm(ks[6], (di, ds), di ** -0.5)
    p["dt_w"] = nrm(ks[7], (DT_RANK, di), DT_RANK ** -0.5)
    u = jax.random.uniform(ks[8], (di,), jnp.float32)
    dtv = jnp.exp(u * (math.log(0.1) - math.log(1e-3)) + math.log(1e-3))
    p["dt_b"] = dtv + jnp.log(-jnp.expm1(-dtv))        # inverse softplus (Mamba dt init)
    p["A_logT"] = (jnp.log(jnp.arange(1, ds + 1, dtype=jnp.float32))[:, None]
                   * jnp.ones((1, di), jnp.float32))   # stored transposed (ds, di)
    p["D"] = jnp.ones((di,), jnp.float32)
    p["out_w"] = nrm(ks[9], (di, D), di ** -0.5) / math.sqrt(N_LAYER)  # prenorm rescale
    return p


def init_params(key):
    keys = jax.random.split(key, N_LAYER)
    return {"layers": [init_layer_params(k) for k in keys],
            "norm_f_w": jnp.ones((D_MODEL,), jnp.float32),
            "norm_f_b": jnp.zeros((D_MODEL,), jnp.float32)}


# --------------------------------------------------------------------------
# pure-JAX reference (for correctness check)
# --------------------------------------------------------------------------
def _ref_layer(hidden, residual, p):
    resid = hidden if residual is None else hidden + residual
    mu = resid.mean(-1, keepdims=True)
    var = ((resid - mu) ** 2).mean(-1, keepdims=True)
    xn = (resid - mu) / jnp.sqrt(var + EPS) * p["ln_w"] + p["ln_b"]
    x = xn @ p["in_x_w"]
    z = xn @ p["in_z_w"]
    B_, L, di = x.shape
    xp = jnp.pad(x, ((0, 0), (D_CONV - 1, 0), (0, 0)))
    acc = jnp.zeros_like(x) + p["conv_b"]
    for k in range(D_CONV):
        acc = acc + xp[:, k:k + L, :] * p["conv_w"][k]
    x = jax.nn.silu(acc)
    dt = jax.nn.softplus(x @ p["xp_dt_w"] @ p["dt_w"] + p["dt_b"])
    Bm = x @ p["xp_B_w"]
    Cm = x @ p["xp_C_w"]
    A = -jnp.exp(p["A_logT"].T)                              # (di, ds)
    dA = jnp.exp(dt[..., None] * A)                          # (B, L, di, ds)
    dBu = (dt * x)[..., None] * Bm[:, :, None, :]

    def step(state, inp):
        dAt, dBut, Ct = inp
        state = dAt * state + dBut
        return state, (state * Ct[:, None, :]).sum(-1)

    init = jnp.zeros((B_, di, D_STATE), jnp.float32)
    _, ys = lax.scan(step, init, (jnp.swapaxes(dA, 0, 1),
                                  jnp.swapaxes(dBu, 0, 1),
                                  jnp.swapaxes(Cm, 0, 1)))
    y = jnp.swapaxes(ys, 0, 1) + x * p["D"]
    y = y * jax.nn.silu(z)
    return y @ p["out_w"], resid


def ref_model(input_ids, pos, params):
    hidden = input_ids + pos
    residual = None
    for lp in params["layers"]:
        hidden, residual = _ref_layer(hidden, residual, lp)
    resid = hidden + residual
    mu = resid.mean(-1, keepdims=True)
    var = ((resid - mu) ** 2).mean(-1, keepdims=True)
    return (resid - mu) / jnp.sqrt(var + EPS) * params["norm_f_w"] + params["norm_f_b"]


if __name__ == "__main__":
    key = jax.random.PRNGKey(0)
    k_in, k_pos, k_p = jax.random.split(key, 3)
    input_ids = jax.random.normal(k_in, (BATCH, SEQLEN, D_MODEL), jnp.float32)
    pos = jax.random.normal(k_pos, (BATCH, SEQLEN, D_MODEL), jnp.float32)
    params = init_params(k_p)

    # Weight packing is done ONCE here (off the forward / latency path).
    packed = jax.tree_util.tree_map(jax.block_until_ready, pack_params(params))

    out = mixer_model_forward(input_ids, pos, packed)
    out = jax.block_until_ready(out)

    ref = ref_model(input_ids, pos, params)
    assert out.shape == (BATCH, SEQLEN, D_MODEL)
    max_err = float(jnp.max(jnp.abs(out - ref)))
    assert max_err < 1e-2, f"max abs error vs reference: {max_err}"
    print("KERNEL_OK")
</pallas_src>

<mosaic_0001>
module attributes {stable_mosaic.version = 11 : i64} {
  func.func @mixer_kernel(%arg0: i32, %arg1: memref<32x32xf32, #tpu.memory_space<vmem>>, %arg2: memref<32x32xf32, #tpu.memory_space<vmem>>, %arg3: memref<1x1x32xf32, #tpu.memory_space<vmem>>, %arg4: memref<1x1x32xf32, #tpu.memory_space<vmem>>, %arg5: memref<1x32x128xf32, #tpu.memory_space<vmem>>, %arg6: memref<1x4x64xf32, #tpu.memory_space<vmem>>, %arg7: memref<1x1x64xf32, #tpu.memory_space<vmem>>, %arg8: memref<1x64x128xf32, #tpu.memory_space<vmem>>, %arg9: memref<1x1x64xf32, #tpu.memory_space<vmem>>, %arg10: memref<1x16x64xf32, #tpu.memory_space<vmem>>, %arg11: memref<1x1x64xf32, #tpu.memory_space<vmem>>, %arg12: memref<1x64x32xf32, #tpu.memory_space<vmem>>, %arg13: memref<1x32xf32, #tpu.memory_space<vmem>>, %arg14: memref<1x32xf32, #tpu.memory_space<vmem>>, %arg15: memref<32x32xf32, #tpu.memory_space<vmem>>, %arg16: memref<32x32xf32, #tpu.memory_space<vmem>>, %arg17: memref<32x32xf32, #tpu.memory_space<vmem>>) attributes {dimension_semantics = [#tpu.dimension_semantics<arbitrary>], iteration_bounds = array<i64: 2>, scalar_prefetch = 0 : i64, scratch_operands = 2 : i64, tpu.core_type = #tpu.core_type<tc>, window_params = [{pipeline_mode = #tpu.pipeline_mode<synchronous>, transform_indices = @transform_0, window_bounds = array<i64: 32, 32>}, {pipeline_mode = #tpu.pipeline_mode<synchronous>, transform_indices = @transform_1, window_bounds = array<i64: 32, 32>}, {transform_indices = @transform_2, window_bounds = array<i64: 1, 1, 32>}, {transform_indices = @transform_3, window_bounds = array<i64: 1, 1, 32>}, {transform_indices = @transform_4, window_bounds = array<i64: 1, 32, 128>}, {transform_indices = @transform_5, window_bounds = array<i64: 1, 4, 64>}, {transform_indices = @transform_6, window_bounds = array<i64: 1, 1, 64>}, {transform_indices = @transform_7, window_bounds = array<i64: 1, 64, 128>}, {transform_indices = @transform_8, window_bounds = array<i64: 1, 1, 64>}, {transform_indices = @transform_9, window_bounds = array<i64: 1, 16, 64>}, {transform_indices = @transform_10, window_bounds = array<i64: 1, 1, 64>}, {transform_indices = @transform_11, window_bounds = array<i64: 1, 64, 32>}, {pipeline_mode = #tpu.pipeline_mode<synchronous>, transform_indices = @transform_12, window_bounds = array<i64: 1, 32>}, {pipeline_mode = #tpu.pipeline_mode<synchronous>, transform_indices = @transform_13, window_bounds = array<i64: 1, 32>}, {pipeline_mode = #tpu.pipeline_mode<synchronous>, transform_indices = @transform_14, window_bounds = array<i64: 32, 32>}]} {
    %c0_i32 = arith.constant 0 : i32
    %0 = arith.cmpi eq, %arg0, %c0_i32 : i32
    %1 = arith.extui %0 : i1 to i32
    %c0_i32_0 = arith.constant 0 : i32
    %2 = arith.cmpi ne, %1, %c0_i32_0 : i32
    scf.if %2 {
      %c0_74 = arith.constant 0 : index
      %c0_75 = arith.constant 0 : index
      %332 = vector.load %arg1[%c0_74, %c0_75] : memref<32x32xf32, #tpu.memory_space<vmem>>, vector<32x32xf32>
      %c0_76 = arith.constant 0 : index
      %c0_77 = arith.constant 0 : index
      %333 = vector.load %arg16[%c0_76, %c0_77] : memref<32x32xf32, #tpu.memory_space<vmem>>, vector<32x32xf32>
      tpu.vector_store %arg16[%c0_76, %c0_77], %332 {strides = array<i32>} : memref<32x32xf32, #tpu.memory_space<vmem>>, vector<32x32xf32>,
      %c0_78 = arith.constant 0 : index
      %c0_79 = arith.constant 0 : index
      %334 = vector.load %arg2[%c0_78, %c0_79] : memref<32x32xf32, #tpu.memory_space<vmem>>, vector<32x32xf32>
      %c0_80 = arith.constant 0 : index
      %c0_81 = arith.constant 0 : index
      %335 = vector.load %arg17[%c0_80, %c0_81] : memref<32x32xf32, #tpu.memory_space<vmem>>, vector<32x32xf32>
      tpu.vector_store %arg17[%c0_80, %c0_81], %334 {strides = array<i32>} : memref<32x32xf32, #tpu.memory_space<vmem>>, vector<32x32xf32>,
    } else {
    }
    %c0 = arith.constant 0 : index
    %c0_1 = arith.constant 0 : index
    %3 = vector.load %arg16[%c0, %c0_1] : memref<32x32xf32, #tpu.memory_space<vmem>>, vector<32x32xf32>
    %c0_2 = arith.constant 0 : index
    %c0_3 = arith.constant 0 : index
    %4 = vector.load %arg17[%c0_2, %c0_3] : memref<32x32xf32, #tpu.memory_space<vmem>>, vector<32x32xf32>
    %5 = arith.addf %3, %4 : vector<32x32xf32>
    %c0_4 = arith.constant 0 : index
    %c0_5 = arith.constant 0 : index
    %6 = vector.load %arg17[%c0_4, %c0_5] : memref<32x32xf32, #tpu.memory_space<vmem>>, vector<32x32xf32>
    tpu.vector_store %arg17[%c0_4, %c0_5], %5 {strides = array<i32>} : memref<32x32xf32, #tpu.memory_space<vmem>>, vector<32x32xf32>,
    %c0_6 = arith.constant 0 : index
    %c0_7 = arith.constant 0 : index
    %c0_8 = arith.constant 0 : index
    %7 = vector.load %arg3[%c0_6, %c0_7, %c0_8] : memref<1x1x32xf32, #tpu.memory_space<vmem>>, vector<1x1x32xf32>
    %8 = vector.shape_cast %7 : vector<1x1x32xf32> to vector<1x32xf32>
    %c0_9 = arith.constant 0 : index
    %c0_10 = arith.constant 0 : index
    %c0_11 = arith.constant 0 : index
    %9 = vector.load %arg4[%c0_9, %c0_10, %c0_11] : memref<1x1x32xf32, #tpu.memory_space<vmem>>, vector<1x1x32xf32>
    %10 = vector.shape_cast %9 : vector<1x1x32xf32> to vector<1x32xf32>
    %cst = arith.constant dense<0.000000e+00> : vector<32xf32>
    %11 = vector.multi_reduction <add>, %5, %cst [1] : vector<32x32xf32> to vector<32xf32>
    %12 = vector.shape_cast %11 : vector<32xf32> to vector<32x1xf32>
    %cst_12 = arith.constant 3.200000e+01 : f32
    %13 = vector.broadcast %cst_12 : f32 to vector<32x1xf32>
    %14 = arith.divf %12, %13 : vector<32x1xf32>
    %15 = vector.broadcast %14 : vector<32x1xf32> to vector<32x32xf32>
    %16 = arith.subf %5, %15 : vector<32x32xf32>
    %17 = arith.mulf %16, %16 : vector<32x32xf32>
    %cst_13 = arith.constant dense<0.000000e+00> : vector<32xf32>
    %18 = vector.multi_reduction <add>, %17, %cst_13 [1] : vector<32x32xf32> to vector<32xf32>
    %19 = vector.shape_cast %18 : vector<32xf32> to vector<32x1xf32>
    %cst_14 = arith.constant 3.200000e+01 : f32
    %20 = vector.broadcast %cst_14 : f32 to vector<32x1xf32>
    %21 = arith.divf %19, %20 : vector<32x1xf32>
    %cst_15 = arith.constant 9.99999974E-6 : f32
    %22 = vector.broadcast %cst_15 : f32 to vector<32x1xf32>
    %23 = arith.addf %21, %22 : vector<32x1xf32>
    %24 = math.rsqrt %23 : vector<32x1xf32>
    %25 = vector.broadcast %24 : vector<32x1xf32> to vector<32x32xf32>
    %26 = arith.mulf %16, %25 : vector<32x32xf32>
    %27 = vector.broadcast %8 : vector<1x32xf32> to vector<32x32xf32>
    %28 = arith.mulf %26, %27 : vector<32x32xf32>
    %29 = vector.broadcast %10 : vector<1x32xf32> to vector<32x32xf32>
    %30 = arith.addf %28, %29 : vector<32x32xf32>
    %c0_16 = arith.constant 0 : index
    %c0_17 = arith.constant 0 : index
    %c0_18 = arith.constant 0 : index
    %31 = vector.load %arg5[%c0_16, %c0_17, %c0_18] : memref<1x32x128xf32, #tpu.memory_space<vmem>>, vector<1x32x128xf32>
    %32 = vector.shape_cast %31 : vector<1x32x128xf32> to vector<32x128xf32>
    %cst_19 = arith.constant dense<0.000000e+00> : vector<32x128xf32>
    %33 = tpu.matmul %30, %32, %cst_19 {dimension_numbers = #tpu.dot_dimension_numbers<[1], [0], [0], [1], [0, 0, 1, 1], [], []>} : vector<32x32xf32>, vector<32x128xf32>, vector<32x128xf32> -> vector<32x128xf32>
    %34 = vector.extract_strided_slice %33 {offsets = [0, 0], sizes = [32, 64], strides = [1, 1]} : vector<32x128xf32> to vector<32x64xf32>
    %35 = vector.extract_strided_slice %33 {offsets = [0, 64], sizes = [32, 64], strides = [1, 1]} : vector<32x128xf32> to vector<32x64xf32>
    %36 = tpu.iota {dimensions = array<i32: 0>} : vector<32x64xi32>
    %c15_i32 = arith.constant 15 : i32
    %37 = vector.broadcast %c15_i32 : i32 to vector<32x64xi32>
    %38 = arith.andi %36, %37 : vector<32x64xi32>
    %c0_20 = arith.constant 0 : index
    %c0_21 = arith.constant 0 : index
    %c0_22 = arith.constant 0 : index
    %39 = vector.load %arg6[%c0_20, %c0_21, %c0_22] : memref<1x4x64xf32, #tpu.memory_space<vmem>>, vector<1x4x64xf32>
    %40 = vector.shape_cast %39 : vector<1x4x64xf32> to vector<4x64xf32>
    %41 = vector.extract_strided_slice %40 {offsets = [3, 0], sizes = [1, 64], strides = [1, 1]} : vector<4x64xf32> to vector<1x64xf32>
    %42 = vector.broadcast %41 : vector<1x64xf32> to vector<32x64xf32>
    %43 = arith.mulf %34, %42 : vector<32x64xf32>
    %c0_23 = arith.constant 0 : index
    %c0_24 = arith.constant 0 : index
    %c0_25 = arith.constant 0 : index
    %44 = vector.load %arg7[%c0_23, %c0_24, %c0_25] : memref<1x1x64xf32, #tpu.memory_space<vmem>>, vector<1x1x64xf32>
    %45 = vector.shape_cast %44 : vector<1x1x64xf32> to vector<1x64xf32>
    %46 = vector.broadcast %45 : vector<1x64xf32> to vector<32x64xf32>
    %47 = arith.addf %43, %46 : vector<32x64xf32>
    %c3_i32 = arith.constant 3 : i32
    %48 = vector.broadcast %c3_i32 : i32 to vector<32x64xi32>
    %49 = arith.cmpi sge, %38, %48 : vector<32x64xi32>
    %50 = arith.extui %49 : vector<32x64xi1> to vector<32x64xi32>
    %51 = arith.sitofp %50 : vector<32x64xi32> to vector<32x64xf32>
    %c3_i32_26 = arith.constant 3 : i32
    %52 = tpu.dynamic_rotate %34 by %c3_i32_26 dim 0 : vector<32x64xf32>, i32 -> vector<32x64xf32>
    %53 = arith.mulf %52, %51 : vector<32x64xf32>
    %54 = vector.extract_strided_slice %40 {offsets = [0, 0], sizes = [1, 64], strides = [1, 1]} : vector<4x64xf32> to vector<1x64xf32>
    %55 = vector.broadcast %54 : vector<1x64xf32> to vector<32x64xf32>
    %56 = arith.mulf %53, %55 : vector<32x64xf32>
    %57 = arith.addf %47, %56 : vector<32x64xf32>
    %c2_i32 = arith.constant 2 : i32
    %58 = vector.broadcast %c2_i32 : i32 to vector<32x64xi32>
    %59 = arith.cmpi sge, %38, %58 : vector<32x64xi32>
    %60 = arith.extui %59 : vector<32x64xi1> to vector<32x64xi32>
    %61 = arith.sitofp %60 : vector<32x64xi32> to vector<32x64xf32>
    %c2_i32_27 = arith.constant 2 : i32
    %62 = tpu.dynamic_rotate %34 by %c2_i32_27 dim 0 : vector<32x64xf32>, i32 -> vector<32x64xf32>
    %63 = arith.mulf %62, %61 : vector<32x64xf32>
    %64 = vector.extract_strided_slice %40 {offsets = [1, 0], sizes = [1, 64], strides = [1, 1]} : vector<4x64xf32> to vector<1x64xf32>
    %65 = vector.broadcast %64 : vector<1x64xf32> to vector<32x64xf32>
    %66 = arith.mulf %63, %65 : vector<32x64xf32>
    %67 = arith.addf %57, %66 : vector<32x64xf32>
    %c1_i32 = arith.constant 1 : i32
    %68 = vector.broadcast %c1_i32 : i32 to vector<32x64xi32>
    %69 = arith.cmpi sge, %38, %68 : vector<32x64xi32>
    %70 = arith.extui %69 : vector<32x64xi1> to vector<32x64xi32>
    %71 = arith.sitofp %70 : vector<32x64xi32> to vector<32x64xf32>
    %c1_i32_28 = arith.constant 1 : i32
    %72 = tpu.dynamic_rotate %34 by %c1_i32_28 dim 0 : vector<32x64xf32>, i32 -> vector<32x64xf32>
    %73 = arith.mulf %72, %71 : vector<32x64xf32>
    %74 = vector.extract_strided_slice %40 {offsets = [2, 0], sizes = [1, 64], strides = [1, 1]} : vector<4x64xf32> to vector<1x64xf32>
    %75 = vector.broadcast %74 : vector<1x64xf32> to vector<32x64xf32>
    %76 = arith.mulf %73, %75 : vector<32x64xf32>
    %77 = arith.addf %67, %76 : vector<32x64xf32>
    %cst_29 = arith.constant 0.000000e+00 : f32
    %78 = vector.broadcast %cst_29 : f32 to vector<32x64xf32>
    %79 = arith.subf %78, %77 : vector<32x64xf32>
    %80 = math.exp %79 : vector<32x64xf32>
    %cst_30 = arith.constant 1.000000e+00 : f32
    %81 = vector.broadcast %cst_30 : f32 to vector<32x64xf32>
    %82 = arith.addf %81, %80 : vector<32x64xf32>
    %83 = tpu.reciprocal %82 {approx = true} : vector<32x64xf32> -> vector<32x64xf32>
    %84 = arith.mulf %77, %83 : vector<32x64xf32>
    %c0_31 = arith.constant 0 : index
    %c0_32 = arith.constant 0 : index
    %c0_33 = arith.constant 0 : index
    %85 = vector.load %arg8[%c0_31, %c0_32, %c0_33] : memref<1x64x128xf32, #tpu.memory_space<vmem>>, vector<1x64x128xf32>
    %86 = vector.shape_cast %85 : vector<1x64x128xf32> to vector<64x128xf32>
    %cst_34 = arith.constant dense<0.000000e+00> : vector<32x128xf32>
    %87 = tpu.matmul %84, %86, %cst_34 {dimension_numbers = #tpu.dot_dimension_numbers<[1], [0], [0], [1], [0, 0, 1, 1], [], []>} : vector<32x64xf32>, vector<64x128xf32>, vector<32x128xf32> -> vector<32x128xf32>
    %88 = vector.extract_strided_slice %87 {offsets = [0, 0], sizes = [32, 64], strides = [1, 1]} : vector<32x128xf32> to vector<32x64xf32>
    %c0_35 = arith.constant 0 : index
    %c0_36 = arith.constant 0 : index
    %c0_37 = arith.constant 0 : index
    %89 = vector.load %arg9[%c0_35, %c0_36, %c0_37] : memref<1x1x64xf32, #tpu.memory_space<vmem>>, vector<1x1x64xf32>
    %90 = vector.shape_cast %89 : vector<1x1x64xf32> to vector<1x64xf32>
    %91 = vector.broadcast %90 : vector<1x64xf32> to vector<32x64xf32>
    %92 = arith.addf %88, %91 : vector<32x64xf32>
    %cst_38 = arith.constant 0.000000e+00 : f32
    %93 = vector.broadcast %cst_38 : f32 to vector<32x64xf32>
    %94 = arith.maximumf %92, %93 : vector<32x64xf32>
    %95 = math.absf %92 : vector<32x64xf32>
    %cst_39 = arith.constant 0.000000e+00 : f32
    %96 = vector.broadcast %cst_39 : f32 to vector<32x64xf32>
    %97 = arith.subf %96, %95 : vector<32x64xf32>
    %98 = math.exp %97 : vector<32x64xf32>
    %cst_40 = arith.constant 1.000000e+00 : f32
    %99 = vector.broadcast %cst_40 : f32 to vector<32x64xf32>
    %100 = arith.addf %99, %98 : vector<32x64xf32>
    %101 = math.log %100 : vector<32x64xf32>
    %102 = arith.addf %94, %101 : vector<32x64xf32>
    %103 = vector.extract_strided_slice %87 {offsets = [0, 64], sizes = [32, 16], strides = [1, 1]} : vector<32x128xf32> to vector<32x16xf32>
    %104 = vector.extract_strided_slice %87 {offsets = [0, 80], sizes = [32, 16], strides = [1, 1]} : vector<32x128xf32> to vector<32x16xf32>
    %c0_41 = arith.constant 0 : index
    %c0_42 = arith.constant 0 : index
    %c0_43 = arith.constant 0 : index
    %105 = vector.load %arg10[%c0_41, %c0_42, %c0_43] : memref<1x16x64xf32, #tpu.memory_space<vmem>>, vector<1x16x64xf32>
    %106 = vector.shape_cast %105 : vector<1x16x64xf32> to vector<16x64xf32>
    %107 = vector.shape_cast %102 : vector<32x64xf32> to vector<32x1x64xf32>
    %108 = vector.shape_cast %106 : vector<16x64xf32> to vector<1x16x64xf32>
    %109 = vector.broadcast %107 : vector<32x1x64xf32> to vector<32x16x64xf32>
    %110 = vector.broadcast %108 : vector<1x16x64xf32> to vector<32x16x64xf32>
    %111 = arith.mulf %109, %110 : vector<32x16x64xf32>
    %112 = math.exp %111 : vector<32x16x64xf32>
    %113 = vector.shape_cast %103 : vector<32x16xf32> to vector<32x16x1xf32>
    %114 = arith.mulf %102, %84 : vector<32x64xf32>
    %115 = vector.shape_cast %114 : vector<32x64xf32> to vector<32x1x64xf32>
    %116 = vector.broadcast %113 : vector<32x16x1xf32> to vector<32x16x64xf32>
    %117 = vector.broadcast %115 : vector<32x1x64xf32> to vector<32x16x64xf32>
    %118 = arith.mulf %116, %117 : vector<32x16x64xf32>
    %119 = vector.shape_cast %104 : vector<32x16xf32> to vector<32x16x1xf32>
    %120 = vector.shape_cast %119 : vector<32x16x1xf32> to vector<32x16x1xf32>
    %121 = vector.broadcast %120 : vector<32x16x1xf32> to vector<32x16x64xf32>
    %122 = vector.extract_strided_slice %112 {offsets = [0, 0, 0], sizes = [16, 16, 64], strides = [1, 1, 1]} : vector<32x16x64xf32> to vector<16x16x64xf32>
    %123 = vector.extract_strided_slice %112 {offsets = [16, 0, 0], sizes = [16, 16, 64], strides = [1, 1, 1]} : vector<32x16x64xf32> to vector<16x16x64xf32>
    %124 = tpu.concatenate %122, %123 in 2 : vector<16x16x64xf32>, vector<16x16x64xf32> -> vector<16x16x128xf32>
    %125 = vector.extract_strided_slice %118 {offsets = [0, 0, 0], sizes = [16, 16, 64], strides = [1, 1, 1]} : vector<32x16x64xf32> to vector<16x16x64xf32>
    %126 = vector.extract_strided_slice %118 {offsets = [16, 0, 0], sizes = [16, 16, 64], strides = [1, 1, 1]} : vector<32x16x64xf32> to vector<16x16x64xf32>
    %127 = tpu.concatenate %125, %126 in 2 : vector<16x16x64xf32>, vector<16x16x64xf32> -> vector<16x16x128xf32>
    %128 = vector.extract_strided_slice %121 {offsets = [0, 0, 0], sizes = [16, 16, 64], strides = [1, 1, 1]} : vector<32x16x64xf32> to vector<16x16x64xf32>
    %129 = vector.extract_strided_slice %121 {offsets = [16, 0, 0], sizes = [16, 16, 64], strides = [1, 1, 1]} : vector<32x16x64xf32> to vector<16x16x64xf32>
    %130 = tpu.concatenate %128, %129 in 2 : vector<16x16x64xf32>, vector<16x16x64xf32> -> vector<16x16x128xf32>
    %cst_44 = arith.constant 0.000000e+00 : f32
    %131 = vector.broadcast %cst_44 : f32 to vector<16x128xf32>
    %132 = vector.extract_strided_slice %124 {offsets = [0, 0, 0], sizes = [1, 16, 128], strides = [1, 1, 1]} : vector<16x16x128xf32> to vector<1x16x128xf32>
    %133 = vector.shape_cast %132 : vector<1x16x128xf32> to vector<16x128xf32>
    %134 = arith.mulf %133, %131 : vector<16x128xf32>
    %135 = vector.extract_strided_slice %127 {offsets = [0, 0, 0], sizes = [1, 16, 128], strides = [1, 1, 1]} : vector<16x16x128xf32> to vector<1x16x128xf32>
    %136 = vector.shape_cast %135 : vector<1x16x128xf32> to vector<16x128xf32>
    %137 = arith.addf %134, %136 : vector<16x128xf32>
    %138 = vector.extract_strided_slice %130 {offsets = [0, 0, 0], sizes = [1, 16, 128], strides = [1, 1, 1]} : vector<16x16x128xf32> to vector<1x16x128xf32>
    %139 = vector.shape_cast %138 : vector<1x16x128xf32> to vector<16x128xf32>
    %140 = arith.mulf %137, %139 : vector<16x128xf32>
    %cst_45 = arith.constant dense<0.000000e+00> : vector<128xf32>
    %141 = vector.multi_reduction <add>, %140, %cst_45 [0] : vector<16x128xf32> to vector<128xf32>
    %142 = vector.shape_cast %141 : vector<128xf32> to vector<1x128xf32>
    %143 = vector.extract_strided_slice %124 {offsets = [1, 0, 0], sizes = [1, 16, 128], strides = [1, 1, 1]} : vector<16x16x128xf32> to vector<1x16x128xf32>
    %144 = vector.shape_cast %143 : vector<1x16x128xf32> to vector<16x128xf32>
    %145 = arith.mulf %144, %137 : vector<16x128xf32>
    %146 = vector.extract_strided_slice %127 {offsets = [1, 0, 0], sizes = [1, 16, 128], strides = [1, 1, 1]} : vector<16x16x128xf32> to vector<1x16x128xf32>
    %147 = vector.shape_cast %146 : vector<1x16x128xf32> to vector<16x128xf32>
    %148 = arith.addf %145, %147 : vector<16x128xf32>
    %149 = vector.extract_strided_slice %130 {offsets = [1, 0, 0], sizes = [1, 16, 128], strides = [1, 1, 1]} : vector<16x16x128xf32> to vector<1x16x128xf32>
    %150 = vector.shape_cast %149 : vector<1x16x128xf32> to vector<16x128xf32>
    %151 = arith.mulf %148, %150 : vector<16x128xf32>
    %cst_46 = arith.constant dense<0.000000e+00> : vector<128xf32>
    %152 = vector.multi_reduction <add>, %151, %cst_46 [0] : vector<16x128xf32> to vector<128xf32>
    %153 = vector.shape_cast %152 : vector<128xf32> to vector<1x128xf32>
    %154 = vector.extract_strided_slice %124 {offsets = [2, 0, 0], sizes = [1, 16, 128], strides = [1, 1, 1]} : vector<16x16x128xf32> to vector<1x16x128xf32>
    %155 = vector.shape_cast %154 : vector<1x16x128xf32> to vector<16x128xf32>
    %156 = arith.mulf %155, %148 : vector<16x128xf32>
    %157 = vector.extract_strided_slice %127 {offsets = [2, 0, 0], sizes = [1, 16, 128], strides = [1, 1, 1]} : vector<16x16x128xf32> to vector<1x16x128xf32>
    %158 = vector.shape_cast %157 : vector<1x16x128xf32> to vector<16x128xf32>
    %159 = arith.addf %156, %158 : vector<16x128xf32>
    %160 = vector.extract_strided_slice %130 {offsets = [2, 0, 0], sizes = [1, 16, 128], strides = [1, 1, 1]} : vector<16x16x128xf32> to vector<1x16x128xf32>
    %161 = vector.shape_cast %160 : vector<1x16x128xf32> to vector<16x128xf32>
    %162 = arith.mulf %159, %161 : vector<16x128xf32>
    %cst_47 = arith.constant dense<0.000000e+00> : vector<128xf32>
    %163 = vector.multi_reduction <add>, %162, %cst_47 [0] : vector<16x128xf32> to vector<128xf32>
    %164 = vector.shape_cast %163 : vector<128xf32> to vector<1x128xf32>
    %165 = vector.extract_strided_slice %124 {offsets = [3, 0, 0], sizes = [1, 16, 128], strides = [1, 1, 1]} : vector<16x16x128xf32> to vector<1x16x128xf32>
    %166 = vector.shape_cast %165 : vector<1x16x128xf32> to vector<16x128xf32>
    %167 = arith.mulf %166, %159 : vector<16x128xf32>
    %168 = vector.extract_strided_slice %127 {offsets = [3, 0, 0], sizes = [1, 16, 128], strides = [1, 1, 1]} : vector<16x16x128xf32> to vector<1x16x128xf32>
    %169 = vector.shape_cast %168 : vector<1x16x128xf32> to vector<16x128xf32>
    %170 = arith.addf %167, %169 : vector<16x128xf32>
    %171 = vector.extract_strided_slice %130 {offsets = [3, 0, 0], sizes = [1, 16, 128], strides = [1, 1, 1]} : vector<16x16x128xf32> to vector<1x16x128xf32>
    %172 = vector.shape_cast %171 : vector<1x16x128xf32> to vector<16x128xf32>
    %173 = arith.mulf %170, %172 : vector<16x128xf32>
    %cst_48 = arith.constant dense<0.000000e+00> : vector<128xf32>
    %174 = vector.multi_reduction <add>, %173, %cst_48 [0] : vector<16x128xf32> to vector<128xf32>
    %175 = vector.shape_cast %174 : vector<128xf32> to vector<1x128xf32>
    %176 = vector.extract_strided_slice %124 {offsets = [4, 0, 0], sizes = [1, 16, 128], strides = [1, 1, 1]} : vector<16x16x128xf32> to vector<1x16x128xf32>
    %177 = vector.shape_cast %176 : vector<1x16x128xf32> to vector<16x128xf32>
    %178 = arith.mulf %177, %170 : vector<16x128xf32>
    %179 = vector.extract_strided_slice %127 {offsets = [4, 0, 0], sizes = [1, 16, 128], strides = [1, 1, 1]} : vector<16x16x128xf32> to vector<1x16x128xf32>
    %180 = vector.shape_cast %179 : vector<1x16x128xf32> to vector<16x128xf32>
    %181 = arith.addf %178, %180 : vector<16x128xf32>
    %182 = vector.extract_strided_slice %130 {offsets = [4, 0, 0], sizes = [1, 16, 128], strides = [1, 1, 1]} : vector<16x16x128xf32> to vector<1x16x128xf32>
    %183 = vector.shape_cast %182 : vector<1x16x128xf32> to vector<16x128xf32>
    %184 = arith.mulf %181, %183 : vector<16x128xf32>
    %cst_49 = arith.constant dense<0.000000e+00> : vector<128xf32>
    %185 = vector.multi_reduction <add>, %184, %cst_49 [0] : vector<16x128xf32> to vector<128xf32>
    %186 = vector.shape_cast %185 : vector<128xf32> to vector<1x128xf32>
    %187 = vector.extract_strided_slice %124 {offsets = [5, 0, 0], sizes = [1, 16, 128], strides = [1, 1, 1]} : vector<16x16x128xf32> to vector<1x16x128xf32>
    %188 = vector.shape_cast %187 : vector<1x16x128xf32> to vector<16x128xf32>
    %189 = arith.mulf %188, %181 : vector<16x128xf32>
    %190 = vector.extract_strided_slice %127 {offsets = [5, 0, 0], sizes = [1, 16, 128], strides = [1, 1, 1]} : vector<16x16x128xf32> to vector<1x16x128xf32>
    %191 = vector.shape_cast %190 : vector<1x16x128xf32> to vector<16x128xf32>
    %192 = arith.addf %189, %191 : vector<16x128xf32>
    %193 = vector.extract_strided_slice %130 {offsets = [5, 0, 0], sizes = [1, 16, 128], strides = [1, 1, 1]} : vector<16x16x128xf32> to vector<1x16x128xf32>
    %194 = vector.shape_cast %193 : vector<1x16x128xf32> to vector<16x128xf32>
    %195 = arith.mulf %192, %194 : vector<16x128xf32>
    %cst_50 = arith.constant dense<0.000000e+00> : vector<128xf32>
    %196 = vector.multi_reduction <add>, %195, %cst_50 [0] : vector<16x128xf32> to vector<128xf32>
    %197 = vector.shape_cast %196 : vector<128xf32> to vector<1x128xf32>
    %198 = vector.extract_strided_slice %124 {offsets = [6, 0, 0], sizes = [1, 16, 128], strides = [1, 1, 1]} : vector<16x16x128xf32> to vector<1x16x128xf32>
    %199 = vector.shape_cast %198 : vector<1x16x128xf32> to vector<16x128xf32>
    %200 = arith.mulf %199, %192 : vector<16x128xf32>
    %201 = vector.extract_strided_slice %127 {offsets = [6, 0, 0], sizes = [1, 16, 128], strides = [1, 1, 1]} : vector<16x16x128xf32> to vector<1x16x128xf32>
    %202 = vector.shape_cast %201 : vector<1x16x128xf32> to vector<16x128xf32>
    %203 = arith.addf %200, %202 : vector<16x128xf32>
    %204 = vector.extract_strided_slice %130 {offsets = [6, 0, 0], sizes = [1, 16, 128], strides = [1, 1, 1]} : vector<16x16x128xf32> to vector<1x16x128xf32>
    %205 = vector.shape_cast %204 : vector<1x16x128xf32> to vector<16x128xf32>
    %206 = arith.mulf %203, %205 : vector<16x128xf32>
    %cst_51 = arith.constant dense<0.000000e+00> : vector<128xf32>
    %207 = vector.multi_reduction <add>, %206, %cst_51 [0] : vector<16x128xf32> to vector<128xf32>
    %208 = vector.shape_cast %207 : vector<128xf32> to vector<1x128xf32>
    %209 = vector.extract_strided_slice %124 {offsets = [7, 0, 0], sizes = [1, 16, 128], strides = [1, 1, 1]} : vector<16x16x128xf32> to vector<1x16x128xf32>
    %210 = vector.shape_cast %209 : vector<1x16x128xf32> to vector<16x128xf32>
    %211 = arith.mulf %210, %203 : vector<16x128xf32>
    %212 = vector.extract_strided_slice %127 {offsets = [7, 0, 0], sizes = [1, 16, 128], strides = [1, 1, 1]} : vector<16x16x128xf32> to vector<1x16x128xf32>
    %213 = vector.shape_cast %212 : vector<1x16x128xf32> to vector<16x128xf32>
    %214 = arith.addf %211, %213 : vector<16x128xf32>
    %215 = vector.extract_strided_slice %130 {offsets = [7, 0, 0], sizes = [1, 16, 128], strides = [1, 1, 1]} : vector<16x16x128xf32> to vector<1x16x128xf32>
    %216 = vector.shape_cast %215 : vector<1x16x128xf32> to vector<16x128xf32>
    %217 = arith.mulf %214, %216 : vector<16x128xf32>
    %cst_52 = arith.constant dense<0.000000e+00> : vector<128xf32>
    %218 = vector.multi_reduction <add>, %217, %cst_52 [0] : vector<16x128xf32> to vector<128xf32>
    %219 = vector.shape_cast %218 : vector<128xf32> to vector<1x128xf32>
    %220 = vector.extract_strided_slice %124 {offsets = [8, 0, 0], sizes = [1, 16, 128], strides = [1, 1, 1]} : vector<16x16x128xf32> to vector<1x16x128xf32>
    %221 = vector.shape_cast %220 : vector<1x16x128xf32> to vector<16x128xf32>
    %222 = arith.mulf %221, %214 : vector<16x128xf32>
    %223 = vector.extract_strided_slice %127 {offsets = [8, 0, 0], sizes = [1, 16, 128], strides = [1, 1, 1]} : vector<16x16x128xf32> to vector<1x16x128xf32>
    %224 = vector.shape_cast %223 : vector<1x16x128xf32> to vector<16x128xf32>
    %225 = arith.addf %222, %224 : vector<16x128xf32>
    %226 = vector.extract_strided_slice %130 {offsets = [8, 0, 0], sizes = [1, 16, 128], strides = [1, 1, 1]} : vector<16x16x128xf32> to vector<1x16x128xf32>
    %227 = vector.shape_cast %226 : vector<1x16x128xf32> to vector<16x128xf32>
    %228 = arith.mulf %225, %227 : vector<16x128xf32>
    %cst_53 = arith.constant dense<0.000000e+00> : vector<128xf32>
    %229 = vector.multi_reduction <add>, %228, %cst_53 [0] : vector<16x128xf32> to vector<128xf32>
    %230 = vector.shape_cast %229 : vector<128xf32> to vector<1x128xf32>
    %231 = vector.extract_strided_slice %124 {offsets = [9, 0, 0], sizes = [1, 16, 128], strides = [1, 1, 1]} : vector<16x16x128xf32> to vector<1x16x128xf32>
    %232 = vector.shape_cast %231 : vector<1x16x128xf32> to vector<16x128xf32>
    %233 = arith.mulf %232, %225 : vector<16x128xf32>
    %234 = vector.extract_strided_slice %127 {offsets = [9, 0, 0], sizes = [1, 16, 128], strides = [1, 1, 1]} : vector<16x16x128xf32> to vector<1x16x128xf32>
    %235 = vector.shape_cast %234 : vector<1x16x128xf32> to vector<16x128xf32>
    %236 = arith.addf %233, %235 : vector<16x128xf32>
    %237 = vector.extract_strided_slice %130 {offsets = [9, 0, 0], sizes = [1, 16, 128], strides = [1, 1, 1]} : vector<16x16x128xf32> to vector<1x16x128xf32>
    %238 = vector.shape_cast %237 : vector<1x16x128xf32> to vector<16x128xf32>
    %239 = arith.mulf %236, %238 : vector<16x128xf32>
    %cst_54 = arith.constant dense<0.000000e+00> : vector<128xf32>
    %240 = vector.multi_reduction <add>, %239, %cst_54 [0] : vector<16x128xf32> to vector<128xf32>
    %241 = vector.shape_cast %240 : vector<128xf32> to vector<1x128xf32>
    %242 = vector.extract_strided_slice %124 {offsets = [10, 0, 0], sizes = [1, 16, 128], strides = [1, 1, 1]} : vector<16x16x128xf32> to vector<1x16x128xf32>
    %243 = vector.shape_cast %242 : vector<1x16x128xf32> to vector<16x128xf32>
    %244 = arith.mulf %243, %236 : vector<16x128xf32>
    %245 = vector.extract_strided_slice %127 {offsets = [10, 0, 0], sizes = [1, 16, 128], strides = [1, 1, 1]} : vector<16x16x128xf32> to vector<1x16x128xf32>
    %246 = vector.shape_cast %245 : vector<1x16x128xf32> to vector<16x128xf32>
    %247 = arith.addf %244, %246 : vector<16x128xf32>
    %248 = vector.extract_strided_slice %130 {offsets = [10, 0, 0], sizes = [1, 16, 128], strides = [1, 1, 1]} : vector<16x16x128xf32> to vector<1x16x128xf32>
    %249 = vector.shape_cast %248 : vector<1x16x128xf32> to vector<16x128xf32>
    %250 = arith.mulf %247, %249 : vector<16x128xf32>
    %cst_55 = arith.constant dense<0.000000e+00> : vector<128xf32>
    %251 = vector.multi_reduction <add>, %250, %cst_55 [0] : vector<16x128xf32> to vector<128xf32>
    %252 = vector.shape_cast %251 : vector<128xf32> to vector<1x128xf32>
    %253 = vector.extract_strided_slice %124 {offsets = [11, 0, 0], sizes = [1, 16, 128], strides = [1, 1, 1]} : vector<16x16x128xf32> to vector<1x16x128xf32>
    %254 = vector.shape_cast %253 : vector<1x16x128xf32> to vector<16x128xf32>
    %255 = arith.mulf %254, %247 : vector<16x128xf32>
    %256 = vector.extract_strided_slice %127 {offsets = [11, 0, 0], sizes = [1, 16, 128], strides = [1, 1, 1]} : vector<16x16x128xf32> to vector<1x16x128xf32>
    %257 = vector.shape_cast %256 : vector<1x16x128xf32> to vector<16x128xf32>
    %258 = arith.addf %255, %257 : vector<16x128xf32>
    %259 = vector.extract_strided_slice %130 {offsets = [11, 0, 0], sizes = [1, 16, 128], strides = [1, 1, 1]} : vector<16x16x128xf32> to vector<1x16x128xf32>
    %260 = vector.shape_cast %259 : vector<1x16x128xf32> to vector<16x128xf32>
    %261 = arith.mulf %258, %260 : vector<16x128xf32>
    %cst_56 = arith.constant dense<0.000000e+00> : vector<128xf32>
    %262 = vector.multi_reduction <add>, %261, %cst_56 [0] : vector<16x128xf32> to vector<128xf32>
    %263 = vector.shape_cast %262 : vector<128xf32> to vector<1x128xf32>
    %264 = vector.extract_strided_slice %124 {offsets = [12, 0, 0], sizes = [1, 16, 128], strides = [1, 1, 1]} : vector<16x16x128xf32> to vector<1x16x128xf32>
    %265 = vector.shape_cast %264 : vector<1x16x128xf32> to vector<16x128xf32>
    %266 = arith.mulf %265, %258 : vector<16x128xf32>
    %267 = vector.extract_strided_slice %127 {offsets = [12, 0, 0], sizes = [1, 16, 128], strides = [1, 1, 1]} : vector<16x16x128xf32> to vector<1x16x128xf32>
    %268 = vector.shape_cast %267 : vector<1x16x128xf32> to vector<16x128xf32>
    %269 = arith.addf %266, %268 : vector<16x128xf32>
    %270 = vector.extract_strided_slice %130 {offsets = [12, 0, 0], sizes = [1, 16, 128], strides = [1, 1, 1]} : vector<16x16x128xf32> to vector<1x16x128xf32>
    %271 = vector.shape_cast %270 : vector<1x16x128xf32> to vector<16x128xf32>
    %272 = arith.mulf %269, %271 : vector<16x128xf32>
    %cst_57 = arith.constant dense<0.000000e+00> : vector<128xf32>
    %273 = vector.multi_reduction <add>, %272, %cst_57 [0] : vector<16x128xf32> to vector<128xf32>
    %274 = vector.shape_cast %273 : vector<128xf32> to vector<1x128xf32>
    %275 = vector.extract_strided_slice %124 {offsets = [13, 0, 0], sizes = [1, 16, 128], strides = [1, 1, 1]} : vector<16x16x128xf32> to vector<1x16x128xf32>
    %276 = vector.shape_cast %275 : vector<1x16x128xf32> to vector<16x128xf32>
    %277 = arith.mulf %276, %269 : vector<16x128xf32>
    %278 = vector.extract_strided_slice %127 {offsets = [13, 0, 0], sizes = [1, 16, 128], strides = [1, 1, 1]} : vector<16x16x128xf32> to vector<1x16x128xf32>
    %279 = vector.shape_cast %278 : vector<1x16x128xf32> to vector<16x128xf32>
    %280 = arith.addf %277, %279 : vector<16x128xf32>
    %281 = vector.extract_strided_slice %130 {offsets = [13, 0, 0], sizes = [1, 16, 128], strides = [1, 1, 1]} : vector<16x16x128xf32> to vector<1x16x128xf32>
    %282 = vector.shape_cast %281 : vector<1x16x128xf32> to vector<16x128xf32>
    %283 = arith.mulf %280, %282 : vector<16x128xf32>
    %cst_58 = arith.constant dense<0.000000e+00> : vector<128xf32>
    %284 = vector.multi_reduction <add>, %283, %cst_58 [0] : vector<16x128xf32> to vector<128xf32>
    %285 = vector.shape_cast %284 : vector<128xf32> to vector<1x128xf32>
    %286 = vector.extract_strided_slice %124 {offsets = [14, 0, 0], sizes = [1, 16, 128], strides = [1, 1, 1]} : vector<16x16x128xf32> to vector<1x16x128xf32>
    %287 = vector.shape_cast %286 : vector<1x16x128xf32> to vector<16x128xf32>
    %288 = arith.mulf %287, %280 : vector<16x128xf32>
    %289 = vector.extract_strided_slice %127 {offsets = [14, 0, 0], sizes = [1, 16, 128], strides = [1, 1, 1]} : vector<16x16x128xf32> to vector<1x16x128xf32>
    %290 = vector.shape_cast %289 : vector<1x16x128xf32> to vector<16x128xf32>
    %291 = arith.addf %288, %290 : vector<16x128xf32>
    %292 = vector.extract_strided_slice %130 {offsets = [14, 0, 0], sizes = [1, 16, 128], strides = [1, 1, 1]} : vector<16x16x128xf32> to vector<1x16x128xf32>
    %293 = vector.shape_cast %292 : vector<1x16x128xf32> to vector<16x128xf32>
    %294 = arith.mulf %291, %293 : vector<16x128xf32>
    %cst_59 = arith.constant dense<0.000000e+00> : vector<128xf32>
    %295 = vector.multi_reduction <add>, %294, %cst_59 [0] : vector<16x128xf32> to vector<128xf32>
    %296 = vector.shape_cast %295 : vector<128xf32> to vector<1x128xf32>
    %297 = vector.extract_strided_slice %124 {offsets = [15, 0, 0], sizes = [1, 16, 128], strides = [1, 1, 1]} : vector<16x16x128xf32> to vector<1x16x128xf32>
    %298 = vector.shape_cast %297 : vector<1x16x128xf32> to vector<16x128xf32>
    %299 = arith.mulf %298, %291 : vector<16x128xf32>
    %300 = vector.extract_strided_slice %127 {offsets = [15, 0, 0], sizes = [1, 16, 128], strides = [1, 1, 1]} : vector<16x16x128xf32> to vector<1x16x128xf32>
    %301 = vector.shape_cast %300 : vector<1x16x128xf32> to vector<16x128xf32>
    %302 = arith.addf %299, %301 : vector<16x128xf32>
    %303 = vector.extract_strided_slice %130 {offsets = [15, 0, 0], sizes = [1, 16, 128], strides = [1, 1, 1]} : vector<16x16x128xf32> to vector<1x16x128xf32>
    %304 = vector.shape_cast %303 : vector<1x16x128xf32> to vector<16x128xf32>
    %305 = arith.mulf %302, %304 : vector<16x128xf32>
    %cst_60 = arith.constant dense<0.000000e+00> : vector<128xf32>
    %306 = vector.multi_reduction <add>, %305, %cst_60 [0] : vector<16x128xf32> to vector<128xf32>
    %307 = vector.shape_cast %306 : vector<128xf32> to vector<1x128xf32>
    %308 = tpu.concatenate %142, %153, %164, %175, %186, %197, %208, %219, %230, %241, %252, %263, %274, %285, %296, %307 in 0 : vector<1x128xf32>, vector<1x128xf32>, vector<1x128xf32>, vector<1x128xf32>, vector<1x128xf32>, vector<1x128xf32>, vector<1x128xf32>, vector<1x128xf32>, vector<1x128xf32>, vector<1x128xf32>, vector<1x128xf32>, vector<1x128xf32>, vector<1x128xf32>, vector<1x128xf32>, vector<1x128xf32>, vector<1x128xf32> -> vector<16x128xf32>
    %309 = vector.extract_strided_slice %308 {offsets = [0, 0], sizes = [16, 64], strides = [1, 1]} : vector<16x128xf32> to vector<16x64xf32>
    %310 = vector.extract_strided_slice %308 {offsets = [0, 64], sizes = [16, 64], strides = [1, 1]} : vector<16x128xf32> to vector<16x64xf32>
    %311 = tpu.concatenate %309, %310 in 0 : vector<16x64xf32>, vector<16x64xf32> -> vector<32x64xf32>
    %c0_61 = arith.constant 0 : index
    %c0_62 = arith.constant 0 : index
    %c0_63 = arith.constant 0 : index
    %312 = vector.load %arg11[%c0_61, %c0_62, %c0_63] : memref<1x1x64xf32, #tpu.memory_space<vmem>>, vector<1x1x64xf32>
    %313 = vector.shape_cast %312 : vector<1x1x64xf32> to vector<1x64xf32>
    %314 = vector.broadcast %313 : vector<1x64xf32> to vector<32x64xf32>
    %315 = arith.mulf %84, %314 : vector<32x64xf32>
    %316 = arith.addf %311, %315 : vector<32x64xf32>
    %cst_64 = arith.constant 0.000000e+00 : f32
    %317 = vector.broadcast %cst_64 : f32 to vector<32x64xf32>
    %318 = arith.subf %317, %35 : vector<32x64xf32>
    %319 = math.exp %318 : vector<32x64xf32>
    %cst_65 = arith.constant 1.000000e+00 : f32
    %320 = vector.broadcast %cst_65 : f32 to vector<32x64xf32>
    %321 = arith.addf %320, %319 : vector<32x64xf32>
    %322 = tpu.reciprocal %321 {approx = true} : vector<32x64xf32> -> vector<32x64xf32>
    %323 = arith.mulf %35, %322 : vector<32x64xf32>
    %324 = arith.mulf %316, %323 : vector<32x64xf32>
    %c0_66 = arith.constant 0 : index
    %c0_67 = arith.constant 0 : index
    %c0_68 = arith.constant 0 : index
    %325 = vector.load %arg12[%c0_66, %c0_67, %c0_68] : memref<1x64x32xf32, #tpu.memory_space<vmem>>, vector<1x64x32xf32>
    %326 = vector.shape_cast %325 : vector<1x64x32xf32> to vector<64x32xf32>
    %cst_69 = arith.constant dense<0.000000e+00> : vector<32x32xf32>
    %327 = tpu.matmul %324, %326, %cst_69 {dimension_numbers = #tpu.dot_dimension_numbers<[1], [0], [0], [1], [0, 0, 1, 1], [], []>} : vector<32x64xf32>, vector<64x32xf32>, vector<32x32xf32> -> vector<32x32xf32>
    %c0_70 = arith.constant 0 : index
    %c0_71 = arith.constant 0 : index
    %328 = vector.load %arg16[%c0_70, %c0_71] : memref<32x32xf32, #tpu.memory_space<vmem>>, vector<32x32xf32>
    tpu.vector_store %arg16[%c0_70, %c0_71], %327 {strides = array<i32>} : memref<32x32xf32, #tpu.memory_space<vmem>>, vector<32x32xf32>,
    %c1_i32_72 = arith.constant 1 : i32
    %329 = arith.cmpi eq, %arg0, %c1_i32_72 : i32
    %330 = arith.extui %329 : i1 to i32
    %c0_i32_73 = arith.constant 0 : i32
    %331 = arith.cmpi ne, %330, %c0_i32_73 : i32
    scf.if %331 {
      %332 = arith.addf %327, %5 : vector<32x32xf32>
      %c0_74 = arith.constant 0 : index
      %c0_75 = arith.constant 0 : index
      %333 = vector.load %arg13[%c0_74, %c0_75] : memref<1x32xf32, #tpu.memory_space<vmem>>, vector<1x32xf32>
      %c0_76 = arith.constant 0 : index
      %c0_77 = arith.constant 0 : index
      %334 = vector.load %arg14[%c0_76, %c0_77] : memref<1x32xf32, #tpu.memory_space<vmem>>, vector<1x32xf32>
      %cst_78 = arith.constant dense<0.000000e+00> : vector<32xf32>
      %335 = vector.multi_reduction <add>, %332, %cst_78 [1] : vector<32x32xf32> to vector<32xf32>
      %336 = vector.shape_cast %335 : vector<32xf32> to vector<32x1xf32>
      %cst_79 = arith.constant 3.200000e+01 : f32
      %337 = vector.broadcast %cst_79 : f32 to vector<32x1xf32>
      %338 = arith.divf %336, %337 : vector<32x1xf32>
      %339 = vector.broadcast %338 : vector<32x1xf32> to vector<32x32xf32>
      %340 = arith.subf %332, %339 : vector<32x32xf32>
      %341 = arith.mulf %340, %340 : vector<32x32xf32>
      %cst_80 = arith.constant dense<0.000000e+00> : vector<32xf32>
      %342 = vector.multi_reduction <add>, %341, %cst_80 [1] : vector<32x32xf32> to vector<32xf32>
      %343 = vector.shape_cast %342 : vector<32xf32> to vector<32x1xf32>
      %cst_81 = arith.constant 3.200000e+01 : f32
      %344 = vector.broadcast %cst_81 : f32 to vector<32x1xf32>
      %345 = arith.divf %343, %344 : vector<32x1xf32>
      %cst_82 = arith.constant 9.99999974E-6 : f32
      %346 = vector.broadcast %cst_82 : f32 to vector<32x1xf32>
      %347 = arith.addf %345, %346 : vector<32x1xf32>
      %348 = math.rsqrt %347 : vector<32x1xf32>
      %349 = vector.broadcast %348 : vector<32x1xf32> to vector<32x32xf32>
      %350 = arith.mulf %340, %349 : vector<32x32xf32>
      %351 = vector.broadcast %333 : vector<1x32xf32> to vector<32x32xf32>
      %352 = arith.mulf %350, %351 : vector<32x32xf32>
      %353 = vector.broadcast %334 : vector<1x32xf32> to vector<32x32xf32>
      %354 = arith.addf %352, %353 : vector<32x32xf32>
      %c0_83 = arith.constant 0 : index
      %c0_84 = arith.constant 0 : index
      %355 = vector.load %arg15[%c0_83, %c0_84] : memref<32x32xf32, #tpu.memory_space<vmem>>, vector<32x32xf32>
      tpu.vector_store %arg15[%c0_83, %c0_84], %354 {strides = array<i32>} : memref<32x32xf32, #tpu.memory_space<vmem>>, vector<32x32xf32>,
    } else {
    }
    return
  }
  func.func @transform_0(%arg0: i32) -> (i32, i32) {
    %c0_i32 = arith.constant 0 : i32
    %c0_i32_0 = arith.constant 0 : i32
    %c0_i32_1 = arith.constant 0 : i32
    return %c0_i32, %c0_i32_0 : i32, i32
  }
  func.func @transform_1(%arg0: i32) -> (i32, i32) {
    %c0_i32 = arith.constant 0 : i32
    %c0_i32_0 = arith.constant 0 : i32
    %c0_i32_1 = arith.constant 0 : i32
    return %c0_i32, %c0_i32_0 : i32, i32
  }
  func.func @transform_2(%arg0: i32) -> (i32, i32, i32) {
    %c0_i32 = arith.constant 0 : i32
    %c0_i32_0 = arith.constant 0 : i32
    %c0_i32_1 = arith.constant 0 : i32
    return %arg0, %c0_i32, %c0_i32_0 : i32, i32, i32
  }
  func.func @transform_3(%arg0: i32) -> (i32, i32, i32) {
    %c0_i32 = arith.constant 0 : i32
    %c0_i32_0 = arith.constant 0 : i32
    %c0_i32_1 = arith.constant 0 : i32
    return %arg0, %c0_i32, %c0_i32_0 : i32, i32, i32
  }
  func.func @transform_4(%arg0: i32) -> (i32, i32, i32) {
    %c0_i32 = arith.constant 0 : i32
    %c0_i32_0 = arith.constant 0 : i32
    %c0_i32_1 = arith.constant 0 : i32
    return %arg0, %c0_i32, %c0_i32_0 : i32, i32, i32
  }
  func.func @transform_5(%arg0: i32) -> (i32, i32, i32) {
    %c0_i32 = arith.constant 0 : i32
    %c0_i32_0 = arith.constant 0 : i32
    %c0_i32_1 = arith.constant 0 : i32
    return %arg0, %c0_i32, %c0_i32_0 : i32, i32, i32
  }
  func.func @transform_6(%arg0: i32) -> (i32, i32, i32) {
    %c0_i32 = arith.constant 0 : i32
    %c0_i32_0 = arith.constant 0 : i32
    %c0_i32_1 = arith.constant 0 : i32
    return %arg0, %c0_i32, %c0_i32_0 : i32, i32, i32
  }
  func.func @transform_7(%arg0: i32) -> (i32, i32, i32) {
    %c0_i32 = arith.constant 0 : i32
    %c0_i32_0 = arith.constant 0 : i32
    %c0_i32_1 = arith.constant 0 : i32
    return %arg0, %c0_i32, %c0_i32_0 : i32, i32, i32
  }
  func.func @transform_8(%arg0: i32) -> (i32, i32, i32) {
    %c0_i32 = arith.constant 0 : i32
    %c0_i32_0 = arith.constant 0 : i32
    %c0_i32_1 = arith.constant 0 : i32
    return %arg0, %c0_i32, %c0_i32_0 : i32, i32, i32
  }
  func.func @transform_9(%arg0: i32) -> (i32, i32, i32) {
    %c0_i32 = arith.constant 0 : i32
    %c0_i32_0 = arith.constant 0 : i32
    %c0_i32_1 = arith.constant 0 : i32
    return %arg0, %c0_i32, %c0_i32_0 : i32, i32, i32
  }
  func.func @transform_10(%arg0: i32) -> (i32, i32, i32) {
    %c0_i32 = arith.constant 0 : i32
    %c0_i32_0 = arith.constant 0 : i32
    %c0_i32_1 = arith.constant 0 : i32
    return %arg0, %c0_i32, %c0_i32_0 : i32, i32, i32
  }
  func.func @transform_11(%arg0: i32) -> (i32, i32, i32) {
    %c0_i32 = arith.constant 0 : i32
    %c0_i32_0 = arith.constant 0 : i32
    %c0_i32_1 = arith.constant 0 : i32
    return %arg0, %c0_i32, %c0_i32_0 : i32, i32, i32
  }
  func.func @transform_12(%arg0: i32) -> (i32, i32) {
    %c0_i32 = arith.constant 0 : i32
    %c0_i32_0 = arith.constant 0 : i32
    %c0_i32_1 = arith.constant 0 : i32
    return %c0_i32, %c0_i32_0 : i32, i32
  }
  func.func @transform_13(%arg0: i32) -> (i32, i32) {
    %c0_i32 = arith.constant 0 : i32
    %c0_i32_0 = arith.constant 0 : i32
    %c0_i32_1 = arith.constant 0 : i32
    return %c0_i32, %c0_i32_0 : i32, i32
  }
  func.func @transform_14(%arg0: i32) -> (i32, i32) {
    %c0_i32 = arith.constant 0 : i32
    %c0_i32_0 = arith.constant 0 : i32
    %c0_i32_1 = arith.constant 0 : i32
    return %c0_i32, %c0_i32_0 : i32, i32
  }
}

</mosaic_0001>

<bundles_post_ra>
// kernel: mixer_model_forward.1
= control target key start
LH: loop header
LB: loop body
LE: loop exit
PB: predicated region body
PF: predicated region fallthrough
CT: control target
= control target key end

     0   :  { %s6135_s0 = inlined_call_operand.hbm [shape: f32[32,32], index: 0, kind: input, shape index: {}]   ;;  %s6136_s1 = inlined_call_operand.hbm [shape: f32[32,32], index: 1, kind: input, shape index: {}]   ;;  %s6137_s2 = inlined_call_operand.hbm [shape: f32[2,1,32], index: 2, kind: input, shape index: {}]   ;;  %s6138_s3 = inlined_call_operand.hbm [shape: f32[2,1,32], index: 3, kind: input, shape index: {}]   ;;  %s6139_s4 = inlined_call_operand.vmem [shape: f32[2,32,128], index: 4, kind: input, shape index: {}]   ;;  %s6140_s5 = inlined_call_operand.vmem [shape: f32[2,4,64], index: 5, kind: input, shape index: {}]   ;;  %s6141_s6 = inlined_call_operand.hbm [shape: f32[2,1,64], index: 6, kind: input, shape index: {}]   ;;  %s6142_s7 = inlined_call_operand.vmem [shape: f32[2,64,128], index: 7, kind: input, shape index: {}]   ;;  %s6143_s8 = inlined_call_operand.hbm [shape: f32[2,1,64], index: 8, kind: input, shape index: {}]   ;;  %s6144_s9 = inlined_call_operand.hbm [shape: f32[2,16,64], index: 9, kind: input, shape index: {}]   ;;  %s6145_s10 = inlined_call_operand.vmem [shape: f32[2,1,64], index: 10, kind: input, shape index: {}]   ;;  %s6146_s11 = inlined_call_operand.vmem [shape: f32[2,64,32], index: 11, kind: input, shape index: {}]   ;;  %s6147_s12 = inlined_call_operand.vmem [shape: f32[1,32], index: 12, kind: input, shape index: {}]   ;;  %s6148_s13 = inlined_call_operand.vmem [shape: f32[1,32], index: 13, kind: input, shape index: {}]   ;;  %s6149_s14 = inlined_call_operand.hbm [shape: f32[32,32], index: 14, kind: output, shape index: {}]  }
   0x1   :  { %6186 = sst [smem:[#allocation139_spill]] %s6135_s0 }
   0x2   :  { %6187 = sst [smem:[#allocation140_spill]] %s6137_s2 }
   0x3   :  { %6188 = sst [smem:[#allocation141_spill]] %s6138_s3 }
   0x4   :  { %6189 = sst [smem:[#allocation142_spill]] %s6142_s7 }
   0x5   :  { %6190 = sst [smem:[#allocation143_spill]] %s6146_s11 }
   0x6   :  { %6191 = sst [smem:[#allocation144_spill]] %s6147_s12 }
   0x7   :  { %6192 = sst [smem:[#allocation145_spill]] %s6148_s13 }
   0x8   :  { %6193 = sst [smem:[#allocation146_spill]] %s6149_s14 }
   0x9   :  { %19 = vsyncpa [#allocation5], 0 }
   0xa   :  { %20 = vsyncpa [#allocation8], 0 }
   0xb   :  { %21 = vsyncpa [#allocation6], 0  ;;  %s4252_s29 = smov 0   ;;  %s4254_s30 = smov 0  }
   0xc   :  { %s4256_s15 = smov 0   ;;  %s4258_s16 = smov 0  }
   0xd LB: > { %6194 = sst [smem:[#allocation19_spill]] %s4161_s15  ;;  %s4271_s17 = sadd.s32 4294967295, %s4165_s16   ;;  %s4165_s16 = sphi %s4258_s16, %s6461_s16   ;;  %s4161_s15 = sphi %s4256_s15, %s6463_s15   ;;  %s4157_s30 = sphi %s4254_s30, %s6465_s30   ;;  %s4153_s29 = sphi %s4252_s29, %s6464_s29  }
   0xe   : > { %p89_p0 = scmp.ne.s32.totalorder %s4157_s30, %s4153_s29  ;;  %p90_p1 = scmp.eq.s32.totalorder %s4271_s17, 0 }
   0xf   : > { %p3433_p2 = scmp.ge.s32.totalorder %s4165_s16, 1  ;;  %p397_p3 = scmp.lt.s32.totalorder %s4165_s16, 3 }
  0x10   : > { %p4280_p5 = por %p90_p1, %p89_p0  ;;  %s6196_s0 = sld [smem:[#allocation139_spill]] }
  0x11   : > { %p4287_p6 = pnand %p3433_p2, %p397_p3  ;;  %s4167_s23 = smov [#allocation4]  }
  0x12   : > { %s410_s24 = sshll.u32 %s4167_s23, 4  ;;  %s4300_s26 = sadd.s32 1, %s4165_s16   ;;  %s411_s24 = int_to_ptr.vmem [resolvable:$true] %s410_s24 }
  0x13   : > { %p3517_p7 = pneg %p4287_p6  ;;  %6199 = sst [smem:[#allocation20_spill]] %s4300_s26 }
  0x14   : > { %s6150_s27 = smov 128   ;;  %s6152_s28 = smov 8  }
  0x15   : > { %p4295_p8 = pnand %p3517_p7, %p90_p1  ;;  %s73_s29 = ssub.s32 %s4165_s16, %s4300_s26 }
  0x16   : > { %s408_s21 = sshll.u32 %s6196_s0, 4  ;;  %s76_s19 = sadd.s32 1, %s4161_s15  ;;  %s409_s21 = int_to_ptr.hbm [resolvable:$true] %s408_s21 }
  0x17   : > { %3520 = dma.hbm_to_vmem [thread:$0]  (!%p4295_p8), %s409_s21, 512, %s411_s24, [#allocation5], %s6150_s27, %s6150_s27, %s6152_s28  }
  0x18   : > { %p74_p9 = scmp.eq.s32.totalorder %s73_s29, 0  ;;  %p83_p10 = scmp.ne.s32.totalorder %s4161_s15, %s4157_s30 }
  0x19   : > { %p84_p11 = scmp.eq.s32.totalorder %s4165_s16, 0  ;;  %p3542_p12 = scmp.lt.s32.totalorder %s4165_s16, 2 }
  0x1a   : > { %s4315_s20 = scalar_select %p74_p9, %s4161_s15, %s76_s19  }
  0x1b   : > { %p85_p13 = por %p84_p11, %p83_p10  ;;  %s444_s23 = sand.u32 1, %s4165_s16  }
  0x1c   : > { %6200 = sst [smem:[#allocation21_spill]] %s4315_s20  ;;  %s4319_s0 = sand.u32 1, %s4161_s15  }
  0x1d   : > { %s6201_s2 = sld [smem:[#allocation140_spill]]  ;;  %s447_s24 = scalar_lea.vmem [#allocation9], %s4319_s0 }
  0x1e   : > { %s454_s27 = sshll.u32 %s447_s24, 4  ;;  %p4326_p0 = pnand %p3542_p12, %p85_p13  ;;  %s455_s27 = int_to_ptr.vmem [resolvable:$true] %s454_s27 }
  0x1f   : > { %s6203_s3 = sld [smem:[#allocation141_spill]]  ;;  %s464_s15 = scalar_lea.vmem [#allocation10], %s4319_s0 }
  0x20   : > { %s4335_s26 = sshll.u32 %s464_s15, 4  ;;  %s4339_s14 = scalar_lea.sflag [#allocation5], %s444_s23  ;;  %s472_s26 = int_to_ptr.vmem [resolvable:$true] %s4335_s26 }
  0x21   : > { %p4343_p3 = pneg %p4326_p0 }
  0x23   : > { %s450_s12 = scalar_lea.hbm %s6201_s2, %s4165_s16 }
  0x24   : > { %s452_s21 = sshll.u32 %s450_s12, 4  ;;  %s453_s21 = int_to_ptr.hbm [resolvable:$true] %s452_s21 }
  0x25   : > { %s467_s20 = scalar_lea.hbm %s6203_s3, %s4165_s16  ;;  %s3911_s12 = sshra.s32 %s453_s21, 4  ;;  %s3912_s12 = int_to_ptr.hbm [resolvable:$true] %s3911_s12 }
  0x26   : > { %s4337_s13 = sshll.u32 %s467_s20, 4  ;;  %s3913_s24 = scalar_lea.hbm %s3912_s12, 1  ;;  %s470_s13 = int_to_ptr.hbm [resolvable:$true] %s4337_s13 }
  0x27   : > { %p3914_p2 = scmp.ne.s32.totalorder %s3912_s12, %s3913_s24  ;;  %s3918_s20 = scalar_lea.hbm %s6201_s2, 2 }
  0x28   : > { %p3919_p10 = scmp.lt.s32.totalorder %s3912_s12, %s6201_s2  ;;  %p3920_p11 = scmp.lt.s32.totalorder %s3918_s20, %s3913_s24 }
  0x29   : > { %p3916_p7 = pnand %p4343_p3, %p3914_p2 }
  0x2a   : > { %p3921_p12 = por %p3920_p11, %p3919_p10 }
  0x2b   : > { %p3917_p9 = pneg %p3916_p7 }
  0x2d   : > { %p3922_p13 = pnand %p3921_p12, %p3917_p9 }
  0x2f   : > { %3925 = shalt.err (!%p3922_p13)
}
  0x30   : > { %3527 = dma.hbm_to_vmem [thread:$0]  (!%p4326_p0), %s453_s21, 16, %s455_s27, %s4339_s14  }
  0x31   : > { %s3941_s7 = sshra.s32 %s470_s13, 4  ;;  %s3948_s15 = scalar_lea.hbm %s6203_s3, 2  ;;  %s3942_s7 = int_to_ptr.hbm [resolvable:$true] %s3941_s7 }
  0x32   : > { %s3943_s28 = scalar_lea.hbm %s3942_s7, 1  ;;  %p3949_p9 = scmp.lt.s32.totalorder %s3942_s7, %s6203_s3 }
  0x33   : > { %p3944_p2 = scmp.ne.s32.totalorder %s3942_s7, %s3943_s28  ;;  %p3950_p10 = scmp.lt.s32.totalorder %s3948_s15, %s3943_s28 }
  0x35   : > { %p3946_p7 = pnand %p3944_p2, %p4343_p3  ;;  %p3951_p11 = por %p3950_p10, %p3949_p9 }
  0x37   : > { %p3947_p4 = pneg %p3946_p7 }
  0x39   : > { %p3952_p12 = pnand %p3951_p11, %p3947_p4 }
  0x3b   : > { %3955 = shalt.err (!%p3952_p12)
}
  0x3c   : > { %3530 = dma.hbm_to_vmem [thread:$0]  (!%p4326_p0), %s470_s13, 16, %s472_s26, %s4339_s14  }
  0x3d   : > { %s499_s23 = scalar_lea.hbm %s6141_s6, %s4165_s16  ;;  %s496_s24 = scalar_lea.vmem [#allocation11], %s4319_s0 }
  0x3e   : > { %s501_s12 = sshll.u32 %s499_s23, 4  ;;  %s503_s2 = sshll.u32 %s496_s24, 4  ;;  %s502_s12 = int_to_ptr.hbm [resolvable:$true] %s501_s12  ;;  %s504_s2 = int_to_ptr.vmem [resolvable:$true] %s503_s2 }
  0x3f   : > { %s3971_s7 = sshra.s32 %s502_s12, 4  ;;  %s3978_s26 = scalar_lea.hbm %s6141_s6, 2  ;;  %s3972_s7 = int_to_ptr.hbm [resolvable:$true] %s3971_s7 }
  0x40   : > { %s3973_s28 = scalar_lea.hbm %s3972_s7, 1  ;;  %p3979_p7 = scmp.lt.s32.totalorder %s3972_s7, %s6141_s6 }
  0x41   : > { %p3974_p4 = scmp.ne.s32.totalorder %s3972_s7, %s3973_s28  ;;  %p3980_p9 = scmp.lt.s32.totalorder %s3978_s26, %s3973_s28 }
  0x43   : > { %p3976_p13 = pnand %p3974_p4, %p4343_p3  ;;  %p3981_p10 = por %p3980_p9, %p3979_p7 }
  0x45   : > { %p3977_p2 = pneg %p3976_p13 }
  0x47   : > { %p3982_p11 = pnand %p3981_p10, %p3977_p2 }
  0x49   : > { %3985 = shalt.err (!%p3982_p11)
}
  0x4a   : > { %3533 = dma.hbm_to_vmem [thread:$0]  (!%p4326_p0), %s502_s12, 16, %s504_s2, %s4339_s14  }
  0x4b   : > { %s524_s23 = scalar_lea.hbm %s6143_s8, %s4165_s16  ;;  %s521_s15 = scalar_lea.vmem [#allocation12], %s4319_s0 }
  0x4c   : > { %s526_s24 = sshll.u32 %s524_s23, 4  ;;  %s528_s20 = sshll.u32 %s521_s15, 4  ;;  %s527_s24 = int_to_ptr.hbm [resolvable:$true] %s526_s24  ;;  %s529_s20 = int_to_ptr.vmem [resolvable:$true] %s528_s20 }
  0x4d   : > { %s4001_s7 = sshra.s32 %s527_s24, 4  ;;  %s4008_s2 = scalar_lea.hbm %s6143_s8, 2  ;;  %s4002_s7 = int_to_ptr.hbm [resolvable:$true] %s4001_s7 }
  0x4e   : > { %s4003_s28 = scalar_lea.hbm %s4002_s7, 1  ;;  %p4009_p2 = scmp.lt.s32.totalorder %s4002_s7, %s6143_s8 }
  0x4f   : > { %p4004_p12 = scmp.ne.s32.totalorder %s4002_s7, %s4003_s28  ;;  %p4010_p7 = scmp.lt.s32.totalorder %s4008_s2, %s4003_s28 }
  0x51   : > { %p4006_p4 = pnand %p4004_p12, %p4343_p3  ;;  %p4011_p9 = por %p4010_p7, %p4009_p2 }
  0x53   : > { %p4007_p13 = pneg %p4006_p4 }
  0x55   : > { %p4012_p10 = pnand %p4011_p9, %p4007_p13 }
  0x57   : > { %4015 = shalt.err (!%p4012_p10)
}
  0x58   : > { %3536 = dma.hbm_to_vmem [thread:$0]  (!%p4326_p0), %s527_s24, 16, %s529_s20, %s4339_s14  }
  0x59   : > { %s422_s23 = sshll.u32 %s6136_s1, 4  ;;  %s4170_s15 = smov [#allocation7]   ;;  %s423_s23 = int_to_ptr.hbm [resolvable:$true] %s422_s23 }
  0x5a   : > { %s424_s26 = sshll.u32 %s4170_s15, 4  ;;  %s3437_s7 = sshll.u32 %s4319_s0, 4  ;;  %s425_s26 = int_to_ptr.vmem [resolvable:$true] %s424_s26 }
  0x5b   : > { %s6205_s28 = smov 8   ;;  %s6206_s13 = smov 128  }
  0x5c   : > { %3523 = dma.hbm_to_vmem [thread:$0]  (!%p4295_p8), %s423_s23, 512, %s425_s26, [#allocation8], %s6206_s13, %s6206_s13, %s6205_s28  }
  0x5d   : > { %s3475_s2 = sshll.u32 %s4165_s16, 4  ;;  %s539_s20 = scalar_lea.vmem [#allocation13], %s3437_s7 }
  0x5e   : > { %s544_s24 = scalar_lea.hbm %s6144_s9, %s3475_s2  ;;  %s547_s3 = sshll.u32 %s539_s20, 4  ;;  %s548_s3 = int_to_ptr.vmem [resolvable:$true] %s547_s3 }
  0x5f   : > { %s545_s27 = sshll.u32 %s544_s24, 4  ;;  %s4068_s16 = scalar_lea.hbm %s6144_s9, 32  ;;  %s546_s27 = int_to_ptr.hbm [resolvable:$true] %s545_s27 }
  0x60   : > { %s4061_s21 = sshra.s32 %s546_s27, 4  ;;  %s4062_s21 = int_to_ptr.hbm [resolvable:$true] %s4061_s21 }
  0x61   : > { %s4063_s15 = scalar_lea.hbm %s4062_s21, 16  ;;  %p4069_p8 = scmp.lt.s32.totalorder %s4062_s21, %s6144_s9 }
  0x62   : > { %p4064_p11 = scmp.ne.s32.totalorder %s4062_s21, %s4063_s15  ;;  %p4070_p13 = scmp.lt.s32.totalorder %s4068_s16, %s4063_s15 }
  0x64   : > { %p4066_p12 = pnand %p4064_p11, %p4343_p3  ;;  %p4071_p2 = por %p4070_p13, %p4069_p8 }
  0x66   : > { %p4067_p4 = pneg %p4066_p12 }
  0x68   : > { %p4072_p7 = pnand %p4071_p2, %p4067_p4 }
  0x6a   : > { %4075 = shalt.err (!%p4072_p7)
}
  0x6b   : > { %3539 = dma.hbm_to_vmem [thread:$0]  (!%p4326_p0), %s546_s27, 256, %s548_s3, %s4339_s14, %s6206_s13, %s6206_s13, %s6205_s28  }
  0x6c   : > { %573 = sbr.rel (%p4287_p6) target bundleno = 2196 (0x894), region = 76 }
  0x71   : > { %4136 = dma.done.wait (%p90_p1), [#allocation5], 512  }
  0x72   : > { %4138 = vsyncadd (%p90_p1), [#allocation5], 4294966784 }
  0x73   : > { %4140 = dma.done.wait (%p90_p1), [#allocation8], 512  }
  0x74   : > { %4142 = vsyncadd (%p90_p1), [#allocation8], 4294966784  ;;  %s585_s11 = sand.u32 1, %s4271_s17   ;;  %s4442_s3 = sand.u32 1, %s4157_s30  }
  0x75   : > { %s586_s22 = scalar_lea.sflag [#allocation5], %s585_s11 }
  0x76   : > { %4144 = dma.done.wait (%p4280_p5), %s586_s22, 320  }
  0x77   : > { %4146 = vsyncadd (%p4280_p5), %s586_s22, 4294966976  ;;  %s3443_s14 = sshll.u32 %s4442_s3, 4  ;;  %p704_p1 = scmp.lt.s32.totalorder %s4271_s17, 1 }
  0x78   : > { %s6207_s23 = sld [smem:[#allocation142_spill]]  ;;  %s597_s12 = scalar_lea.vmem [#allocation10], %s4442_s3 }
  0x79   : > { %s4452_s7 = scalar_select %p704_p1, %s4271_s17, 1 }
  0x7a   : > { %s6208_s2 = sld [smem:[#allocation143_spill]]  ;;  %s606_s29 = scalar_lea.vmem [#allocation11], %s4442_s3 }
  0x7b   : > { %s3476_s28 = sshll.u32 %s4452_s7, 5  ;;  %s3446_s13 = sshll.u32 %s4452_s7, 2 }
  0x7c   : > { %s4459_s18 = scalar_lea.vmem %s6139_s4, %s3476_s28  ;;  %s4464_s20 = scalar_lea.vmem %s6140_s5, %s3446_s13 }
  0x7d   : > { %s3477_s27 = sshll.u32 %s4452_s7, 6  ;;  %s720_s0 = scalar_lea.vmem %s6145_s10, %s4452_s7 }
  0x7e   : > { %s4474_s26 = scalar_lea.vmem %s6207_s23, %s3477_s27  ;;  %s615_s19 = scalar_lea.vmem [#allocation12], %s4442_s3 }
  0x7f   : > { %s4484_s13 = scalar_lea.vmem [#allocation13], %s3443_s14  ;;  %p6209_p5 = scmp.ne.s32.totalorder %s4271_s17, 0 }
  0x80   : > { %s4479_s28 = scalar_lea.vmem %s6208_s2, %s3477_s27 }
  0x81   : > { %729 = sbr.rel (%p6209_p5) target bundleno = 143 (0x8f), region = 108 }
  0x86   : > { %v730_v0 = vld [vmem:[#allocation4] sm:$0xff]  ;;  %vm734_vm0 = vcmask 261120   ;;  %v731_v1 = vld [vmem:[#allocation4 + $0x8] sm:$0xff]  ;;  %v732_v2 = vld [vmem:[#allocation4 + $0x10] sm:$0xff] }
  0x87   : > { %735 = vst.msk [vmem:[#allocation2] sm:$0xff] %vm734_vm0, %v730_v0  ;;  %v733_v3 = vld [vmem:[#allocation4 + $0x18] sm:$0xff]  ;;  %v739_v4 = vld [vmem:[#allocation7] sm:$0xff]  ;;  %v740_v5 = vld [vmem:[#allocation7 + $0x8] sm:$0xff] }
  0x88   : > { %736 = vst.msk [vmem:[#allocation2 + $0x8] sm:$0xff] %vm734_vm0, %v731_v1  ;;  %v741_v6 = vld [vmem:[#allocation7 + $0x10] sm:$0xff]  ;;  %v742_v7 = vld [vmem:[#allocation7 + $0x18] sm:$0xff] }
  0x89   : > { %737 = vst.msk [vmem:[#allocation2 + $0x10] sm:$0xff] %vm734_vm0, %v732_v2 }
  0x8a   : > { %738 = vst.msk [vmem:[#allocation2 + $0x18] sm:$0xff] %vm734_vm0, %v733_v3 }
  0x8b   : > { %743 = vst.msk [vmem:[#allocation3] sm:$0xff] %vm734_vm0, %v739_v4 }
  0x8c   : > { %744 = vst.msk [vmem:[#allocation3 + $0x8] sm:$0xff] %vm734_vm0, %v740_v5 }
  0x8d   : > { %745 = vst.msk [vmem:[#allocation3 + $0x10] sm:$0xff] %vm734_vm0, %v741_v6 }
  0x8e   : > { %746 = vst.msk [vmem:[#allocation3 + $0x18] sm:$0xff] %vm734_vm0, %v742_v7 }
  0x8f PF: > { %v747_v8 = vld [vmem:[#allocation2] sm:$0xff]  ;;  %vm759_vm1 = vcmask 261120   ;;  %v748_v10 = vld [vmem:[#allocation2 + $0x8] sm:$0xff]  ;;  %v4171_v24 = vmov 32.0   ;;  %v878_v51 = vld [vmem:[%s4459_s18 + $0x18] sm:$0xff]  ;;  %s6215_s14 = scalar_lea.vmem [#allocation9], %s4442_s3 }
  0x90   : > { %v749_v13 = vld [vmem:[#allocation2 + $0x10] sm:$0xff]  ;;  %3683 = vrcp.f32 %v4171_v24  ;;  %903 = vmatpush.msra.mxu0 %v878_v51  ;;  %v876_v53 = vld [vmem:[%s4459_s18 + $0x8] sm:$0xff]  ;;  %v875_v54 = vld [vmem:[%s4459_s18] sm:$0xff]  ;;  %s4173_s3 = smov 64   ;;  %p3470_p6 = scmp.ne.s32.totalorder %s4271_s17, 1 }
  0x91   : > { %v750_v17 = vld [vmem:[#allocation2 + $0x18] sm:$0xff]  ;;  %v877_v52 = vld [vmem:[%s4459_s18 + $0x10] sm:$0xff]  ;;  %s6459_s15 = sld [smem:[#allocation145_spill]] (!%p3470_p6) }
  0x92   : > { %v751_v9 = vld [vmem:[#allocation3] sm:$0xff]  ;;  %904 = vmatpush.msra.mxu0 %v877_v52  ;;  %v920_v52 = vlaneseq }
  0x93   : > { %v4488_v11 = vadd.f32 %v751_v9, %v747_v8  ;;  %v752_v12 = vld [vmem:[#allocation3 + $0x8] sm:$0xff] }
  0x94   : > { %v753_v14 = vld [vmem:[#allocation3 + $0x10] sm:$0xff]  ;;  %v4490_v15 = vadd.f32 %v752_v12, %v748_v10  ;;  %905 = vmatpush.msra.mxu0 %v876_v53  ;;  %v1076_v53 = vld [vmem:[%s4474_s26 + $0x38] sm:$0xff] }
  0x95   : > { %6210 = vst [vmem:[#allocation22_spill] sm:$0xff] %v4488_v11  ;;  %v4492_v16 = vadd.f32 %v753_v14, %v749_v13  ;;  %v754_v18 = vld [vmem:[#allocation3 + $0x18] sm:$0xff]  ;;  %v766_v19 = vsel %vm759_vm1, %v4488_v11, 0.0  ;;  %3479 = vmatpush.msra.mxu3 %v1076_v53  ;;  %1098 = vmatpush.msra.mxu1 %v1076_v53 }
  0x96   : > { %6211 = vst [vmem:[#allocation23_spill] sm:$0xff] %v4490_v15  ;;  %767 = vadd.xlane.f32.xlu0 %v766_v19  ;;  %v4502_v21 = vadd.f32 %v754_v18, %v750_v17  ;;  %v769_v22 = vsel %vm759_vm1, %v4490_v15, 0.0  ;;  %v3684_v25 = vpop.eup %3683  ;;  %906 = vmatpush.msra.mxu0 %v875_v54 }
  0x97   : > { %6212 = vst [vmem:[#allocation24_spill] sm:$0xff] %v4492_v16  ;;  %v772_v20 = vsel %vm759_vm1, %v4492_v16, 0.0  ;;  %v779_v26 = vmul.f32 32.0, %v3684_v25  ;;  %vm783_vm2 = vweird.f32 %v3684_v25 }
  0x98   : > { %760 = vst.msk [vmem:[#allocation3] sm:$0xff] %vm759_vm1, %v4488_v11  ;;  %773 = vadd.xlane.f32.xlu1 %v772_v20  ;;  %v775_v23 = vsel %vm759_vm1, %v4502_v21, 0.0  ;;  %v3678_v20 = vld [vmem:[%s6215_s14] ss:$0 sm:$0xff] }
  0x99   : > { %761 = vst.msk [vmem:[#allocation3 + $0x8] sm:$0xff] %vm759_vm1, %v4490_v15  ;;  %v780_v27 = vsub.f32 1.0, %v779_v26 }
  0x9a   : > { %6213 = vst [vmem:[#allocation25_spill] sm:$0xff] %v4502_v21 }
  0x9b   : > { %762 = vst.msk [vmem:[#allocation3 + $0x10] sm:$0xff] %vm759_vm1, %v4492_v16  ;;  %v781_v28 = vmul.f32 %v3684_v25, %v780_v27  ;;  %v3679_v27 = vld [vmem:[%s597_s12] ss:$0 sm:$0xff] }
  0x9c   : > { %763 = vst.msk [vmem:[#allocation3 + $0x18] sm:$0xff] %vm759_vm1, %v4502_v21 }
  0x9d   : > { %v782_v29 = vadd.f32 %v3684_v25, %v781_v28 }
  0x9e   : > { %770 = vadd.xlane.f32.xlu0 %v769_v22 }
  0x9f   : > { %v4512_v30 = vsel %vm783_vm2, %v3684_v25, %v782_v29 }
  0xa0   : > { %776 = vadd.xlane.f32.xlu1 %v775_v23  ;;  %6214 = vst [vmem:[#allocation26_spill] sm:$0xff] %v4512_v30 }
 0x109   : > { %v768_v31 = vpop.xlane.xlu0 %767 }
 0x10a   : > { %v785_v32 = vmul.f32 %v4512_v30, %v768_v31 }
 0x10b   : > { %v774_v33 = vpop.xlane.xlu1 %773 }
 0x10c   : > { %v787_v34 = vmul.f32 %v4512_v30, %v774_v33  ;;  %v4517_v35 = vsub.f32 %v4488_v11, %v785_v32 }
 0x10e   : > { %v4520_v36 = vsub.f32 %v4492_v16, %v787_v34  ;;  %v793_v37 = vmul.f32 %v4517_v35, %v4517_v35 }
 0x110   : > { %v795_v38 = vmul.f32 %v4520_v36, %v4520_v36  ;;  %v797_v39 = vsel %vm759_vm1, %v793_v37, 0.0 }
 0x111   : > { %798 = vadd.xlane.f32.xlu2 %v797_v39  ;;  %v771_v40 = vpop.xlane.xlu0 %770 }
 0x112   : > { %v803_v41 = vsel %vm759_vm1, %v795_v38, 0.0  ;;  %v786_v42 = vmul.f32 %v4512_v30, %v771_v40 }
 0x113   : > { %v777_v43 = vpop.xlane.xlu1 %776  ;;  %804 = vadd.xlane.f32.xlu0 %v803_v41 }
 0x114   : > { %v788_v44 = vmul.f32 %v4512_v30, %v777_v43  ;;  %v4531_v45 = vsub.f32 %v4490_v15, %v786_v42 }
 0x116   : > { %v4534_v46 = vsub.f32 %v4502_v21, %v788_v44  ;;  %v794_v47 = vmul.f32 %v4531_v45, %v4531_v45 }
 0x118   : > { %v796_v48 = vmul.f32 %v4534_v46, %v4534_v46  ;;  %v800_v49 = vsel %vm759_vm1, %v794_v47, 0.0 }
 0x119   : > { %801 = vadd.xlane.f32.xlu2 %v800_v49 }
 0x11a   : > { %v806_v50 = vsel %vm759_vm1, %v796_v48, 0.0 }
 0x11b   : > { %807 = vadd.xlane.f32.xlu1 %v806_v50 }
 0x184   : > { %v799_v55 = vpop.xlane.xlu2 %798 }
 0x185   : > { %v809_v56 = vmul.f32 %v799_v55, %v4512_v30  ;;  %v1075_v55 = vld [vmem:[%s4474_s26 + $0x30] sm:$0xff] }
 0x186   : > { %v805_v57 = vpop.xlane.xlu0 %804  ;;  %3480 = vmatpush.msra.mxu3 %v1075_v55  ;;  %1099 = vmatpush.msra.mxu1 %v1075_v55 }
 0x187   : > { %v811_v58 = vmul.f32 %v805_v57, %v4512_v30  ;;  %v813_v59 = vadd.f32 1e-05, %v809_v56  ;;  %v1074_v56 = vld [vmem:[%s4474_s26 + $0x28] sm:$0xff] }
 0x188   : > { %3481 = vmatpush.msra.mxu3 %v1074_v56  ;;  %1100 = vmatpush.msra.mxu1 %v1074_v56 }
 0x189   : > { %v815_v60 = vadd.f32 1e-05, %v811_v58  ;;  %3685 = vrsqrt.f32 %v813_v59  ;;  %vm823_vm4 = vweird.f32 %v813_v59  ;;  %v1073_v58 = vld [vmem:[%s4474_s26 + $0x20] sm:$0xff] }
 0x18a   : > { %3482 = vmatpush.msra.mxu3 %v1073_v58  ;;  %1101 = vmatpush.msra.mxu1 %v1073_v58 }
 0x18b   : > { %3687 = vrsqrt.f32 %v815_v60  ;;  %vm843_vm6 = vweird.f32 %v815_v60 }
 0x18c   : > { %v802_v61 = vpop.xlane.xlu2 %801 }
 0x18d   : > { %v810_v62 = vmul.f32 %v802_v61, %v4512_v30 }
 0x18e   : > { %v808_v63 = vpop.xlane.xlu1 %807 }
 0x18f   : > { %v812_v0 = vmul.f32 %v808_v63, %v4512_v30  ;;  %v3686_v1 = vpop.eup %3685  ;;  %v814_v2 = vadd.f32 1e-05, %v810_v62  ;;  %v1071_v62 = vld [vmem:[%s4474_s26 + $0x10] sm:$0xff] }
 0x190   : > { %v818_v4 = vmul.f32 %v3686_v1, %v813_v59  ;;  %vm824_vm3 = vweird.f32 %v3686_v1  ;;  %v1072_v59 = vld [vmem:[%s4474_s26 + $0x18] sm:$0xff] }
 0x191   : > { %v3688_v3 = vpop.eup %3687  ;;  %v816_v5 = vadd.f32 1e-05, %v812_v0  ;;  %3689 = vrsqrt.f32 %v814_v2  ;;  %vm825_vm5 = vmor %vm823_vm4, %vm824_vm3  ;;  %vm833_vm10 = vweird.f32 %v814_v2  ;;  %3483 = vmatpush.msra.mxu3 %v1072_v59  ;;  %1102 = vmatpush.msra.mxu1 %v1072_v59  ;;  %v1070_v0 = vld [vmem:[%s4474_s26 + $0x8] sm:$0xff] }
 0x192   : > { %v838_v6 = vmul.f32 %v3688_v3, %v815_v60  ;;  %v819_v7 = vmul.f32 %v3686_v1, %v818_v4  ;;  %vm844_vm7 = vweird.f32 %v3688_v3  ;;  %v929_v60 = vld [vmem:[%s4464_s20] sm:$0xf]  ;;  %s6458_s20 = sld [smem:[#allocation144_spill]] (!%p3470_p6) }
 0x193   : > { %3691 = vrsqrt.f32 %v816_v5  ;;  %vm845_vm9 = vmor %vm843_vm6, %vm844_vm7  ;;  %vm853_vm12 = vweird.f32 %v816_v5  ;;  %3484 = vmatpush.msra.mxu3 %v1071_v62  ;;  %1103 = vmatpush.msra.mxu1 %v1071_v62  ;;  %v4583_v63 = vperm.slane %v929_v60, 3 }
 0x194   : > { %v839_v8 = vmul.f32 %v3688_v3, %v838_v6  ;;  %v820_v9 = vmul.f32 0.5, %v819_v7 }
 0x195   : > { %3485 = vmatpush.msra.mxu3 %v1070_v0  ;;  %1104 = vmatpush.msra.mxu1 %v1070_v0 }
 0x196   : > { %v821_v10 = vsub.f32 1.5, %v820_v9  ;;  %v840_v12 = vmul.f32 0.5, %v839_v8 }
 0x197   : > { %v3690_v13 = vpop.eup %3689 }
 0x198   : > { %v822_v17 = vmul.f32 %v3686_v1, %v821_v10  ;;  %v828_v18 = vmul.f32 %v3690_v13, %v814_v2  ;;  %v841_v23 = vsub.f32 1.5, %v840_v12  ;;  %vm834_vm8 = vweird.f32 %v3690_v13  ;;  %v4602_v12 = vld [vmem:[%s606_s29] ss:$0 sm:$0xff] }
 0x199   : > { %v3692_v14 = vpop.eup %3691  ;;  %vm835_vm11 = vmor %vm833_vm10, %vm834_vm8  ;;  %v4588_v2 = vperm.slane %v929_v60, 0  ;;  %vm2977_vm10 = vcmask 1040384  }
 0x19a   : > { %v848_v19 = vmul.f32 %v3692_v14, %v816_v5  ;;  %v829_v22 = vmul.f32 %v3690_v13, %v828_v18  ;;  %v826_v24 = vsel %vm825_vm5, %v3686_v1, %v822_v17  ;;  %v842_v32 = vmul.f32 %v3688_v3, %v841_v23  ;;  %v1069_v1 = vld [vmem:[%s4474_s26] sm:$0xff] }
 0x19b   : > { %v857_v26 = vmul.f32 %v826_v24, %v4517_v35  ;;  %vm854_vm13 = vweird.f32 %v3692_v14  ;;  %3486 = vmatpush.msra.mxu3 %v1069_v1  ;;  %1105 = vmatpush.msra.mxu1 %v1069_v1 }
 0x19c   : > { %v849_v25 = vmul.f32 %v3692_v14, %v848_v19  ;;  %v830_v28 = vmul.f32 0.5, %v829_v22  ;;  %v846_v38 = vsel %vm845_vm9, %v3688_v3, %v842_v32  ;;  %vm855_vm14 = vmor %vm853_vm12, %vm854_vm13  ;;  %v4618_v22 = vperm.slane %v929_v60, 2 }
 0x19d   : > { %v864_v29 = vmul.f32 %v3678_v20, %v857_v26  ;;  %v859_v42 = vmul.f32 %v846_v38, %v4520_v36  ;;  %v4562_v36 = vshrl.u32 %v920_v52, 7  ;;  %vm1077_vm9 = vcmask 523264  }
 0x19e   : > { %v831_v31 = vsub.f32 1.5, %v830_v28  ;;  %v850_v33 = vmul.f32 0.5, %v849_v25  ;;  %vm2981_vm12 = vcmask 1042432   ;;  %vm2983_vm13 = vcmask 1043456  }
 0x19f   : > { %v871_v34 = vadd.f32 %v3679_v27, %v864_v29  ;;  %v866_v47 = vmul.f32 %v3678_v20, %v859_v42  ;;  %v4566_v54 = vadd.s32 64, %v4562_v36  ;;  %v923_v61 = vadd.s32 16, %v4562_v36 }
 0x1a0   : > { %v832_v37 = vmul.f32 %v3690_v13, %v831_v31  ;;  %v851_v39 = vsub.f32 1.5, %v850_v33  ;;  %vm959_vm15 = vcmp.lt.s32.totalorder %v4562_v36, 3  ;;  %vm993_vm0 = vcmp.lt.s32.totalorder %v4562_v36, 2 }
 0x1a1   : > { %3452 = vmatmul.msk.f32.vlgmr.msra.gmra.mxu0 %vm759_vm1, %v871_v34  ;;  %v873_v49 = vadd.f32 %v3679_v27, %v866_v47  ;;  %3591 = vset.pattern.permute.xlu0 %v4566_v54  ;;  %v927_v6 = vand.u32 15, %v923_v61  ;;  %vm1027_vm2 = vcmp.lt.s32.totalorder %v4562_v36, 1  ;;  %v925_v26 = vand.u32 15, %v4562_v36 }
 0x1a2   : > { %v836_v35 = vsel %vm835_vm11, %v3690_v13, %v832_v37  ;;  %v852_v43 = vmul.f32 %v3692_v14, %v851_v39  ;;  %3589 = vset.pattern.permute.xlu2 %v4566_v54  ;;  %v4604_v13 = vperm.slane %v929_v60, 1  ;;  %v4172_v31 = vmov 0.0  }
 0x1a3   : > { %v858_v40 = vmul.f32 %v836_v35, %v4531_v45  ;;  %vm945_vm3 = vcmp.ge.s32.totalorder %v927_v6, 3  ;;  %vm979_vm4 = vcmp.ge.s32.totalorder %v927_v6, 2  ;;  %vm1013_vm5 = vcmp.ge.s32.totalorder %v927_v6, 1 }
 0x1a4   : > { %v856_v48 = vsel %vm855_vm14, %v3692_v14, %v852_v43  ;;  %v3457_v32 = vsel %vm945_vm3, 1.0, %v4172_v31  ;;  %v3459_v33 = vsel %vm979_vm4, 1.0, %v4172_v31  ;;  %vm943_vm6 = vcmp.ge.s32.totalorder %v925_v26, 3 }
 0x1a5   : > { %v865_v41 = vmul.f32 %v3678_v20, %v858_v40  ;;  %v860_v50 = vmul.f32 %v856_v48, %v4534_v46  ;;  %v4569_v46 = vadd.s32 72, %v4562_v36  ;;  %v3461_v40 = vsel %vm1013_vm5, 1.0, %v4172_v31 }
 0x1a6   : > { %vm977_vm7 = vcmp.ge.s32.totalorder %v925_v26, 2  ;;  %v3456_v52 = vsel %vm943_vm6, 1.0, %v4172_v31  ;;  %vm1011_vm8 = vcmp.ge.s32.totalorder %v925_v26, 1  ;;  %vm2979_vm11 = vcmask 1041408  }
 0x1a7   : > { %v872_v44 = vadd.f32 %v3679_v27, %v865_v41  ;;  %v867_v45 = vmul.f32 %v3678_v20, %v860_v50  ;;  %3590 = vset.pattern.permute.xlu1 %v4569_v46  ;;  %v3458_v58 = vsel %vm977_vm7, 1.0, %v4172_v31  ;;  %vm2985_vm14 = vcmask 1044480  }
 0x1a9   : > { %3453 = vmatmul.msk.f32.gmra.mxu0 %vm759_vm1, %v872_v44  ;;  %v874_v51 = vadd.f32 %v3679_v27, %v867_v45 }
 0x1b1   : > { %3454 = vmatmul.msk.f32.gmra.mxu0 %vm759_vm1, %v873_v49 }
 0x1b9   : > { %3455 = vmatmul.msk.f32.gmra.mxu0 %vm759_vm1, %v874_v51 }
 0x21e   : > { %v4575_v57 = vpop.f32.mrf.mxu0 }
 0x21f   : > { %6216 = vst [vmem:[#allocation27_spill] sm:$0xff] %v4575_v57  ;;  %v955_v3 = vrot.slane %v4575_v57, 5  ;;  %v989_v4 = vrot.slane %v4575_v57, 6  ;;  %v1023_v14 = vrot.slane %v4575_v57, 7  ;;  %v931_v0 = vmul.f32 %v4583_v63, %v4575_v57 }
 0x226   : > { %v4592_v5 = vpop.f32.mrf.mxu0 }
 0x227   : > { %6217 = vst [vmem:[#allocation28_spill] sm:$0xff] %v4592_v5  ;;  %v932_v7 = vmul.f32 %v4583_v63, %v4592_v5  ;;  %v956_v8 = vrot.slane %v4592_v5, 5  ;;  %v990_v9 = vrot.slane %v4592_v5, 6  ;;  %v1024_v10 = vrot.slane %v4592_v5, 7 }
 0x229   : > { %v940_v17 = vadd.f32 %v4602_v12, %v932_v7  ;;  %v962_v18 = vsel %vm959_vm15, %v955_v3, %v956_v8  ;;  %v996_v19 = vsel %vm993_vm0, %v989_v4, %v990_v9  ;;  %v1030_v23 = vsel %vm1027_vm2, %v1023_v14, %v1024_v10 }
 0x22a   : > { %v970_v20 = vmul.f32 %v4588_v2, %v962_v18  ;;  %v1004_v25 = vmul.f32 %v4604_v13, %v996_v19  ;;  %v1038_v29 = vmul.f32 %v4618_v22, %v1030_v23 }
 0x22c   : > { %v974_v24 = vadd.f32 %v970_v20, %v940_v17 }
 0x22e   : > { %v4624_v27 = vpop.f32.mrf.mxu0  ;;  %v1008_v28 = vadd.f32 %v1004_v25, %v974_v24  ;;  %v939_v25 = vadd.f32 %v4602_v12, %v931_v0 }
 0x22f   : > { %6218 = vst [vmem:[#allocation29_spill] sm:$0xff] %v4624_v27  ;;  %v933_v34 = vmul.f32 %v4583_v63, %v4624_v27  ;;  %v957_v37 = vrot.slane %v4624_v27, 5  ;;  %v991_v38 = vrot.slane %v4624_v27, 6  ;;  %v1025_v39 = vrot.slane %v4624_v27, 7 }
 0x230   : > { %v4632_v35 = vadd.f32 %v1038_v29, %v1008_v28 }
 0x231   : > { %v961_v41 = vsel %vm959_vm15, %v956_v8, %v957_v37  ;;  %v995_v42 = vsel %vm993_vm0, %v990_v9, %v991_v38  ;;  %v1029_v43 = vsel %vm1027_vm2, %v1024_v10, %v1025_v39  ;;  %v941_v47 = vadd.f32 %v4602_v12, %v933_v34 }
 0x232   : > { %v1046_v44 = vsub.f32 0.0, %v4632_v35  ;;  %v966_v48 = vmul.f32 %v3457_v32, %v961_v41  ;;  %v1000_v49 = vmul.f32 %v3459_v33, %v995_v42  ;;  %v1034_v51 = vmul.f32 %v3461_v40, %v1029_v43 }
 0x233   : > { %v3460_v9 = vsel %vm1011_vm8, 1.0, %v4172_v31 }
 0x234   : > { %v1051_v50 = vmul.f32 1.442695, %v1046_v44  ;;  %v971_v45 = vmul.f32 %v4588_v2, %v966_v48  ;;  %v1005_v56 = vmul.f32 %v4604_v13, %v1000_v49  ;;  %v1039_v6 = vmul.f32 %v4618_v22, %v1034_v51 }
 0x236   : > { %v4643_v53 = vpop.f32.mrf.mxu0  ;;  %3693 = vpow2.f32 %v1051_v50  ;;  %v975_v55 = vadd.f32 %v971_v45, %v941_v47 }
 0x237   : > { %6219 = vst [vmem:[#allocation30_spill] sm:$0xff] %v4643_v53  ;;  %v934_v59 = vmul.f32 %v4583_v63, %v4643_v53  ;;  %v958_v60 = vrot.slane %v4643_v53, 5  ;;  %v992_v61 = vrot.slane %v4643_v53, 6  ;;  %v1026_v62 = vrot.slane %v4643_v53, 7 }
 0x238   : > { %v1009_v1 = vadd.f32 %v1005_v56, %v975_v55 }
 0x239   : > { %v963_v7 = vsel %vm959_vm15, %v958_v60, %v955_v3  ;;  %v997_v8 = vsel %vm993_vm0, %v992_v61, %v989_v4  ;;  %v1031_v10 = vsel %vm1027_vm2, %v1026_v62, %v1023_v14  ;;  %v942_v19 = vadd.f32 %v4602_v12, %v934_v59 }
 0x23a   : > { %v1043_v17 = vadd.f32 %v1039_v6, %v1009_v1  ;;  %v964_v18 = vmul.f32 %v3456_v52, %v963_v7  ;;  %v998_v63 = vmul.f32 %v3458_v58, %v997_v8  ;;  %v960_v20 = vsel %vm959_vm15, %v957_v37, %v958_v60 }
 0x23b   : > { %v994_v3 = vsel %vm993_vm0, %v991_v38, %v992_v61  ;;  %v1032_v26 = vmul.f32 %v3460_v9, %v1031_v10  ;;  %v972_v14 = vmul.f32 %v4588_v2, %v960_v20  ;;  %v1028_v34 = vsel %vm1027_vm2, %v1025_v39, %v1026_v62  ;;  %v4697_v61 = vld [vmem:[%s615_s19] ss:$0 sm:$0xff] }
 0x23c   : > { %v3694_v23 = vpop.eup %3693  ;;  %v1047_v24 = vsub.f32 0.0, %v1043_v17  ;;  %v969_v4 = vmul.f32 %v4588_v2, %v964_v18  ;;  %v1006_v29 = vmul.f32 %v4604_v13, %v994_v3  ;;  %v1003_v33 = vmul.f32 %v4604_v13, %v998_v63 }
 0x23d   : > { %v1058_v28 = vadd.f32 1.0, %v3694_v23  ;;  %v976_v37 = vadd.f32 %v972_v14, %v942_v19  ;;  %v1040_v38 = vmul.f32 %v4618_v22, %v1028_v34  ;;  %v1037_v40 = vmul.f32 %v4618_v22, %v1032_v26 }
 0x23e   : > { %v1053_v31 = vmul.f32 1.442695, %v1047_v24  ;;  %v973_v32 = vadd.f32 %v969_v4, %v939_v25  ;;  %v4712_v10 = vadd.s32 88, %v4562_v36  ;;  %v4716_v63 = vadd.s32 80, %v4562_v36 }
 0x23f   : > { %3695 = vrcp.f32 %v1058_v28  ;;  %v1010_v41 = vadd.f32 %v1006_v29, %v976_v37  ;;  %vm2987_vm15 = vcmask 1045504   ;;  %vm2989_vm0 = vcmask 1046528  }
 0x240   : > { %3697 = vpow2.f32 %v1053_v31  ;;  %v1007_v12 = vadd.f32 %v1003_v33, %v973_v32 }
 0x241   : > { %v1044_v2 = vadd.f32 %v1040_v38, %v1010_v41 }
 0x242   : > { %v1041_v42 = vadd.f32 %v1037_v40, %v1007_v12 }
 0x243   : > { %v1048_v47 = vsub.f32 0.0, %v1044_v2 }
 0x244   : > { %v1045_v43 = vsub.f32 0.0, %v1041_v42 }
 0x245   : > { %v3696_v44 = vpop.eup %3695  ;;  %v1055_v50 = vmul.f32 1.442695, %v1048_v47 }
 0x246   : > { %v3698_v48 = vpop.eup %3697  ;;  %v4679_v13 = vmul.f32 %v3696_v44, %v4632_v35  ;;  %v1049_v39 = vmul.f32 1.442695, %v1045_v43 }
 0x247   : > { %v1059_v49 = vadd.f32 1.0, %v3698_v48 }
 0x248   : > { %6220 = vst [vmem:[#allocation31_spill] sm:$0xff] %v4679_v13  ;;  %3463 = vmatmul.msk.f32.vlgmr.msra.gmra.mxu3 %vm1077_vm9, %v4679_v13  ;;  %3699 = vpow2.f32 %v1049_v39 }
 0x249   : > { %3701 = vrcp.f32 %v1059_v49 }
 0x24a   : > { %3703 = vpow2.f32 %v1055_v50 }
 0x24e   : > { %v3700_v22 = vpop.eup %3699 }
 0x24f   : > { %v3702_v45 = vpop.eup %3701  ;;  %v1057_v51 = vadd.f32 1.0, %v3700_v22 }
 0x250   : > { %v3704_v52 = vpop.eup %3703  ;;  %v4683_v55 = vmul.f32 %v3702_v45, %v1043_v17 }
 0x251   : > { %3705 = vrcp.f32 %v1057_v51  ;;  %v1060_v56 = vadd.f32 1.0, %v3704_v52 }
 0x252   : > { %6221 = vst [vmem:[#allocation32_spill] sm:$0xff] %v4683_v55  ;;  %3464 = vmatmul.msk.f32.gmra.mxu3 %vm1077_vm9, %v4683_v55 }
 0x253   : > { %3707 = vrcp.f32 %v1060_v56 }
 0x257   : > { %v3706_v35 = vpop.eup %3705 }
 0x258   : > { %v4687_v58 = vmul.f32 %v3706_v35, %v1041_v42 }
 0x259   : > { %v3708_v59 = vpop.eup %3707 }
 0x25a   : > { %6222 = vst [vmem:[#allocation33_spill] sm:$0xff] %v4687_v58  ;;  %3462 = vmatmul.msk.f32.vlgmr.msra.gmra.mxu1 %vm1077_vm9, %v4687_v58  ;;  %v4691_v60 = vmul.f32 %v3708_v59, %v1044_v2 }
 0x25c   : > { %6223 = vst [vmem:[#allocation34_spill] sm:$0xff] %v4691_v60  ;;  %3465 = vmatmul.msk.f32.gmra.mxu3 %vm1077_vm9, %v4691_v60 }
 0x2cb   : > { %v1110_v62 = vpop.f32.mrf.mxu3 }
 0x2cc   : > { %v4700_v0 = vadd.f32 %v4697_v61, %v1110_v62  ;;  %v1570_v1 = vperm.slane %v1110_v62, 1  ;;  %v1557_v6 = vperm.slane %v1110_v62, 0  ;;  %v1596_v7 = vperm.slane %v1110_v62, 3 }
 0x2cd   : > { %v1583_v8 = vperm.slane %v1110_v62, 2  ;;  %v4706_v9 = vperm.slane %v1110_v62, 6  ;;  %v1609_v17 = vperm.slane %v1110_v62, 4  ;;  %v1622_v18 = vperm.slane %v1110_v62, 5 }
 0x2ce   : > { %1575 = vperm.xlu0 %3591, %v1570_v1   ;;  %1568 = vperm.xlu1 %3590, %v1557_v6   ;;  %v4721_v19 = vperm.slane %v1110_v62, 7  ;;  %v1132_v20 = vand.u32 2147483647, %v4700_v0  ;;  %v1128_v14 = vmax.f32 %v4700_v0, 0.0 }
 0x2cf   : > { %1562 = vperm.xlu2 %3589, %v1557_v6  }
 0x2d0   : > { %v1136_v3 = vsub.f32 0.0, %v1132_v20 }
 0x2d2   : > { %v1141_v23 = vmul.f32 1.442695, %v1136_v3 }
 0x2d4   : > { %3709 = vpow2.f32 %v1141_v23 }
 0x2d5   : > { %v4732_v25 = vpop.f32.mrf.mxu3 }
 0x2d6   : > { %3594 = vset.pattern.permute.xlu0 %v4569_v46  ;;  %3593 = vset.pattern.permute.xlu1 %v4566_v54  ;;  %v4735_v26 = vperm.slane %v4732_v25, 0  ;;  %v4750_v33 = vperm.slane %v4732_v25, 3  ;;  %v4763_v40 = vperm.slane %v4732_v25, 5  ;;  %v4775_v44 = vperm.slane %v4732_v25, 1 }
 0x2d7   : > { %3592 = vset.pattern.permute.xlu2 %v4569_v46  ;;  %v1125_v49 = vadd.f32 %v4697_v61, %v4732_v25  ;;  %v4797_v51 = vperm.slane %v4732_v25, 6  ;;  %v4800_v52 = vperm.slane %v4732_v25, 2  ;;  %v4810_v62 = vpop.f32.mrf.mxu1 }
 0x2d8   : > { %v4813_v0 = vperm.slane %v4810_v62, 0  ;;  %v4839_v23 = vperm.slane %v4810_v62, 4  ;;  %v4916_v21 = vperm.slane %v4810_v62, 7 }
 0x2d9   : > { %v1133_v50 = vand.u32 2147483647, %v1125_v49 }
 0x2da   : > { %v3710_v36 = vpop.eup %3709 }
 0x2db   : > { %v1148_v24 = vadd.f32 1.0, %v3710_v36  ;;  %v1137_v22 = vsub.f32 0.0, %v1133_v50 }
 0x2dd   : > { %3711 = vlog2.f32 %v1148_v24  ;;  %v1143_v45 = vmul.f32 1.442695, %v1137_v22 }
 0x2de   : > { %1607 = vperm.xlu0 %3594, %v1596_v7   ;;  %1588 = vperm.xlu1 %3593, %v1583_v8  }
 0x2df   : > { %1581 = vperm.xlu2 %3592, %v1570_v1   ;;  %3713 = vpow2.f32 %v1143_v45  ;;  %v4883_v45 = vperm.slane %v4810_v62, 2 }
 0x2e3   : > { %v3712_v4 = vpop.eup %3711 }
 0x2e4   : > { %v1154_v28 = vmul.f32 0.6931472, %v3712_v4 }
 0x2e5   : > { %v3714_v56 = vpop.eup %3713 }
 0x2e6   : > { %3597 = vset.pattern.permute.xlu0 %v4566_v54  ;;  %1601 = vperm.xlu1 %3593, %v1596_v7   ;;  %v4741_v29 = vadd.f32 %v1154_v28, %v1128_v14  ;;  %v1149_v35 = vadd.f32 1.0, %v3714_v56 }
 0x2e7   : > { %1594 = vperm.xlu2 %3592, %v1583_v8  }
 0x2e8   : > { %v4746_v31 = vmul.f32 %v4741_v29, %v4679_v13  ;;  %3715 = vlog2.f32 %v1149_v35 }
 0x2ea   : > { %6224 = vst [vmem:[#allocation35_spill] sm:$0xff] %v4746_v31  ;;  %v1884_v32 = vrot.slane %v4746_v31, 1  ;;  %v1886_v12 = vrot.slane %v4746_v31, 3  ;;  %v1889_v43 = vrot.slane %v4746_v31, 6  ;;  %v5103_v31 = vld [vmem:[%s4484_s13 + $0x8] sm:$0xff] }
 0x2ec   : > { %v4753_v34 = vperm.slane %v1884_v32, 0  ;;  %v4766_v41 = vperm.slane %v1886_v12, 0  ;;  %v4780_v47 = vperm.slane %v1889_v43, 0  ;;  %v4860_v12 = vperm.slane %v4810_v62, 6 }
 0x2ed   : > { %v4865_v43 = vperm.slane %v4732_v25, 7 }
 0x2ee   : > { %1640 = vperm.xlu0 %3597, %v4706_v9   ;;  %3596 = vset.pattern.permute.xlu1 %v4569_v46  ;;  %6225 = vst [vmem:[#allocation36_spill] sm:$0xff] %v4753_v34 }
 0x2ef   : > { %3595 = vset.pattern.permute.xlu2 %v4566_v54  ;;  %6227 = vst [vmem:[#allocation38_spill] sm:$0xff] %v4766_v41 }
 0x2f0   : > { %6229 = vst [vmem:[#allocation40_spill] sm:$0xff] %v4780_v47 }
 0x2f6   : > { %3602 = vset.pattern.permute.xlu0 %v4712_v10  ;;  %1620 = vperm.xlu1 %3596, %v1609_v17  }
 0x2f7   : > { %1614 = vperm.xlu2 %3595, %v1609_v17  }
 0x2fe   : > { %2151 = vperm.xlu0 %3602, %v1570_v1   ;;  %1633 = vperm.xlu1 %3596, %v1622_v18  }
 0x2ff   : > { %1627 = vperm.xlu2 %3595, %v1622_v18  }
 0x306   : > { %3605 = vset.pattern.permute.xlu0 %v4716_v63  ;;  %3599 = vset.pattern.permute.xlu1 %v4566_v54 }
 0x307   : > { %3598 = vset.pattern.permute.xlu2 %v4569_v46 }
 0x30e   : > { %2181 = vperm.xlu0 %3605, %v1609_v17   ;;  %1653 = vperm.xlu1 %3599, %v4721_v19  }
 0x30f   : > { %1646 = vperm.xlu2 %3598, %v4706_v9  }
 0x316   : > { %3608 = vset.pattern.permute.xlu0 %v4712_v10  ;;  %3600 = vset.pattern.permute.xlu1 %v4716_v63 }
 0x317   : > { %1659 = vperm.xlu2 %3598, %v4721_v19  }
 0x31e   : > { %2211 = vperm.xlu0 %3608, %v4706_v9   ;;  %2133 = vperm.xlu1 %3600, %v1557_v6  }
 0x31f   : > { %3601 = vset.pattern.permute.xlu2 %v4712_v10 }
 0x326   : > { %3612 = vset.pattern.permute.xlu0 %v4569_v46  ;;  %2145 = vperm.xlu1 %3600, %v1570_v1   ;;  %v3716_v1 = vpop.eup %3715 }
 0x327   : > { %2139 = vperm.xlu2 %3601, %v1557_v6  }
 0x32e   : > { %3604 = vset.pattern.permute.xlu1 %v4712_v10  ;;  %1672 = vperm.xlu0 %3612, %v4735_v26  }
 0x32f   : > { %3603 = vset.pattern.permute.xlu2 %v4716_v63 }
 0x336   : > { %2163 = vperm.xlu1 %3604, %v1583_v8   ;;  %3615 = vset.pattern.permute.xlu0 %v4566_v54 }
 0x337   : > { %2157 = vperm.xlu2 %3603, %v1583_v8   ;;  %v4820_v8 = vpop.permute.xlu2 %1562 }
 0x338   : > { %6233 = vst [vmem:[#allocation44_spill] sm:$0xff] %v4820_v8  ;;  %v5087_v8 = vld [vmem:[%s4484_s13] sm:$0xff] }
 0x33e   : > { %2175 = vperm.xlu1 %3604, %v1596_v7   ;;  %1705 = vperm.xlu0 %3615, %v4750_v33  }
 0x33f   : > { %2169 = vperm.xlu2 %3603, %v1596_v7   ;;  %v1156_v7 = vmul.f32 0.6931472, %v3716_v1  ;;  %v4832_v20 = vpop.permute.xlu2 %1581 }
 0x340   : > { %v1576_v37 = vpop.permute.xlu0 %1575  ;;  %6235 = vst [vmem:[#allocation46_spill] sm:$0xff] %v4832_v20  ;;  %v4849_v28 = vpop.permute.xlu1 %1568 }
 0x341   : > { %v4756_v38 = vmul.f32 %v4753_v34, %v1576_v37  ;;  %6236 = vst [vmem:[#allocation47_spill] sm:$0xff] %v4849_v28 }
 0x343   : > { %6226 = vst [vmem:[#allocation37_spill] sm:$0xff] %v4756_v38 }
 0x346   : > { %3607 = vset.pattern.permute.xlu1 %v4716_v63  ;;  %3618 = vset.pattern.permute.xlu0 %v4569_v46 }
 0x347   : > { %3606 = vset.pattern.permute.xlu2 %v4712_v10  ;;  %v4851_v14 = vpop.permute.xlu2 %1594 }
 0x348   : > { %6237 = vst [vmem:[#allocation48_spill] sm:$0xff] %v4851_v14 }
 0x34e   : > { %2193 = vperm.xlu1 %3607, %v1622_v18   ;;  %1737 = vperm.xlu0 %3618, %v4763_v40  }
 0x34f   : > { %2187 = vperm.xlu2 %3606, %v1609_v17   ;;  %v4823_v17 = vperm.slane %v4732_v25, 4 }
 0x350   : > { %v1608_v42 = vpop.permute.xlu0 %1607  ;;  %v4857_v37 = vpop.permute.xlu1 %1588 }
 0x351   : > { %v4769_v2 = vmul.f32 %v4766_v41, %v1608_v42  ;;  %6238 = vst [vmem:[#allocation49_spill] sm:$0xff] %v4857_v37  ;;  %v4862_v42 = vpop.permute.xlu2 %1614  ;;  %v5040_v41 = vperm.slane %v4810_v62, 3 }
 0x352   : > { %6239 = vst [vmem:[#allocation50_spill] sm:$0xff] %v4862_v42  ;;  %v5008_v42 = vperm.slane %v4810_v62, 1 }
 0x353   : > { %6228 = vst [vmem:[#allocation39_spill] sm:$0xff] %v4769_v2 }
 0x356   : > { %2205 = vperm.xlu1 %3607, %v4706_v9   ;;  %3623 = vset.pattern.permute.xlu0 %v4716_v63  ;;  %v1129_v9 = vmax.f32 %v1125_v49, 0.0 }
 0x357   : > { %2199 = vperm.xlu2 %3606, %v1622_v18  }
 0x358   : > { %v4827_v18 = vadd.f32 %v1156_v7, %v1129_v9  ;;  %v4875_v22 = vpop.permute.xlu1 %1601  ;;  %v1123_v9 = vadd.f32 %v4697_v61, %v4810_v62 }
 0x359   : > { %6240 = vst [vmem:[#allocation51_spill] sm:$0xff] %v4875_v22  ;;  %v4879_v25 = vpop.permute.xlu2 %1627 }
 0x35a   : > { %v4836_v3 = vmul.f32 %v4827_v18, %v4683_v55  ;;  %6241 = vst [vmem:[#allocation52_spill] sm:$0xff] %v4879_v25 }
 0x35c   : > { %v6157_v36 = vperm.slane %v4836_v3, 0  ;;  %v1893_v32 = vrot.slane %v4836_v3, 3 }
 0x35e   : > { %3610 = vset.pattern.permute.xlu1 %v4712_v10  ;;  %2241 = vperm.xlu0 %3623, %v4775_v44  }
 0x35f   : > { %3609 = vset.pattern.permute.xlu2 %v4716_v63 }
 0x360   : > { %v1641_v48 = vpop.permute.xlu0 %1640 }
 0x361   : > { %v4783_v39 = vmul.f32 %v4780_v47, %v1641_v48  ;;  %v4870_v48 = vperm.slane %v1893_v32, 0  ;;  %v1131_v32 = vand.u32 2147483647, %v1123_v9 }
 0x363   : > { %6230 = vst [vmem:[#allocation41_spill] sm:$0xff] %v4783_v39 }
 0x366   : > { %2223 = vperm.xlu1 %3610, %v4721_v19   ;;  %3626 = vset.pattern.permute.xlu0 %v4712_v10 }
 0x367   : > { %2217 = vperm.xlu2 %3609, %v4721_v19  }
 0x368   : > { %v4885_v56 = vpop.permute.xlu1 %1620 }
 0x369   : > { %6242 = vst [vmem:[#allocation53_spill] sm:$0xff] %v4885_v56  ;;  %v4889_v35 = vpop.permute.xlu2 %1646 }
 0x36a   : > { %6243 = vst [vmem:[#allocation54_spill] sm:$0xff] %v4889_v35 }
 0x36e   : > { %3611 = vset.pattern.permute.xlu1 %v4566_v54  ;;  %2271 = vperm.xlu0 %3626, %v4750_v33  }
 0x36f   : > { %3613 = vset.pattern.permute.xlu2 %v4566_v54 }
 0x370   : > { %v4808_v59 = vpop.permute.xlu0 %2151  ;;  %v4895_v1 = vpop.permute.xlu1 %1633 }
 0x371   : > { %6231 = vst [vmem:[#allocation42_spill] sm:$0xff] %v4808_v59  ;;  %v4897_v7 = vpop.permute.xlu2 %1659 }
 0x372   : > { %6244 = vst [vmem:[#allocation55_spill] sm:$0xff] %v4895_v1 }
 0x373   : > { %6245 = vst [vmem:[#allocation56_spill] sm:$0xff] %v4897_v7 }
 0x376   : > { %3629 = vset.pattern.permute.xlu0 %v4716_v63  ;;  %1666 = vperm.xlu1 %3611, %v4735_v26  }
 0x377   : > { %1679 = vperm.xlu2 %3613, %v4775_v44  }
 0x37e   : > { %2301 = vperm.xlu0 %3629, %v4797_v51   ;;  %3614 = vset.pattern.permute.xlu1 %v4569_v46 }
 0x37f   : > { %1692 = vperm.xlu2 %3613, %v4800_v52  }
 0x380   : > { %v4818_v6 = vpop.permute.xlu0 %2181 }
 0x381   : > { %6232 = vst [vmem:[#allocation43_spill] sm:$0xff] %v4818_v6 }
 0x386   : > { %3633 = vset.pattern.permute.xlu0 %v4569_v46  ;;  %1685 = vperm.xlu1 %3614, %v4775_v44  }
 0x387   : > { %3616 = vset.pattern.permute.xlu2 %v4569_v46 }
 0x38e   : > { %1698 = vperm.xlu1 %3614, %v4800_v52   ;;  %1464 = vperm.xlu0 %3633, %v4813_v0  }
 0x38f   : > { %1711 = vperm.xlu2 %3616, %v4750_v33  }
 0x390   : > { %v4830_v19 = vpop.permute.xlu0 %2211 }
 0x391   : > { %6234 = vst [vmem:[#allocation45_spill] sm:$0xff] %v4830_v19 }
 0x396   : > { %3617 = vset.pattern.permute.xlu1 %v4566_v54  ;;  %3638 = vset.pattern.permute.xlu0 %v4566_v54 }
 0x397   : > { %1724 = vperm.xlu2 %3616, %v4823_v17  }
 0x39e   : > { %1718 = vperm.xlu1 %3617, %v4823_v17   ;;  %1510 = vperm.xlu0 %3638, %v4839_v23  }
 0x39f   : > { %3619 = vset.pattern.permute.xlu2 %v4566_v54 }
 0x3a0   : > { %v1673_v24 = vpop.permute.xlu0 %1672 }
 0x3a1   : > { %v4847_v4 = vmul.f32 %v6157_v36, %v1673_v24  ;;  %v4904_v24 = vpop.permute.xlu1 %1653  ;;  %v1135_v36 = vsub.f32 0.0, %v1131_v32 }
 0x3a2   : > { %6246 = vst [vmem:[#allocation57_spill] sm:$0xff] %v4904_v24 }
 0x3a3   : > { %v1139_v15 = vmul.f32 1.442695, %v1135_v36 }
 0x3a5   : > { %3717 = vpow2.f32 %v1139_v15 }
 0x3a6   : > { %1731 = vperm.xlu1 %3617, %v4763_v40   ;;  %3641 = vset.pattern.permute.xlu0 %v4569_v46 }
 0x3a7   : > { %1744 = vperm.xlu2 %3619, %v4797_v51  }
 0x3a9   : > { %v4911_v30 = vpop.permute.xlu1 %2133 }
 0x3aa   : > { %6248 = vst [vmem:[#allocation59_spill] sm:$0xff] %v4911_v30 }
 0x3ab   : > { %v3718_v11 = vpop.eup %3717 }
 0x3ac   : > { %v1147_v36 = vadd.f32 1.0, %v3718_v11 }
 0x3ae   : > { %3620 = vset.pattern.permute.xlu1 %v4569_v46  ;;  %1542 = vperm.xlu0 %3641, %v4860_v12   ;;  %3719 = vlog2.f32 %v1147_v36  ;;  %v1127_v36 = vmax.f32 %v1123_v9, 0.0 }
 0x3af   : > { %1757 = vperm.xlu2 %3619, %v4865_v43  }
 0x3b0   : > { %v1706_v49 = vpop.permute.xlu0 %1705 }
 0x3b1   : > { %v4873_v50 = vmul.f32 %v4870_v48, %v1706_v49  ;;  %v4906_v49 = vpop.permute.xlu2 %2139  ;;  %v4923_v32 = vpop.permute.xlu1 %2145 }
 0x3b2   : > { %6247 = vst [vmem:[#allocation58_spill] sm:$0xff] %v4906_v49 }
 0x3b3   : > { %6251 = vst [vmem:[#allocation62_spill] sm:$0xff] %v4923_v32 }
 0x3b4   : > { %v3720_v11 = vpop.eup %3719 }
 0x3b5   : > { %v1152_v39 = vmul.f32 0.6931472, %v3720_v11 }
 0x3b6   : > { %1750 = vperm.xlu1 %3620, %v4797_v51   ;;  %3646 = vset.pattern.permute.xlu0 %v4716_v63 }
 0x3b7   : > { %3621 = vset.pattern.permute.xlu2 %v4716_v63  ;;  %v4952_v47 = vadd.f32 %v1152_v39, %v1127_v36 }
 0x3b9   : > { %v4934_v55 = vpop.permute.xlu1 %2163  ;;  %v4959_v6 = vmul.f32 %v4952_v47, %v4687_v58 }
 0x3ba   : > { %6254 = vst [vmem:[#allocation65_spill] sm:$0xff] %v4934_v55 }
 0x3bb   : > { %6260 = vst [vmem:[#allocation71_spill] sm:$0xff] %v4959_v6  ;;  %v6168_v39 = vperm.slane %v4959_v6, 0 }
 0x3be   : > { %1763 = vperm.xlu1 %3620, %v4865_v43   ;;  %2061 = vperm.xlu0 %3646, %v4883_v45  }
 0x3bf   : > { %2229 = vperm.xlu2 %3621, %v4735_v26  }
 0x3c1   : > { %v4946_v24 = vpop.permute.xlu1 %2175 }
 0x3c2   : > { %6257 = vst [vmem:[#allocation68_spill] sm:$0xff] %v4946_v24 }
 0x3c6   : > { %3622 = vset.pattern.permute.xlu1 %v4712_v10  ;;  %3649 = vset.pattern.permute.xlu0 %v4712_v10 }
 0x3c7   : > { %3624 = vset.pattern.permute.xlu2 %v4712_v10 }
 0x3c9   : > { %v4961_v11 = vpop.permute.xlu1 %2193 }
 0x3ca   : > { %6261 = vst [vmem:[#allocation72_spill] sm:$0xff] %v4961_v11 }
 0x3ce   : > { %2235 = vperm.xlu1 %3622, %v4735_v26   ;;  %2091 = vperm.xlu0 %3649, %v4839_v23   ;;  %v4913_v26 = vpop.permute.xlu2 %2157 }
 0x3cf   : > { %2247 = vperm.xlu2 %3624, %v4775_v44   ;;  %6249 = vst [vmem:[#allocation60_spill] sm:$0xff] %v4913_v26  ;;  %v4921_v44 = vpop.permute.xlu0 %1737 }
 0x3d0   : > { %6250 = vst [vmem:[#allocation61_spill] sm:$0xff] %v4921_v44 }
 0x3d1   : > { %v4978_v11 = vpop.permute.xlu1 %2205 }
 0x3d2   : > { %6264 = vst [vmem:[#allocation75_spill] sm:$0xff] %v4978_v11 }
 0x3d6   : > { %3625 = vset.pattern.permute.xlu1 %v4716_v63  ;;  %3652 = vset.pattern.permute.xlu0 %v4716_v63  ;;  %v4925_v16 = vpop.permute.xlu2 %2169 }
 0x3d7   : > { %2259 = vperm.xlu2 %3624, %v4800_v52   ;;  %6252 = vst [vmem:[#allocation63_spill] sm:$0xff] %v4925_v16  ;;  %v4930_v15 = vpop.permute.xlu0 %2241 }
 0x3d8   : > { %6253 = vst [vmem:[#allocation64_spill] sm:$0xff] %v4930_v15 }
 0x3de   : > { %2253 = vperm.xlu1 %3625, %v4800_v52   ;;  %2121 = vperm.xlu0 %3652, %v4916_v21   ;;  %v4932_v52 = vpop.f32.mrf.mxu3  ;;  %v4936_v13 = vpop.permute.xlu2 %2187 }
 0x3df   : > { %3627 = vset.pattern.permute.xlu2 %v4716_v63  ;;  %6255 = vst [vmem:[#allocation66_spill] sm:$0xff] %v4936_v13  ;;  %v4939_v19 = vperm.slane %v4932_v52, 0  ;;  %v4964_v9 = vperm.slane %v4932_v52, 2  ;;  %v5050_v59 = vperm.slane %v4932_v52, 1  ;;  %v5067_v55 = vadd.f32 %v4697_v61, %v4932_v52 }
 0x3e1   : > { %v1134_v49 = vand.u32 2147483647, %v5067_v55 }
 0x3e3   : > { %v1138_v14 = vsub.f32 0.0, %v1134_v49  ;;  %v1185_v49 = vrot.slane %v4827_v18, 3 }
 0x3e5   : > { %v1145_v61 = vmul.f32 1.442695, %v1138_v14 }
 0x3e6   : > { %2265 = vperm.xlu1 %3625, %v4750_v33   ;;  %3654 = vset.pattern.permute.xlu0 %v4566_v54  ;;  %v4944_v33 = vpop.permute.xlu0 %2271  ;;  %v4948_v7 = vpop.permute.xlu2 %2199 }
 0x3e7   : > { %2277 = vperm.xlu2 %3627, %v4823_v17   ;;  %6256 = vst [vmem:[#allocation67_spill] sm:$0xff] %v4944_v33  ;;  %3721 = vpow2.f32 %v1145_v61  ;;  %v5093_v33 = vperm.slane %v1185_v49, 0  ;;  %v1186_v61 = vrot.slane %v4827_v18, 4 }
 0x3e8   : > { %6258 = vst [vmem:[#allocation69_spill] sm:$0xff] %v4948_v7 }
 0x3ee   : > { %3628 = vset.pattern.permute.xlu1 %v4712_v10  ;;  %1770 = vperm.xlu0 %3654, %v4939_v19   ;;  %v4966_v7 = vpop.permute.xlu2 %2217 }
 0x3ef   : > { %2289 = vperm.xlu2 %3627, %v4763_v40   ;;  %6262 = vst [vmem:[#allocation73_spill] sm:$0xff] %v4966_v7  ;;  %v4987_v7 = vpop.permute.xlu1 %2223 }
 0x3f0   : > { %v4955_v35 = vpop.permute.xlu0 %2301  ;;  %6265 = vst [vmem:[#allocation76_spill] sm:$0xff] %v4987_v7 }
 0x3f1   : > { %6259 = vst [vmem:[#allocation70_spill] sm:$0xff] %v4955_v35  ;;  %v5060_v35 = vperm.slane %v4810_v62, 5  ;;  %v1183_v62 = vrot.slane %v4827_v18, 1 }
 0x3f3   : > { %v5078_v28 = vperm.slane %v1183_v62, 0 }
 0x3f6   : > { %2283 = vperm.xlu1 %3628, %v4823_v17   ;;  %3657 = vset.pattern.permute.xlu0 %v4569_v46  ;;  %v4976_v58 = vpop.permute.xlu2 %1679 }
 0x3f7   : > { %3630 = vset.pattern.permute.xlu2 %v4712_v10  ;;  %v4999_v25 = vpop.permute.xlu1 %1666 }
 0x3fe   : > { %2295 = vperm.xlu1 %3628, %v4763_v40   ;;  %1802 = vperm.xlu0 %3657, %v4964_v9   ;;  %v1880_v40 = vrot.slane %v4959_v6, 4 }
 0x3ff   : > { %2307 = vperm.xlu2 %3630, %v4797_v51   ;;  %v4985_v51 = vperm.slane %v4932_v52, 5 }
 0x400   : > { %v1465_v17 = vpop.permute.xlu0 %1464 }
 0x401   : > { %v4974_v36 = vmul.f32 %v6168_v39, %v1465_v17  ;;  %v4991_v17 = vpop.permute.xlu2 %1692  ;;  %v4994_v39 = vperm.slane %v1880_v40, 0  ;;  %v5011_v40 = vperm.slane %v4932_v52, 7 }
 0x403   : > { %6263 = vst [vmem:[#allocation74_spill] sm:$0xff] %v4974_v36 }
 0x406   : > { %3631 = vset.pattern.permute.xlu1 %v4716_v63  ;;  %3660 = vset.pattern.permute.xlu0 %v4566_v54 }
 0x407   : > { %2319 = vperm.xlu2 %3630, %v4865_v43  }
 0x409   : > { %v5003_v7 = vpop.permute.xlu2 %1711 }
 0x40e   : > { %2313 = vperm.xlu1 %3631, %v4865_v43   ;;  %1835 = vperm.xlu0 %3660, %v4985_v51   ;;  %v1882_v43 = vrot.slane %v4959_v6, 6 }
 0x40f   : > { %3632 = vset.pattern.permute.xlu2 %v4566_v54 }
 0x410   : > { %v1511_v11 = vpop.permute.xlu0 %1510  ;;  %v5018_v1 = vperm.slane %v1882_v43, 0 }
 0x411   : > { %v4997_v13 = vmul.f32 %v4994_v39, %v1511_v11  ;;  %v5013_v11 = vpop.permute.xlu1 %1685  ;;  %v5020_v16 = vpop.permute.xlu2 %1724 }
 0x413   : > { %6266 = vst [vmem:[#allocation77_spill] sm:$0xff] %v4997_v13  ;;  %v1295_v13 = vmul.f32 %v5078_v28, %v5087_v8 }
 0x415   : > { %v1393_v62 = vmul.f32 1.442695, %v1295_v13  ;;  %v1300_v13 = vmul.f32 %v5093_v33, %v5103_v31 }
 0x416   : > { %3634 = vset.pattern.permute.xlu1 %v4566_v54  ;;  %3663 = vset.pattern.permute.xlu0 %v4569_v46 }
 0x417   : > { %1458 = vperm.xlu2 %3632, %v4813_v0   ;;  %3723 = vpow2.f32 %v1393_v62  ;;  %v1188_v62 = vrot.slane %v4827_v18, 6 }
 0x419   : > { %v5028_v2 = vpop.permute.xlu1 %1698  ;;  %v5030_v26 = vpop.permute.xlu2 %1744 }
 0x41a   : > { %6268 = vst [vmem:[#allocation79_spill] sm:$0xff] %v5030_v26 }
 0x41e   : > { %1471 = vperm.xlu1 %3634, %v5008_v42   ;;  %1867 = vperm.xlu0 %3663, %v5011_v40  }
 0x41f   : > { %3635 = vset.pattern.permute.xlu2 %v4569_v46 }
 0x420   : > { %v1543_v24 = vpop.permute.xlu0 %1542 }
 0x421   : > { %v5023_v56 = vmul.f32 %v5018_v1, %v1543_v24  ;;  %v5035_v43 = vpop.permute.xlu1 %1718  ;;  %v5037_v24 = vpop.permute.xlu2 %1757 }
 0x423   : > { %6267 = vst [vmem:[#allocation78_spill] sm:$0xff] %v5023_v56 }
 0x426   : > { %3637 = vset.pattern.permute.xlu1 %v4569_v46  ;;  %3665 = vset.pattern.permute.xlu0 %v4712_v10 }
 0x427   : > { %1477 = vperm.xlu2 %3635, %v5008_v42  }
 0x429   : > { %v5045_v22 = vpop.permute.xlu1 %1731  ;;  %v5047_v38 = vpop.permute.xlu2 %2229 }
 0x42a   : > { %6269 = vst [vmem:[#allocation80_spill] sm:$0xff] %v5047_v38  ;;  %v5111_v38 = vperm.slane %v1186_v61, 0  ;;  %v5123_v61 = vperm.slane %v1188_v62, 0  ;;  %v1130_v62 = vmax.f32 %v5067_v55, 0.0 }
 0x42e   : > { %1490 = vperm.xlu1 %3637, %v4883_v45   ;;  %2331 = vperm.xlu0 %3665, %v4939_v19  }
 0x42f   : > { %3636 = vset.pattern.permute.xlu2 %v4566_v54 }
 0x431   : > { %v5055_v30 = vpop.permute.xlu1 %1750  ;;  %v5057_v56 = vpop.permute.xlu2 %2247 }
 0x432   : > { %6270 = vst [vmem:[#allocation81_spill] sm:$0xff] %v5057_v56 }
 0x436   : > { %1503 = vperm.xlu1 %3637, %v5040_v41   ;;  %3666 = vset.pattern.permute.xlu0 %v4716_v63 }
 0x437   : > { %1484 = vperm.xlu2 %3636, %v4883_v45  }
 0x439   : > { %v5069_v32 = vpop.permute.xlu1 %1763  ;;  %v5072_v37 = vpop.permute.xlu2 %2259 }
 0x43a   : > { %6271 = vst [vmem:[#allocation82_spill] sm:$0xff] %v5072_v37  ;;  %v3722_v37 = vpop.eup %3721 }
 0x43b   : > { %v1150_v49 = vadd.f32 1.0, %v3722_v37  ;;  %v3724_v53 = vpop.eup %3723  ;;  %v1301_v37 = vmul.f32 %v5111_v38, %v5087_v8 }
 0x43d   : > { %3725 = vlog2.f32 %v1150_v49 }
 0x43e   : > { %3640 = vset.pattern.permute.xlu1 %v4566_v54  ;;  %2337 = vperm.xlu0 %3666, %v5050_v59  }
 0x43f   : > { %1497 = vperm.xlu2 %3636, %v5040_v41  }
 0x441   : > { %v5080_v34 = vpop.permute.xlu1 %2235  ;;  %v5082_v20 = vpop.permute.xlu2 %2277 }
 0x442   : > { %6272 = vst [vmem:[#allocation83_spill] sm:$0xff] %v5080_v34 }
 0x443   : > { %6273 = vst [vmem:[#allocation84_spill] sm:$0xff] %v5082_v20  ;;  %v5098_v20 = vperm.slane %v4932_v52, 4  ;;  %v3726_v49 = vpop.eup %3725 }
 0x446   : > { %1523 = vperm.xlu1 %3640, %v5060_v35   ;;  %3668 = vset.pattern.permute.xlu0 %v4712_v10 }
 0x447   : > { %3639 = vset.pattern.permute.xlu2 %v4569_v46 }
 0x449   : > { %v5105_v15 = vpop.permute.xlu2 %2289 }
 0x44a   : > { %6275 = vst [vmem:[#allocation86_spill] sm:$0xff] %v5105_v15 }
 0x44e   : > { %1536 = vperm.xlu1 %3640, %v4860_v12   ;;  %2355 = vperm.xlu0 %3668, %v4964_v9  }
 0x44f   : > { %1516 = vperm.xlu2 %3639, %v4839_v23  }
 0x450   : > { %v5095_v14 = vpop.permute.xlu1 %2253 }
 0x451   : > { %6274 = vst [vmem:[#allocation85_spill] sm:$0xff] %v5095_v14  ;;  %v1403_v14 = vmul.f32 1.442695, %v1300_v13  ;;  %v1405_v13 = vmul.f32 1.442695, %v1301_v37  ;;  %v5133_v37 = vpop.permute.xlu0 %2061 }
 0x452   : > { %6279 = vst [vmem:[#allocation90_spill] sm:$0xff] %v5133_v37 }
 0x453   : > { %3727 = vpow2.f32 %v1403_v14  ;;  %v1306_v14 = vmul.f32 %v5123_v61, %v5103_v31 }
 0x454   : > { %3729 = vpow2.f32 %v1405_v13 }
 0x455   : > { %v1415_v57 = vmul.f32 1.442695, %v1306_v14 }
 0x456   : > { %3643 = vset.pattern.permute.xlu1 %v4569_v46  ;;  %3671 = vset.pattern.permute.xlu0 %v4716_v63 }
 0x457   : > { %1529 = vperm.xlu2 %3639, %v5060_v35   ;;  %3731 = vpow2.f32 %v1415_v57 }
 0x458   : > { %v5113_v56 = vpop.permute.xlu1 %2265 }
 0x459   : > { %6276 = vst [vmem:[#allocation87_spill] sm:$0xff] %v5113_v56  ;;  %v5117_v15 = vpop.permute.xlu2 %2307  ;;  %v3728_v56 = vpop.eup %3727 }
 0x45a   : > { %6277 = vst [vmem:[#allocation88_spill] sm:$0xff] %v5117_v15  ;;  %v1189_v15 = vrot.slane %v4827_v18, 7 }
 0x45c   : > { %v5140_v27 = vperm.slane %v1189_v15, 0 }
 0x45e   : > { %1555 = vperm.xlu1 %3643, %v4916_v21   ;;  %2373 = vperm.xlu0 %3671, %v5098_v20   ;;  %v1307_v13 = vmul.f32 %v5140_v27, %v5087_v8 }
 0x45f   : > { %3642 = vset.pattern.permute.xlu2 %v4566_v54 }
 0x460   : > { %v1417_v15 = vmul.f32 1.442695, %v1307_v13 }
 0x461   : > { %v5136_v36 = vpop.permute.xlu2 %2319 }
 0x462   : > { %6280 = vst [vmem:[#allocation91_spill] sm:$0xff] %v5136_v36  ;;  %v1877_v36 = vrot.slane %v4959_v6, 1  ;;  %3733 = vpow2.f32 %v1417_v15 }
 0x464   : > { %v1906_v13 = vperm.slane %v1877_v36, 0 }
 0x466   : > { %3645 = vset.pattern.permute.xlu1 %v4712_v10  ;;  %2453 = vrot.lane.b32.xlu0 %v3724_v53, %s4173_s3  ;;  %v1158_v53 = vmul.f32 0.6931472, %v3726_v49  ;;  %v5148_v49 = vpop.permute.xlu0 %2091 }
 0x467   : > { %1549 = vperm.xlu2 %3642, %v4916_v21   ;;  %6281 = vst [vmem:[#allocation92_spill] sm:$0xff] %v5148_v49 }
 0x468   : > { %v5125_v34 = vpop.permute.xlu1 %2283 }
 0x469   : > { %6278 = vst [vmem:[#allocation89_spill] sm:$0xff] %v5125_v34  ;;  %v5138_v34 = vadd.f32 %v1158_v53, %v1130_v62 }
 0x46b   : > { %v1190_v55 = vrot.slane %v5138_v34, 1  ;;  %v1193_v36 = vrot.slane %v5138_v34, 4 }
 0x46d   : > { %v5154_v62 = vperm.slane %v1190_v55, 0 }
 0x46e   : > { %2043 = vperm.xlu1 %3645, %v4813_v0   ;;  %2463 = vrot.lane.b32.xlu0 %v3728_v56, %s4173_s3  ;;  %v3730_v56 = vpop.eup %3729 }
 0x46f   : > { %3644 = vset.pattern.permute.xlu2 %v4716_v63  ;;  %v1312_v57 = vmul.f32 %v5154_v62, %v5103_v31 }
 0x470   : > { %v5150_v53 = vpop.permute.xlu1 %2295 }
 0x471   : > { %6282 = vst [vmem:[#allocation93_spill] sm:$0xff] %v5150_v53  ;;  %v5152_v14 = vpop.permute.xlu2 %1458  ;;  %v2122_v53 = vpop.permute.xlu0 %2121  ;;  %v1427_v26 = vmul.f32 1.442695, %v1312_v57  ;;  %v1194_v57 = vrot.slane %v5138_v34, 5 }
 0x472   : > { %6283 = vst [vmem:[#allocation94_spill] sm:$0xff] %v5152_v14 }
 0x473   : > { %3735 = vpow2.f32 %v1427_v26  ;;  %v5189_v5 = vperm.slane %v1194_v57, 0 }
 0x476   : > { %2055 = vperm.xlu1 %3645, %v5008_v42   ;;  %2465 = vrot.lane.b32.xlu0 %v3730_v56, %s4173_s3  ;;  %v3732_v56 = vpop.eup %3731 }
 0x477   : > { %2037 = vperm.xlu2 %3644, %v4813_v0   ;;  %v1191_v0 = vrot.slane %v5138_v34, 2 }
 0x479   : > { %v5168_v44 = vperm.slane %v1191_v0, 0 }
 0x47e   : > { %3648 = vset.pattern.permute.xlu1 %v4716_v63  ;;  %2475 = vrot.lane.b32.xlu0 %v3732_v56, %s4173_s3  ;;  %v3734_v56 = vpop.eup %3733 }
 0x47f   : > { %2049 = vperm.xlu2 %3644, %v5008_v42   ;;  %v1313_v42 = vmul.f32 %v5168_v44, %v5087_v8  ;;  %v3736_v15 = vpop.eup %3735 }
 0x480   : > { %v2314_v49 = vpop.permute.xlu1 %2313 }
 0x481   : > { %v5164_v55 = vsel %vm1077_vm9, %v2122_v53, %v2314_v49  ;;  %v1478_v37 = vpop.permute.xlu2 %1477  ;;  %v1429_v49 = vmul.f32 1.442695, %v1313_v42  ;;  %v5176_v53 = vperm.slane %v1193_v36, 0 }
 0x482   : > { %6284 = vst [vmem:[#allocation95_spill] sm:$0xff] %v5164_v55  ;;  %v5166_v14 = vmul.f32 %v1906_v13, %v1478_v37  ;;  %v1878_v37 = vrot.slane %v4959_v6, 2 }
 0x483   : > { %3737 = vpow2.f32 %v1429_v49  ;;  %v1318_v26 = vmul.f32 %v5176_v53, %v5103_v31 }
 0x484   : > { %6285 = vst [vmem:[#allocation96_spill] sm:$0xff] %v5166_v14 }
 0x485   : > { %v1439_v14 = vmul.f32 1.442695, %v1318_v26 }
 0x486   : > { %2073 = vperm.xlu1 %3648, %v5040_v41   ;;  %2477 = vrot.lane.b32.xlu0 %v3734_v56, %s4173_s3  ;;  %v1907_v56 = vperm.slane %v1878_v37, 0 }
 0x487   : > { %3647 = vset.pattern.permute.xlu2 %v4712_v10  ;;  %3739 = vpow2.f32 %v1439_v14 }
 0x48e   : > { %2085 = vperm.xlu1 %3648, %v4839_v23   ;;  %2487 = vrot.lane.b32.xlu0 %v3736_v15, %s4173_s3  ;;  %v1879_v23 = vrot.slane %v4959_v6, 3  ;;  %v3738_v15 = vpop.eup %3737 }
 0x48f   : > { %2067 = vperm.xlu2 %3647, %v4883_v45   ;;  %v1319_v45 = vmul.f32 %v5189_v5, %v5087_v8 }
 0x490   : > { %v1472_v0 = vpop.permute.xlu1 %1471  ;;  %v1908_v49 = vperm.slane %v1879_v23, 0  ;;  %v1891_v23 = vrot.slane %v4836_v3, 1 }
 0x491   : > { %v5185_v42 = vmul.f32 %v1906_v13, %v1472_v0  ;;  %v1485_v36 = vpop.permute.xlu2 %1484  ;;  %v5197_v13 = vpop.permute.xlu0 %1770  ;;  %v1441_v57 = vmul.f32 1.442695, %v1319_v45 }
 0x492   : > { %v5187_v55 = vmul.f32 %v1907_v56, %v1485_v36  ;;  %v3740_v0 = vpop.eup %3739 }
 0x493   : > { %6286 = vst [vmem:[#allocation97_spill] sm:$0xff] %v5185_v42  ;;  %3741 = vpow2.f32 %v1441_v57 }
 0x494   : > { %6287 = vst [vmem:[#allocation98_spill] sm:$0xff] %v5187_v55  ;;  %v5331_v55 = vperm.slane %v4932_v52, 6 }
 0x496   : > { %3651 = vset.pattern.permute.xlu1 %v4712_v10  ;;  %2489 = vrot.lane.b32.xlu0 %v3738_v15, %s4173_s3 }
 0x497   : > { %2079 = vperm.xlu2 %3647, %v5040_v41  }
 0x499   : > { %v1498_v37 = vpop.permute.xlu2 %1497  ;;  %v5204_v41 = vpop.permute.xlu0 %1802 }
 0x49a   : > { %v5199_v26 = vmul.f32 %v1908_v49, %v1498_v37  ;;  %v3742_v15 = vpop.eup %3741 }
 0x49c   : > { %6288 = vst [vmem:[#allocation99_spill] sm:$0xff] %v5199_v26  ;;  %v5216_v26 = vperm.slane %v1891_v23, 0 }
 0x49e   : > { %2103 = vperm.xlu1 %3651, %v5060_v35   ;;  %2499 = vrot.lane.b32.xlu0 %v3740_v0, %s4173_s3 }
 0x49f   : > { %3650 = vset.pattern.permute.xlu2 %v4716_v63 }
 0x4a0   : > { %v1491_v14 = vpop.permute.xlu1 %1490 }
 0x4a1   : > { %v5206_v36 = vmul.f32 %v1907_v56, %v1491_v14  ;;  %v5212_v45 = vpop.permute.xlu0 %1835  ;;  %v2004_v14 = vmul.f32 %v5216_v26, %v5013_v11 }
 0x4a3   : > { %6289 = vst [vmem:[#allocation100_spill] sm:$0xff] %v5206_v36  ;;  %v1881_v36 = vrot.slane %v4959_v6, 5 }
 0x4a6   : > { %2115 = vperm.xlu1 %3651, %v4860_v12   ;;  %2501 = vrot.lane.b32.xlu0 %v3742_v15, %s4173_s3  ;;  %v1892_v15 = vrot.slane %v4836_v3, 2 }
 0x4a7   : > { %2097 = vperm.xlu2 %3650, %v5060_v35  }
 0x4a8   : > { %v1504_v37 = vpop.permute.xlu1 %1503 }
 0x4a9   : > { %v5214_v0 = vmul.f32 %v1908_v49, %v1504_v37  ;;  %v1517_v57 = vpop.permute.xlu2 %1516  ;;  %v5228_v35 = vpop.permute.xlu0 %1867  ;;  %v1910_v49 = vperm.slane %v1881_v36, 0  ;;  %v5230_v37 = vperm.slane %v1892_v15, 0 }
 0x4aa   : > { %v5219_v56 = vmul.f32 %v4994_v39, %v1517_v57  ;;  %v1894_v57 = vrot.slane %v4836_v3, 4 }
 0x4ab   : > { %6290 = vst [vmem:[#allocation101_spill] sm:$0xff] %v5214_v0  ;;  %v2005_v11 = vmul.f32 %v5230_v37, %v4991_v17  ;;  %v1883_v17 = vrot.slane %v4959_v6, 7 }
 0x4ac   : > { %6291 = vst [vmem:[#allocation102_spill] sm:$0xff] %v5219_v56  ;;  %v5244_v15 = vperm.slane %v1894_v57, 0  ;;  %v1169_v56 = vrot.slane %v4952_v47, 1 }
 0x4ae   : > { %3656 = vset.pattern.permute.xlu1 %v4566_v54  ;;  %2615 = vrot.lane.b32.xlu0 %v2004_v14, %s4173_s3 }
 0x4af   : > { %2109 = vperm.xlu2 %3650, %v4860_v12  }
 0x4b1   : > { %v1530_v23 = vpop.permute.xlu2 %1529  ;;  %v5240_v12 = vpop.permute.xlu0 %2331 }
 0x4b2   : > { %v5232_v39 = vmul.f32 %v1910_v49, %v1530_v23  ;;  %6293 = vst [vmem:[#allocation104_spill] sm:$0xff] %v5240_v12  ;;  %v2010_v23 = vmul.f32 %v5244_v15, %v5020_v16 }
 0x4b4   : > { %6292 = vst [vmem:[#allocation103_spill] sm:$0xff] %v5232_v39  ;;  %v1895_v39 = vrot.slane %v4836_v3, 5 }
 0x4b6   : > { %1783 = vperm.xlu1 %3656, %v5050_v59   ;;  %2617 = vrot.lane.b32.xlu0 %v2005_v11, %s4173_s3 }
 0x4b7   : > { %3653 = vset.pattern.permute.xlu2 %v4712_v10 }
 0x4b8   : > { %v1524_v14 = vpop.permute.xlu1 %1523 }
 0x4b9   : > { %v5242_v36 = vmul.f32 %v1910_v49, %v1524_v14  ;;  %v5253_v11 = vpop.permute.xlu0 %2337  ;;  %v1912_v49 = vperm.slane %v1883_v17, 0  ;;  %v1171_v17 = vrot.slane %v4952_v47, 3 }
 0x4ba   : > { %6295 = vst [vmem:[#allocation106_spill] sm:$0xff] %v5253_v11  ;;  %v1172_v11 = vrot.slane %v4952_v47, 4 }
 0x4bb   : > { %6294 = vst [vmem:[#allocation105_spill] sm:$0xff] %v5242_v36  ;;  %v5258_v36 = vperm.slane %v1895_v39, 0 }
 0x4bd   : > { %v2011_v0 = vmul.f32 %v5258_v36, %v5045_v22 }
 0x4be   : > { %1796 = vperm.xlu1 %3656, %v4964_v9   ;;  %2627 = vrot.lane.b32.xlu0 %v2010_v23, %s4173_s3  ;;  %v1897_v23 = vrot.slane %v4836_v3, 7 }
 0x4bf   : > { %2127 = vperm.xlu2 %3653, %v4916_v21   ;;  %v5268_v21 = vperm.slane %v1169_v56, 0 }
 0x4c0   : > { %v1537_v12 = vpop.permute.xlu1 %1536  ;;  %v5273_v39 = vperm.slane %v1897_v23, 0  ;;  %v5289_v23 = vperm.slane %v1171_v17, 0 }
 0x4c1   : > { %v5256_v57 = vmul.f32 %v5018_v1, %v1537_v12  ;;  %v1550_v14 = vpop.permute.xlu2 %1549  ;;  %v5271_v1 = vpop.permute.xlu0 %2355  ;;  %v1263_v12 = vmul.f32 %v5268_v21, %v5087_v8 }
 0x4c2   : > { %v5260_v16 = vmul.f32 %v1912_v49, %v1550_v14  ;;  %6298 = vst [vmem:[#allocation109_spill] sm:$0xff] %v5271_v1  ;;  %v2016_v22 = vmul.f32 %v5273_v39, %v5069_v32  ;;  %v5281_v14 = vperm.slane %v4932_v52, 3 }
 0x4c3   : > { %6296 = vst [vmem:[#allocation107_spill] sm:$0xff] %v5256_v57  ;;  %v1329_v56 = vmul.f32 1.442695, %v1263_v12 }
 0x4c4   : > { %6297 = vst [vmem:[#allocation108_spill] sm:$0xff] %v5260_v16 }
 0x4c5   : > { %3743 = vpow2.f32 %v1329_v56 }
 0x4c6   : > { %3659 = vset.pattern.permute.xlu1 %v4569_v46  ;;  %2629 = vrot.lane.b32.xlu0 %v2011_v0, %s4173_s3  ;;  %v5285_v0 = vmul.f32 %v5138_v34, %v4691_v60  ;;  %v1268_v60 = vmul.f32 %v5289_v23, %v5103_v31 }
 0x4c7   : > { %3655 = vset.pattern.permute.xlu2 %v4569_v46 }
 0x4c8   : > { %v6182_v1 = vperm.slane %v5285_v0, 0  ;;  %v1899_v17 = vrot.slane %v5285_v0, 2 }
 0x4ca   : > { %v2017_v12 = vmul.f32 %v6182_v1, %v5197_v13  ;;  %v1174_v1 = vrot.slane %v4952_v47, 6 }
 0x4ce   : > { %1815 = vperm.xlu1 %3659, %v5281_v14   ;;  %2639 = vrot.lane.b32.xlu0 %v2016_v22, %s4173_s3  ;;  %v3744_v22 = vpop.eup %3743 }
 0x4cf   : > { %1776 = vperm.xlu2 %3655, %v4939_v19  }
 0x4d0   : > { %v1556_v16 = vpop.permute.xlu1 %1555  ;;  %v5292_v57 = vpop.permute.xlu0 %2373 }
 0x4d1   : > { %6299 = vst [vmem:[#allocation110_spill] sm:$0xff] %v5292_v57  ;;  %v5294_v32 = vmul.f32 %v1912_v49, %v1556_v16  ;;  %v1339_v49 = vmul.f32 1.442695, %v1268_v60  ;;  %v5306_v16 = vperm.slane %v1172_v11, 0  ;;  %v5343_v52 = vpop.permute.xlu2 %2037 }
 0x4d2   : > { %6304 = vst [vmem:[#allocation115_spill] sm:$0xff] %v5343_v52 }
 0x4d3   : > { %6300 = vst [vmem:[#allocation111_spill] sm:$0xff] %v5294_v32  ;;  %v5312_v32 = vperm.slane %v1899_v17, 0  ;;  %3745 = vpow2.f32 %v1339_v49  ;;  %v1269_v13 = vmul.f32 %v5306_v16, %v5087_v8 }
 0x4d5   : > { %v2022_v60 = vmul.f32 %v5312_v32, %v5204_v41  ;;  %v1341_v11 = vmul.f32 1.442695, %v1269_v13  ;;  %v1175_v41 = vrot.slane %v4952_v47, 7 }
 0x4d6   : > { %1828 = vperm.xlu1 %3659, %v5098_v20   ;;  %2641 = vrot.lane.b32.xlu0 %v2017_v12, %s4173_s3  ;;  %v5321_v12 = vperm.slane %v1174_v1, 0 }
 0x4d7   : > { %1789 = vperm.xlu2 %3655, %v5050_v59   ;;  %3747 = vpow2.f32 %v1341_v11  ;;  %v5334_v13 = vperm.slane %v1175_v41, 0 }
 0x4d8   : > { %v2454_v56 = vpop.permute.xlu0 %2453 }
 0x4d9   : > { %v5310_v57 = vsel %vm1077_vm9, %v3744_v22, %v2454_v56  ;;  %v3746_v17 = vpop.eup %3745  ;;  %v1274_v56 = vmul.f32 %v5321_v12, %v5103_v31  ;;  %v1275_v11 = vmul.f32 %v5334_v13, %v5087_v8 }
 0x4da   : > { %6301 = vst [vmem:[#allocation112_spill] sm:$0xff] %v5310_v57  ;;  %v5357_v57 = vpop.permute.xlu2 %2049 }
 0x4db   : > { %v1351_v1 = vmul.f32 1.442695, %v1274_v56  ;;  %v1353_v56 = vmul.f32 1.442695, %v1275_v11  ;;  %6307 = vst [vmem:[#allocation118_spill] sm:$0xff] %v5357_v57 }
 0x4dd   : > { %3749 = vpow2.f32 %v1351_v1 }
 0x4de   : > { %3662 = vset.pattern.permute.xlu1 %v4566_v54  ;;  %2651 = vrot.lane.b32.xlu0 %v2022_v60, %s4173_s3  ;;  %3751 = vpow2.f32 %v1353_v56 }
 0x4df   : > { %3658 = vset.pattern.permute.xlu2 %v4566_v54  ;;  %v3748_v54 = vpop.eup %3747 }
 0x4e0   : > { %v2464_v22 = vpop.permute.xlu0 %2463  ;;  %v5352_v1 = vpop.permute.xlu1 %2043 }
 0x4e1   : > { %v5325_v49 = vsel %vm1077_vm9, %v3746_v17, %v2464_v22  ;;  %v1176_v22 = vrot.slane %v4741_v29, 1  ;;  %6306 = vst [vmem:[#allocation117_spill] sm:$0xff] %v5352_v1 }
 0x4e2   : > { %6302 = vst [vmem:[#allocation113_spill] sm:$0xff] %v5325_v49 }
 0x4e3   : > { %v5346_v41 = vperm.slane %v1176_v22, 0  ;;  %v3750_v49 = vpop.eup %3749 }
 0x4e4   : > { %v3752_v52 = vpop.eup %3751 }
 0x4e6   : > { %1848 = vperm.xlu1 %3662, %v5331_v55  }
 0x4e7   : > { %1809 = vperm.xlu2 %3658, %v5281_v14  }
 0x4e8   : > { %v2466_v60 = vpop.permute.xlu0 %2465  ;;  %v5369_v6 = vpop.permute.xlu1 %2055 }
 0x4e9   : > { %v5338_v17 = vsel %vm1077_vm9, %v3748_v54, %v2466_v60  ;;  %v1280_v60 = vmul.f32 %v5346_v41, %v5103_v31  ;;  %6309 = vst [vmem:[#allocation120_spill] sm:$0xff] %v5369_v6  ;;  %v5371_v57 = vpop.permute.xlu2 %2067 }
 0x4ea   : > { %6303 = vst [vmem:[#allocation114_spill] sm:$0xff] %v5338_v17  ;;  %v1177_v17 = vrot.slane %v4741_v29, 2 }
 0x4eb   : > { %v1363_v11 = vmul.f32 1.442695, %v1280_v60  ;;  %6310 = vst [vmem:[#allocation121_spill] sm:$0xff] %v5371_v57 }
 0x4ec   : > { %v5360_v22 = vperm.slane %v1177_v17, 0 }
 0x4ed   : > { %3753 = vpow2.f32 %v1363_v11 }
 0x4ee   : > { %1861 = vperm.xlu1 %3662, %v5011_v40   ;;  %v1281_v56 = vmul.f32 %v5360_v22, %v5087_v8 }
 0x4ef   : > { %1822 = vperm.xlu2 %3658, %v5098_v20  }
 0x4f0   : > { %v2476_v42 = vpop.permute.xlu0 %2475  ;;  %v1365_v17 = vmul.f32 1.442695, %v1281_v56 }
 0x4f1   : > { %v5350_v54 = vsel %vm1077_vm9, %v3750_v49, %v2476_v42  ;;  %v5388_v56 = vpop.permute.xlu2 %2079 }
 0x4f2   : > { %6305 = vst [vmem:[#allocation116_spill] sm:$0xff] %v5350_v54  ;;  %v1179_v54 = vrot.slane %v4741_v29, 4  ;;  %3755 = vpow2.f32 %v1365_v17 }
 0x4f3   : > { %6314 = vst [vmem:[#allocation125_spill] sm:$0xff] %v5388_v56 }
 0x4f4   : > { %v5374_v60 = vperm.slane %v1179_v54, 0 }
 0x4f6   : > { %3664 = vset.pattern.permute.xlu1 %v4716_v63 }
 0x4f7   : > { %3661 = vset.pattern.permute.xlu2 %v4569_v46  ;;  %v3754_v46 = vpop.eup %3753 }
 0x4f8   : > { %v2478_v42 = vpop.permute.xlu0 %2477  ;;  %v5383_v6 = vpop.permute.xlu1 %2073 }
 0x4f9   : > { %v5364_v49 = vsel %vm1077_vm9, %v3752_v52, %v2478_v42  ;;  %v1286_v42 = vmul.f32 %v5374_v60, %v5103_v31  ;;  %6312 = vst [vmem:[#allocation123_spill] sm:$0xff] %v5383_v6  ;;  %v3756_v57 = vpop.eup %3755 }
 0x4fa   : > { %6308 = vst [vmem:[#allocation119_spill] sm:$0xff] %v5364_v49  ;;  %v1180_v49 = vrot.slane %v4741_v29, 5 }
 0x4fc   : > { %v5386_v54 = vperm.slane %v1180_v49, 0 }
 0x4fe   : > { %2325 = vperm.xlu1 %3664, %v4939_v19   ;;  %v1375_v19 = vmul.f32 1.442695, %v1286_v42  ;;  %6313 = vst [vmem:[#allocation124_spill] sm:$0xff] %v5386_v54 }
 0x4ff   : > { %1841 = vperm.xlu2 %3661, %v4985_v51  }
 0x500   : > { %v2488_v52 = vpop.permute.xlu0 %2487  ;;  %3757 = vpow2.f32 %v1375_v19 }
 0x501   : > { %v5378_v11 = vsel %vm1077_vm9, %v3754_v46, %v2488_v52  ;;  %v1287_v52 = vmul.f32 %v5386_v54, %v5087_v8  ;;  %v5399_v49 = vpop.permute.xlu2 %2097 }
 0x502   : > { %6311 = vst [vmem:[#allocation122_spill] sm:$0xff] %v5378_v11  ;;  %v5396_v11 = vpop.permute.xlu1 %2085 }
 0x503   : > { %6316 = vst [vmem:[#allocation127_spill] sm:$0xff] %v5396_v11 }
 0x504   : > { %6317 = vst [vmem:[#allocation128_spill] sm:$0xff] %v5399_v49  ;;  %v1213_v49 = vperm.slane %v4827_v18, 0 }
 0x506   : > { %2349 = vperm.xlu1 %3664, %v4964_v9   ;;  %v1377_v9 = vmul.f32 1.442695, %v1287_v52  ;;  %v3758_v42 = vpop.eup %3757 }
 0x507   : > { %1854 = vperm.xlu2 %3661, %v5331_v55  }
 0x508   : > { %v2490_v46 = vpop.permute.xlu0 %2489  ;;  %3759 = vpow2.f32 %v1377_v9  ;;  %v1184_v9 = vrot.slane %v4827_v18, 2 }
 0x509   : > { %v5392_v17 = vsel %vm1077_vm9, %v3756_v57, %v2490_v46 }
 0x50a   : > { %6315 = vst [vmem:[#allocation126_spill] sm:$0xff] %v5392_v17  ;;  %v5409_v17 = vpop.permute.xlu2 %2109 }
 0x50b   : > { %6320 = vst [vmem:[#allocation131_spill] sm:$0xff] %v5409_v17 }
 0x50e   : > { %3670 = vset.pattern.permute.xlu1 %v4712_v10  ;;  %v3760_v19 = vpop.eup %3759 }
 0x50f   : > { %3667 = vset.pattern.permute.xlu2 %v4712_v10 }
 0x510   : > { %v2500_v6 = vpop.permute.xlu0 %2499  ;;  %v5405_v57 = vpop.permute.xlu1 %2103 }
 0x511   : > { %v5403_v56 = vsel %vm1077_vm9, %v3758_v42, %v2500_v6  ;;  %6319 = vst [vmem:[#allocation130_spill] sm:$0xff] %v5405_v57  ;;  %v1294_v6 = vmul.f32 %v1213_v49, %v5103_v31  ;;  %v5424_v57 = vperm.slane %v1184_v9, 0 }
 0x512   : > { %6318 = vst [vmem:[#allocation129_spill] sm:$0xff] %v5403_v56  ;;  %v1898_v56 = vrot.slane %v5285_v0, 1 }
 0x513   : > { %v1391_v17 = vmul.f32 1.442695, %v1294_v6  ;;  %v1299_v6 = vmul.f32 %v5093_v33, %v5087_v8 }
 0x515   : > { %3761 = vpow2.f32 %v1391_v17 }
 0x516   : > { %2367 = vperm.xlu1 %3670, %v5281_v14  }
 0x517   : > { %2343 = vperm.xlu2 %3667, %v5050_v59  }
 0x518   : > { %v2502_v46 = vpop.permute.xlu0 %2501  ;;  %v5419_v42 = vpop.permute.xlu1 %2115 }
 0x519   : > { %v5412_v52 = vsel %vm1077_vm9, %v3760_v19, %v2502_v46  ;;  %6322 = vst [vmem:[#allocation133_spill] sm:$0xff] %v5419_v42  ;;  %v5421_v59 = vpop.permute.xlu2 %2127  ;;  %v1930_v19 = vperm.slane %v1898_v56, 0  ;;  %v1298_v46 = vmul.f32 %v5424_v57, %v5103_v31 }
 0x51a   : > { %6321 = vst [vmem:[#allocation132_spill] sm:$0xff] %v5412_v52 }
 0x51b   : > { %6323 = vst [vmem:[#allocation134_spill] sm:$0xff] %v5421_v59  ;;  %v1399_v59 = vmul.f32 1.442695, %v1298_v46  ;;  %v3762_v1 = vpop.eup %3761 }
 0x51d   : > { %3763 = vpow2.f32 %v1399_v59 }
 0x51e   : > { %3673 = vset.pattern.permute.xlu1 %v4716_v63 }
 0x51f   : > { %3669 = vset.pattern.permute.xlu2 %v4716_v63 }
 0x523   : > { %v3764_v46 = vpop.eup %3763 }
 0x526   : > { %2385 = vperm.xlu1 %3673, %v4985_v51  }
 0x527   : > { %2361 = vperm.xlu2 %3669, %v5281_v14   ;;  %v1187_v14 = vrot.slane %v4827_v18, 5  ;;  %v1900_v18 = vrot.slane %v5285_v0, 3 }
 0x528   : > { %v1784_v52 = vpop.permute.xlu1 %1783 }
 0x529   : > { %v5430_v11 = vmul.f32 %v1930_v19, %v1784_v52  ;;  %v5432_v42 = vpop.permute.xlu2 %1776  ;;  %v1401_v52 = vmul.f32 1.442695, %v1299_v6  ;;  %v5442_v9 = vperm.slane %v1187_v14, 0  ;;  %v1932_v6 = vperm.slane %v1900_v18, 0 }
 0x52b   : > { %6324 = vst [vmem:[#allocation135_spill] sm:$0xff] %v5430_v11  ;;  %3765 = vpow2.f32 %v1401_v52  ;;  %v1304_v33 = vmul.f32 %v5442_v9, %v5103_v31  ;;  %v1901_v11 = vrot.slane %v5285_v0, 4 }
 0x52d   : > { %v1411_v59 = vmul.f32 1.442695, %v1304_v33  ;;  %v6185_v33 = vperm.slane %v5138_v34, 0 }
 0x52e   : > { %2451 = vrot.lane.b32.xlu1 %v3762_v1, %s4173_s3 }
 0x52f   : > { %3672 = vset.pattern.permute.xlu2 %v4712_v10  ;;  %3675 = vset.pattern.permute.xlu1 %v4712_v10  ;;  %3767 = vpow2.f32 %v1411_v59  ;;  %v1293_v59 = vmul.f32 %v1213_v49, %v5087_v8  ;;  %v1296_v49 = vmul.f32 %v5078_v28, %v5103_v31 }
 0x530   : > { %v5448_v1 = vpop.permute.xlu1 %1796 }
 0x531   : > { %v1790_v56 = vpop.permute.xlu2 %1789  ;;  %v3766_v54 = vpop.eup %3765 }
 0x532   : > { %v5440_v17 = vmul.f32 %v1930_v19, %v1790_v56  ;;  %v1305_v19 = vmul.f32 %v5123_v61, %v5087_v8  ;;  %v1310_v61 = vmul.f32 %v6185_v33, %v5103_v31 }
 0x536   : > { %2459 = vrot.lane.b32.xlu1 %v3764_v46, %s4173_s3  ;;  %v1413_v46 = vmul.f32 1.442695, %v1305_v19 }
 0x537   : > { %2379 = vperm.xlu2 %3672, %v5098_v20  }
 0x538   : > { %3769 = vpow2.f32 %v1413_v46 }
 0x53e   : > { %2461 = vrot.lane.b32.xlu1 %v3766_v54, %s4173_s3  ;;  %v3768_v54 = vpop.eup %3767 }
 0x53f   : > { %2391 = vperm.xlu2 %3672, %v4985_v51   ;;  %v1933_v51 = vperm.slane %v1901_v11, 0  ;;  %v1192_v11 = vrot.slane %v5138_v34, 3 }
 0x540   : > { %v1816_v14 = vpop.permute.xlu1 %1815 }
 0x541   : > { %v5455_v20 = vmul.f32 %v1932_v6, %v1816_v14  ;;  %v1810_v56 = vpop.permute.xlu2 %1809 }
 0x542   : > { %v2023_v52 = vmul.f32 %v1932_v6, %v1810_v56  ;;  %v1423_v56 = vmul.f32 1.442695, %v1310_v61  ;;  %v1395_v61 = vmul.f32 1.442695, %v1296_v49 }
 0x543   : > { %6325 = vst [vmem:[#allocation136_spill] sm:$0xff] %v5455_v20  ;;  %v3770_v20 = vpop.eup %3769 }
 0x544   : > { %2653 = vrot.lane.b32.xlu0 %v2023_v52, %s4173_s3  ;;  %v1389_v52 = vmul.f32 1.442695, %v1293_v59  ;;  %3771 = vpow2.f32 %v1423_v56 }
 0x546   : > { %2471 = vrot.lane.b32.xlu1 %v3768_v54, %s4173_s3  ;;  %3773 = vpow2.f32 %v1389_v52  ;;  %v1903_v54 = vrot.slane %v5285_v0, 6  ;;  %v1297_v52 = vmul.f32 %v5424_v57, %v5087_v8  ;;  %v1317_v57 = vmul.f32 %v5176_v53, %v5087_v8 }
 0x547   : > { %3674 = vset.pattern.permute.xlu2 %v4716_v63  ;;  %v1311_v63 = vmul.f32 %v5154_v62, %v5087_v8 }
 0x548   : > { %v1829_v18 = vpop.permute.xlu1 %1828  ;;  %v1935_v62 = vperm.slane %v1903_v54, 0  ;;  %v1904_v54 = vrot.slane %v5285_v0, 7 }
 0x549   : > { %v5466_v19 = vmul.f32 %v1933_v51, %v1829_v18  ;;  %v1823_v6 = vpop.permute.xlu2 %1822  ;;  %v1425_v46 = vmul.f32 1.442695, %v1311_v63 }
 0x54a   : > { %v5468_v14 = vmul.f32 %v1933_v51, %v1823_v6  ;;  %v5478_v51 = vperm.slane %v1192_v11, 0  ;;  %v3772_v18 = vpop.eup %3771 }
 0x54b   : > { %3775 = vpow2.f32 %v1425_v46 }
 0x54c   : > { %v3774_v59 = vpop.eup %3773  ;;  %v1316_v28 = vmul.f32 %v5478_v51, %v5103_v31  ;;  %3777 = vpow2.f32 %v1395_v61 }
 0x54e   : > { %2473 = vrot.lane.b32.xlu1 %v3770_v20, %s4173_s3  ;;  %v1902_v20 = vrot.slane %v5285_v0, 5  ;;  %v1435_v46 = vmul.f32 1.442695, %v1316_v28  ;;  %v1302_v28 = vmul.f32 %v5111_v38, %v5103_v31 }
 0x54f   : > { %2397 = vperm.xlu2 %3674, %v5331_v55  }
 0x550   : > { %v5485_v6 = vperm.slane %v1902_v20, 0  ;;  %3779 = vpow2.f32 %v1435_v46  ;;  %v1407_v53 = vmul.f32 1.442695, %v1302_v28 }
 0x551   : > { %v3776_v61 = vpop.eup %3775 }
 0x552   : > { %v3778_v20 = vpop.eup %3777 }
 0x556   : > { %2483 = vrot.lane.b32.xlu1 %v3772_v18, %s4173_s3  ;;  %v1397_v18 = vmul.f32 1.442695, %v1297_v52  ;;  %v3780_v46 = vpop.eup %3779 }
 0x557   : > { %2449 = vrot.lane.b32.xlu2 %v3774_v59, %s4173_s3  ;;  %v1195_v59 = vrot.slane %v5138_v34, 6 }
 0x558   : > { %v1849_v56 = vpop.permute.xlu1 %1848  ;;  %3676 = vset.pattern.permute.xlu2 %v4712_v10  ;;  %3781 = vpow2.f32 %v1397_v18 }
 0x559   : > { %v5490_v63 = vmul.f32 %v1935_v62, %v1849_v56  ;;  %v1842_v11 = vpop.permute.xlu2 %1841  ;;  %v5502_v56 = vperm.slane %v1904_v54, 0  ;;  %v5508_v33 = vperm.slane %v1195_v59, 0 }
 0x55a   : > { %v2028_v49 = vmul.f32 %v5485_v6, %v1842_v11 }
 0x55b   : > { %v2032_v52 = vmul.f32 %v5502_v56, %v5228_v35  ;;  %v1322_v38 = vmul.f32 %v5508_v33, %v5103_v31  ;;  %v1196_v35 = vrot.slane %v5138_v34, 7 }
 0x55c   : > { %2663 = vrot.lane.b32.xlu0 %v2028_v49, %s4173_s3 }
 0x55d   : > { %v1447_v54 = vmul.f32 1.442695, %v1322_v38  ;;  %v5518_v18 = vperm.slane %v1196_v35, 0  ;;  %v6326_v38 = vperm.slane %v5138_v34, 0 }
 0x55e   : > { %2485 = vrot.lane.b32.xlu1 %v3776_v61, %s4173_s3  ;;  %v1437_v61 = vmul.f32 1.442695, %v1317_v57 }
 0x55f   : > { %2455 = vrot.lane.b32.xlu2 %v3778_v20, %s4173_s3  ;;  %v3782_v20 = vpop.eup %3781  ;;  %v1309_v35 = vmul.f32 %v6326_v38, %v5087_v8 }
 0x560   : > { %3783 = vpow2.f32 %v1437_v61 }
 0x561   : > { %v1855_v11 = vpop.permute.xlu2 %1854  ;;  %3785 = vpow2.f32 %v1407_v53 }
 0x562   : > { %v5506_v49 = vmul.f32 %v1935_v62, %v1855_v11  ;;  %v1303_v62 = vmul.f32 %v5442_v9, %v5087_v8  ;;  %3787 = vpow2.f32 %v1447_v54  ;;  %v1324_v11 = vmul.f32 %v5518_v18, %v5103_v31 }
 0x564   : > { %2671 = vrot.lane.b32.xlu0 %v2032_v52, %s4173_s3  ;;  %v1409_v57 = vmul.f32 1.442695, %v1303_v62  ;;  %v1308_v52 = vmul.f32 %v5140_v27, %v5103_v31  ;;  %v1451_v9 = vmul.f32 1.442695, %v1324_v11  ;;  %v1421_v27 = vmul.f32 1.442695, %v1309_v35 }
 0x566   : > { %2495 = vrot.lane.b32.xlu1 %v3780_v46, %s4173_s3  ;;  %v3784_v59 = vpop.eup %3783  ;;  %3789 = vpow2.f32 %v1409_v57  ;;  %v1419_v61 = vmul.f32 1.442695, %v1308_v52  ;;  %v1315_v52 = vmul.f32 %v5478_v51, %v5087_v8 }
 0x567   : > { %2457 = vrot.lane.b32.xlu2 %v3782_v20, %s4173_s3  ;;  %v3786_v28 = vpop.eup %3785  ;;  %v5528_v20 = vpop.permute.xlu1 %1861  ;;  %3791 = vpow2.f32 %v1451_v9  ;;  %v2003_v9 = vmul.f32 %v5216_v26, %v4976_v58  ;;  %v1170_v58 = vrot.slane %v4952_v47, 2  ;;  %v2008_v26 = vmul.f32 %v4870_v48, %v5003_v7 }
 0x568   : > { %v3788_v53 = vpop.eup %3787  ;;  %3793 = vpow2.f32 %v1419_v61  ;;  %v2009_v48 = vmul.f32 %v5244_v15, %v5035_v43  ;;  %v1267_v15 = vmul.f32 %v5289_v23, %v5087_v8 }
 0x569   : > { %3795 = vpow2.f32 %v1421_v27 }
 0x56c   : > { %2409 = vperm.xlu0 %3671, %v5011_v40   ;;  %v3790_v46 = vpop.eup %3789 }
 0x56d   : > { %v3792_v62 = vpop.eup %3791 }
 0x56e   : > { %2497 = vrot.lane.b32.xlu1 %v3784_v59, %s4173_s3  ;;  %v3794_v54 = vpop.eup %3793 }
 0x56f   : > { %2467 = vrot.lane.b32.xlu2 %v3786_v28, %s4173_s3  ;;  %v3796_v28 = vpop.eup %3795 }
 0x570   : > { %v5535_v57 = vpop.permute.xlu1 %2325 }
 0x571   : > { %v5543_v34 = vpop.permute.xlu2 %2343 }
 0x574   : > { %3677 = vset.pattern.permute.xlu0 %v4712_v10  ;;  %v1314_v10 = vmul.f32 %v5168_v44, %v5103_v31  ;;  %v1433_v44 = vmul.f32 1.442695, %v1315_v52 }
 0x576   : > { %2507 = vrot.lane.b32.xlu1 %v3788_v53, %s4173_s3  ;;  %v1431_v59 = vmul.f32 1.442695, %v1314_v10  ;;  %v1197_v53 = vperm.slane %v4952_v47, 0 }
 0x577   : > { %2469 = vrot.lane.b32.xlu2 %v3790_v46, %s4173_s3  ;;  %v1320_v46 = vmul.f32 %v5189_v5, %v5103_v31 }
 0x578   : > { %3797 = vpow2.f32 %v1431_v59  ;;  %v5546_v11 = vpop.permute.xlu1 %2349  ;;  %v1262_v51 = vmul.f32 %v1197_v53, %v5103_v31  ;;  %v1321_v59 = vmul.f32 %v5508_v33, %v5087_v8  ;;  %v1323_v33 = vmul.f32 %v5518_v18, %v5087_v8 }
 0x579   : > { %3799 = vpow2.f32 %v1433_v44  ;;  %v1443_v35 = vmul.f32 1.442695, %v1320_v46 }
 0x57a   : > { %v1445_v7 = vmul.f32 1.442695, %v1321_v59  ;;  %v1337_v59 = vmul.f32 1.442695, %v1267_v15 }
 0x57b   : > { %3801 = vpow2.f32 %v1443_v35  ;;  %v1261_v35 = vmul.f32 %v1197_v53, %v5087_v8  ;;  %v1264_v8 = vmul.f32 %v5268_v21, %v5103_v31  ;;  %v2015_v53 = vmul.f32 %v5273_v39, %v5037_v24 }
 0x57c   : > { %v6329_v39 = vperm.slane %v4836_v3, 0 }
 0x57e   : > { %2511 = vrot.lane.b32.xlu1 %v3792_v62, %s4173_s3  ;;  %v3798_v61 = vpop.eup %3797  ;;  %v1327_v62 = vmul.f32 1.442695, %v1262_v51 }
 0x57f   : > { %2479 = vrot.lane.b32.xlu2 %v3794_v54, %s4173_s3  ;;  %v3800_v27 = vpop.eup %3799  ;;  %v1199_v54 = vperm.slane %v1170_v58, 0 }
 0x580   : > { %3803 = vpow2.f32 %v1327_v62  ;;  %v1449_v62 = vmul.f32 1.442695, %v1323_v33 }
 0x581   : > { %v3802_v52 = vpop.eup %3801  ;;  %3805 = vpow2.f32 %v1445_v7 }
 0x586   : > { %2611 = vrot.lane.b32.xlu1 %v4847_v4, %s4173_s3  ;;  %v5554_v4 = vpop.permute.xlu2 %2361 }
 0x587   : > { %2481 = vrot.lane.b32.xlu2 %v3796_v28, %s4173_s3  ;;  %v1266_v28 = vmul.f32 %v1199_v54, %v5103_v31 }
 0x588   : > { %v5559_v38 = vpop.permute.xlu1 %2367 }
 0x589   : > { %v1335_v44 = vmul.f32 1.442695, %v1266_v28 }
 0x58b   : > { %3807 = vpow2.f32 %v1335_v44 }
 0x58c   : > { %3809 = vpow2.f32 %v1449_v62  ;;  %v2001_v62 = vmul.f32 %v6329_v39, %v4999_v25 }
 0x58d   : > { %3811 = vpow2.f32 %v1337_v59  ;;  %v1205_v59 = vperm.slane %v4741_v29, 0 }
 0x58e   : > { %2613 = vrot.lane.b32.xlu1 %v2003_v9, %s4173_s3  ;;  %v1896_v9 = vrot.slane %v4836_v3, 6  ;;  %v5634_v3 = vld [vmem:[%s4484_s13 + $0x8] sm:$0xff] }
 0x58f   : > { %2491 = vrot.lane.b32.xlu2 %v3798_v61, %s4173_s3  ;;  %v3804_v61 = vpop.eup %3803  ;;  %v1278_v25 = vmul.f32 %v5634_v3, %v1205_v59 }
 0x590   : > { %v5586_v43 = vperm.slane %v1896_v9, 0  ;;  %v3806_v18 = vpop.eup %3805 }
 0x591   : > { %v5566_v10 = vpop.permute.xlu2 %2379  ;;  %v3808_v7 = vpop.eup %3807 }
 0x592   : > { %v3810_v9 = vpop.eup %3809 }
 0x596   : > { %2623 = vrot.lane.b32.xlu1 %v2008_v26, %s4173_s3  ;;  %v1173_v26 = vrot.slane %v4952_v47, 5 }
 0x597   : > { %2493 = vrot.lane.b32.xlu2 %v3800_v27, %s4173_s3  ;;  %v2014_v27 = vmul.f32 %v5586_v43, %v5055_v30 }
 0x598   : > { %v5569_v5 = vpop.permute.xlu1 %2385  ;;  %v1202_v28 = vperm.slane %v1173_v26, 0 }
 0x599   : > { %6327 = vst [vmem:[#allocation137_spill] sm:$0xff] %v5569_v5  ;;  %v5581_v51 = vpop.permute.xlu2 %2391  ;;  %v6405_v5 = vld [vmem:[#allocation107_spill] sm:$0xff] }
 0x59a   : > { %v1272_v30 = vmul.f32 %v1202_v28, %v5103_v31  ;;  %v5615_v31 = vld [vmem:[%s4484_s13] sm:$0xff] }
 0x59b   : > { %v1273_v24 = vmul.f32 %v5615_v31, %v5321_v12  ;;  %v1265_v21 = vmul.f32 %v5615_v31, %v1199_v54 }
 0x59c   : > { %v1347_v44 = vmul.f32 1.442695, %v1272_v30 }
 0x59e   : > { %2625 = vrot.lane.b32.xlu1 %v2009_v48, %s4173_s3  ;;  %v1325_v48 = vmul.f32 1.442695, %v1261_v35 }
 0x59f   : > { %2503 = vrot.lane.b32.xlu2 %v3802_v52, %s4173_s3 }
 0x5a0   : > { %v2452_v46 = vpop.permute.xlu1 %2451  ;;  %3813 = vpow2.f32 %v1325_v48  ;;  %v1333_v48 = vmul.f32 1.442695, %v1265_v21 }
 0x5a1   : > { %v5584_v58 = vsel %vm1077_vm9, %v3804_v61, %v2452_v46  ;;  %v1331_v61 = vmul.f32 1.442695, %v1264_v8  ;;  %v3812_v46 = vpop.eup %3811  ;;  %3815 = vpow2.f32 %v1347_v44  ;;  %v1359_v44 = vmul.f32 1.442695, %v1278_v25  ;;  %v6331_v25 = vld [vmem:[#allocation61_spill] sm:$0xff] }
 0x5a3   : > { %3817 = vpow2.f32 %v1331_v61 }
 0x5a6   : > { %2635 = vrot.lane.b32.xlu1 %v2014_v27, %s4173_s3  ;;  %v3814_v15 = vpop.eup %3813 }
 0x5a7   : > { %2505 = vrot.lane.b32.xlu2 %v3806_v18, %s4173_s3  ;;  %v1349_v18 = vmul.f32 1.442695, %v1273_v24 }
 0x5a8   : > { %v2460_v52 = vpop.permute.xlu1 %2459 }
 0x5a9   : > { %v5597_v23 = vsel %vm1077_vm9, %v3808_v7, %v2460_v52  ;;  %v5599_v47 = vpop.permute.xlu2 %2397  ;;  %v3816_v7 = vpop.eup %3815  ;;  %3819 = vpow2.f32 %v1349_v18 }
 0x5aa   : > { %6328 = vst [vmem:[#allocation138_spill] sm:$0xff] %v5599_v47  ;;  %v3818_v12 = vpop.eup %3817  ;;  %3821 = vpow2.f32 %v1333_v48 }
 0x5ab   : > { %3823 = vpow2.f32 %v1359_v44 }
 0x5ae   : > { %2637 = vrot.lane.b32.xlu1 %v2015_v53, %s4173_s3  ;;  %v2021_v53 = vmul.f32 %v5312_v32, %v5448_v1  ;;  %v1271_v32 = vmul.f32 %v5615_v31, %v1202_v28  ;;  %v1276_v28 = vmul.f32 %v5634_v3, %v5334_v13 }
 0x5af   : > { %2509 = vrot.lane.b32.xlu2 %v3810_v9, %s4173_s3  ;;  %v2006_v9 = vmul.f32 %v5230_v37, %v5028_v2  ;;  %v1279_v2 = vmul.f32 %v5615_v31, %v5346_v41  ;;  %v1178_v37 = vrot.slane %v4741_v29, 3 }
 0x5b0   : > { %v2462_v33 = vpop.permute.xlu1 %2461  ;;  %v1345_v39 = vmul.f32 1.442695, %v1271_v32 }
 0x5b1   : > { %v5609_v26 = vsel %vm1077_vm9, %v3812_v46, %v2462_v33  ;;  %v2450_v35 = vpop.permute.xlu2 %2449  ;;  %v3820_v46 = vpop.eup %3819  ;;  %v1361_v1 = vmul.f32 1.442695, %v1279_v2  ;;  %v5659_v21 = vperm.slane %v1178_v37, 0  ;;  %v6332_v2 = vld [vmem:[#allocation79_spill] sm:$0xff] }
 0x5b2   : > { %v5612_v27 = vsel %vm1077_vm9, %v3814_v15, %v2450_v35  ;;  %v3822_v15 = vpop.eup %3821  ;;  %v2013_v37 = vmul.f32 %v5586_v43, %v6332_v2 }
 0x5b6   : > { %2647 = vrot.lane.b32.xlu1 %v5440_v17, %s4173_s3  ;;  %v1270_v17 = vmul.f32 %v5634_v3, %v5306_v16 }
 0x5b7   : > { %2609 = vrot.lane.b32.xlu2 %v2001_v62, %s4173_s3  ;;  %v3824_v62 = vpop.eup %3823 }
 0x5b8   : > { %v2472_v52 = vpop.permute.xlu1 %2471  ;;  %v1343_v61 = vmul.f32 1.442695, %v1270_v17  ;;  %v2012_v17 = vmul.f32 %v5258_v36, %v6331_v25  ;;  %v1181_v36 = vrot.slane %v4741_v29, 6  ;;  %v6333_v25 = vperm.slane %v5285_v0, 0 }
 0x5b9   : > { %v5628_v30 = vsel %vm1077_vm9, %v3816_v7, %v2472_v52  ;;  %v2456_v54 = vpop.permute.xlu2 %2455 }
 0x5ba   : > { %v5631_v8 = vsel %vm1077_vm9, %v3818_v12, %v2456_v54  ;;  %3825 = vpow2.f32 %v1343_v61  ;;  %v2027_v54 = vmul.f32 %v5485_v6, %v5212_v45  ;;  %v1285_v45 = vmul.f32 %v5615_v31, %v5374_v60 }
 0x5bb   : > { %3827 = vpow2.f32 %v1361_v1  ;;  %v1277_v6 = vmul.f32 %v5615_v31, %v1205_v59  ;;  %v1211_v1 = vperm.slane %v1181_v36, 0 }
 0x5bc   : > { %3829 = vpow2.f32 %v1345_v39  ;;  %v1373_v32 = vmul.f32 1.442695, %v1285_v45  ;;  %v6334_v45 = vld [vmem:[#allocation135_spill] sm:$0xff] }
 0x5bd   : > { %v1357_v39 = vmul.f32 1.442695, %v1277_v6  ;;  %v1290_v43 = vmul.f32 %v5634_v3, %v1211_v1 }
 0x5be   : > { %2649 = vrot.lane.b32.xlu1 %v2021_v53, %s4173_s3 }
 0x5bf   : > { %2619 = vrot.lane.b32.xlu2 %v2006_v9, %s4173_s3  ;;  %v1355_v9 = vmul.f32 1.442695, %v1276_v28  ;;  %v1282_v28 = vmul.f32 %v5634_v3, %v5360_v22 }
 0x5c0   : > { %v2474_v33 = vpop.permute.xlu1 %2473  ;;  %v3826_v48 = vpop.eup %3825 }
 0x5c1   : > { %v5648_v35 = vsel %vm1077_vm9, %v3820_v46, %v2474_v33  ;;  %v2458_v24 = vpop.permute.xlu2 %2457  ;;  %v3828_v44 = vpop.eup %3827 }
 0x5c2   : > { %v5651_v16 = vsel %vm1077_vm9, %v3822_v15, %v2458_v24  ;;  %v3830_v33 = vpop.eup %3829 }
 0x5c6   : > { %2659 = vrot.lane.b32.xlu1 %v5466_v19, %s4173_s3  ;;  %v1284_v19 = vmul.f32 %v5634_v3, %v5659_v21 }
 0x5c7   : > { %2621 = vrot.lane.b32.xlu2 %v4873_v50, %s4173_s3  ;;  %v6330_v50 = vld [vmem:[#allocation28_spill] sm:$0xff] }
 0x5c8   : > { %v2484_v18 = vpop.permute.xlu1 %2483  ;;  %v3019_v12 = vsub.f32 0.0, %v6330_v50  ;;  %v1371_v53 = vmul.f32 1.442695, %v1284_v19 }
 0x5c9   : > { %v2468_v7 = vpop.permute.xlu2 %2467  ;;  %v5664_v41 = vsel %vm1077_vm9, %v3824_v62, %v2484_v18 }
 0x5ca   : > { %v5667_v52 = vsel %vm1077_vm9, %v3826_v48, %v2468_v7  ;;  %v3024_v61 = vmul.f32 1.442695, %v3019_v12  ;;  %3831 = vpow2.f32 %v1371_v53  ;;  %v2031_v12 = vmul.f32 %v5502_v56, %v5528_v20 }
 0x5cb   : > { %3833 = vpow2.f32 %v1355_v9  ;;  %v1383_v53 = vmul.f32 1.442695, %v1290_v43 }
 0x5cc   : > { %3835 = vpow2.f32 %v3024_v61 }
 0x5cd   : > { %3837 = vpow2.f32 %v1373_v32 }
 0x5ce   : > { %2661 = vrot.lane.b32.xlu1 %v2027_v54, %s4173_s3  ;;  %3839 = vpow2.f32 %v1357_v39 }
 0x5cf   : > { %2631 = vrot.lane.b32.xlu2 %v2012_v17, %s4173_s3  ;;  %v2018_v17 = vmul.f32 %v6333_v25, %v5432_v42  ;;  %v1283_v42 = vmul.f32 %v5615_v31, %v5659_v21  ;;  %v6335_v21 = vld [vmem:[#allocation124_spill] sm:$0xff] }
 0x5d0   : > { %v2486_v46 = vpop.permute.xlu1 %2485  ;;  %v3832_v60 = vpop.eup %3831 }
 0x5d1   : > { %v2470_v15 = vpop.permute.xlu2 %2469  ;;  %v5681_v13 = vsel %vm1077_vm9, %v3828_v44, %v2486_v46  ;;  %v3834_v18 = vpop.eup %3833  ;;  %v1367_v44 = vmul.f32 1.442695, %v1282_v28  ;;  %v1369_v36 = vmul.f32 1.442695, %v1283_v42 }
 0x5d2   : > { %v5684_v24 = vsel %vm1077_vm9, %v3830_v33, %v2470_v15  ;;  %v3836_v59 = vpop.eup %3835 }
 0x5d3   : > { %v3031_v54 = vadd.f32 1.0, %v3836_v59  ;;  %v6337_v59 = vld [vmem:[#allocation136_spill] sm:$0xff] }
 0x5d5   : > { %3841 = vrcp.f32 %v3031_v54 }
 0x5d6   : > { %2665 = vrot.lane.b32.xlu1 %v5490_v63, %s4173_s3  ;;  %v1182_v63 = vrot.slane %v4741_v29, 7  ;;  %v3838_v29 = vpop.eup %3837  ;;  %3843 = vpow2.f32 %v1383_v53  ;;  %v6339_v53 = vld [vmem:[#allocation27_spill] sm:$0xff] }
 0x5d7   : > { %2633 = vrot.lane.b32.xlu2 %v2013_v37, %s4173_s3  ;;  %v3840_v46 = vpop.eup %3839  ;;  %3845 = vpow2.f32 %v1367_v44  ;;  %v3018_v44 = vsub.f32 0.0, %v6339_v53 }
 0x5d8   : > { %v2496_v62 = vpop.permute.xlu1 %2495  ;;  %v1212_v9 = vperm.slane %v1182_v63, 0 }
 0x5d9   : > { %v2480_v48 = vpop.permute.xlu2 %2479  ;;  %v5698_v7 = vsel %vm1077_vm9, %v3832_v60, %v2496_v62 }
 0x5da   : > { %v5701_v19 = vsel %vm1077_vm9, %v3834_v18, %v2480_v48  ;;  %v1292_v0 = vmul.f32 %v5634_v3, %v1212_v9  ;;  %v6336_v18 = vld [vmem:[#allocation29_spill] sm:$0xff] }
 0x5db   : > { %v3842_v15 = vpop.eup %3841  ;;  %v3020_v48 = vsub.f32 0.0, %v6336_v18 }
 0x5dc   : > { %v1387_v20 = vmul.f32 1.442695, %v1292_v0  ;;  %v3844_v6 = vpop.eup %3843  ;;  %v3039_v62 = vmul.f32 %v3842_v15, %v6330_v50  ;;  %v1289_v50 = vmul.f32 %v5615_v31, %v1211_v1 }
 0x5dd   : > { %v3846_v37 = vpop.eup %3845 }
 0x5de   : > { %2669 = vrot.lane.b32.xlu1 %v2031_v12, %s4173_s3  ;;  %3847 = vpow2.f32 %v1387_v20  ;;  %v6340_v20 = vld [vmem:[#allocation74_spill] sm:$0xff] }
 0x5df   : > { %2643 = vrot.lane.b32.xlu2 %v2018_v17, %s4173_s3  ;;  %3849 = vpow2.f32 %v1369_v36  ;;  %v3022_v36 = vmul.f32 1.442695, %v3018_v44 }
 0x5e0   : > { %v2498_v61 = vpop.permute.xlu1 %2497 }
 0x5e1   : > { %v2482_v33 = vpop.permute.xlu2 %2481  ;;  %v5715_v22 = vsel %vm1077_vm9, %v3838_v29, %v2498_v61  ;;  %v1381_v29 = vmul.f32 1.442695, %v1289_v50  ;;  %v2616_v61 = vpop.permute.xlu0 %2615 }
 0x5e2   : > { %v5718_v56 = vsel %vm1077_vm9, %v3840_v46, %v2482_v33  ;;  %v2770_v46 = vmul.f32 0.0, %v5584_v58 }
 0x5e4   : > { %v3848_v63 = vpop.eup %3847 }
 0x5e5   : > { %v3850_v12 = vpop.eup %3849 }
 0x5e6   : > { %2403 = vperm.xlu1 %3675, %v5331_v55   ;;  %v1288_v55 = vmul.f32 %v5634_v3, %v6335_v21  ;;  %v3026_v3 = vmul.f32 1.442695, %v3020_v48 }
 0x5e7   : > { %2645 = vrot.lane.b32.xlu2 %v6334_v45, %s4173_s3 }
 0x5e8   : > { %v2508_v2 = vpop.permute.xlu1 %2507  ;;  %v1379_v43 = vmul.f32 1.442695, %v1288_v55 }
 0x5e9   : > { %v2492_v32 = vpop.permute.xlu2 %2491  ;;  %v5727_v39 = vsel %vm1077_vm9, %v3844_v6, %v2508_v2  ;;  %v6341_v6 = vld [vmem:[#allocation83_spill] sm:$0xff]  ;;  %v6342_v2 = vld [vmem:[#allocation117_spill] sm:$0xff] }
 0x5ea   : > { %v5730_v60 = vsel %vm1077_vm9, %v3846_v37, %v2492_v32  ;;  %3851 = vpow2.f32 %v1379_v43  ;;  %v2738_v37 = vsel %vm1077_vm9, %v6342_v2, %v6341_v6  ;;  %v6350_v2 = vld [vmem:[#allocation71_spill] sm:$0xff] }
 0x5eb   : > { %3853 = vpow2.f32 %v3026_v3 }
 0x5ec   : > { %3855 = vpow2.f32 %v1381_v29 }
 0x5ed   : > { %3857 = vpow2.f32 %v3022_v36 }
 0x5ee   : > { %3048 = vrot.lane.b32.xlu1 %v3039_v62, %s4173_s3 }
 0x5ef   : > { %2655 = vrot.lane.b32.xlu2 %v6337_v59, %s4173_s3 }
 0x5f0   : > { %v2512_v28 = vpop.permute.xlu1 %2511  ;;  %v3852_v0 = vpop.eup %3851 }
 0x5f1   : > { %v2494_v54 = vpop.permute.xlu2 %2493  ;;  %v5740_v25 = vsel %vm1077_vm9, %v3848_v63, %v2512_v28  ;;  %v3854_v21 = vpop.eup %3853  ;;  %v6343_v63 = vld [vmem:[#allocation96_spill] sm:$0xff] }
 0x5f2   : > { %6338 = vst [vmem:[#allocation28_spill] sm:$0xff] %v5740_v25  ;;  %v5743_v17 = vsel %vm1077_vm9, %v3850_v12, %v2494_v54  ;;  %v3032_v62 = vadd.f32 1.0, %v3854_v21  ;;  %v3856_v59 = vpop.eup %3855  ;;  %v2708_v28 = vsel %vm1077_vm9, %v6343_v63, %v2616_v61  ;;  %v2618_v12 = vpop.permute.xlu0 %2617  ;;  %v6353_v63 = vld [vmem:[#allocation115_spill] sm:$0xff] }
 0x5f7   : > { %2657 = vrot.lane.b32.xlu2 %v5468_v14, %s4173_s3  ;;  %v1291_v14 = vmul.f32 %v5615_v31, %v1212_v9  ;;  %v6346_v9 = vld [vmem:[#allocation120_spill] sm:$0xff] }
 0x5f8   : > { %v2612_v33 = vpop.permute.xlu1 %2611 }
 0x5f9   : > { %v2504_v42 = vpop.permute.xlu2 %2503  ;;  %v2706_v15 = vsel %vm1077_vm9, %v6340_v20, %v2612_v33  ;;  %v1385_v55 = vmul.f32 1.442695, %v1291_v14  ;;  %v6348_v20 = vld [vmem:[#allocation30_spill] sm:$0xff] }
 0x5fa   : > { %v5753_v45 = vsel %vm1077_vm9, %v3852_v0, %v2504_v42  ;;  %v2772_v1 = vadd.f32 %v2770_v46, %v2706_v15  ;;  %v3021_v15 = vsub.f32 0.0, %v6348_v20 }
 0x5fb   : > { %3859 = vpow2.f32 %v1385_v55 }
 0x5fc   : > { %v2774_v32 = vmul.f32 %v2772_v1, %v2738_v37  ;;  %v2783_v58 = vmul.f32 %v2772_v1, %v5631_v8  ;;  %v6345_v8 = vld [vmem:[#allocation81_spill] sm:$0xff]  ;;  %3861 = vrcp.f32 %v3032_v62  ;;  %v2628_v1 = vpop.permute.xlu0 %2627  ;;  %v3028_v6 = vmul.f32 1.442695, %v3021_v15 }
 0x5fd   : > { %v2740_v3 = vsel %vm1077_vm9, %v6346_v9, %v6345_v8 }
 0x5fe   : > { %v2785_v31 = vadd.f32 %v2783_v58, %v2708_v28  ;;  %v2769_v58 = vmul.f32 0.0, %v5612_v27 }
 0x5ff   : > { %2667 = vrot.lane.b32.xlu2 %v5506_v49, %s4173_s3  ;;  %v3858_v49 = vpop.eup %3857 }
 0x600   : > { %v2614_v48 = vpop.permute.xlu1 %2613  ;;  %v2787_v50 = vmul.f32 %v2785_v31, %v2740_v3  ;;  %v2796_v44 = vmul.f32 %v2785_v31, %v5597_v23  ;;  %v3030_v29 = vadd.f32 1.0, %v3858_v49  ;;  %v6351_v23 = vperm.slane %v6350_v2, 0  ;;  %v6354_v31 = vld [vmem:[#allocation112_spill] sm:$0xff]  ;;  %v6355_v49 = vld [vmem:[#allocation97_spill] sm:$0xff] }
 0x601   : > { %v2506_v43 = vpop.permute.xlu2 %2505  ;;  %v3860_v61 = vpop.eup %3859  ;;  %v2707_v27 = vsel %vm1077_vm9, %v6355_v49, %v2614_v48 }
 0x602   : > { %v5765_v54 = vsel %vm1077_vm9, %v3856_v59, %v2506_v43  ;;  %v3862_v0 = vpop.eup %3861  ;;  %3863 = vrcp.f32 %v3030_v29  ;;  %v6352_v43 = vld [vmem:[#allocation80_spill] sm:$0xff] }
 0x603   : > { %6344 = vst [vmem:[#allocation61_spill] sm:$0xff] %v5765_v54  ;;  %v3040_v36 = vmul.f32 %v3862_v0, %v6336_v18  ;;  %3865 = vpow2.f32 %v3028_v6  ;;  %v2737_v18 = vsel %vm1077_vm9, %v6353_v63, %v6352_v43  ;;  %v6357_v0 = vld [vmem:[#allocation118_spill] sm:$0xff] }
 0x604   : > { %v5788_v3 = vpop.permute.xlu0 %2629  ;;  %v6362_v63 = vld [vmem:[#allocation82_spill] sm:$0xff] }
 0x607   : > { %2415 = vperm.xlu2 %3676, %v5011_v40   ;;  %v6349_v40 = vld [vmem:[#allocation94_spill] sm:$0xff] }
 0x608   : > { %v2624_v46 = vpop.permute.xlu1 %2623  ;;  %v1969_v37 = vmul.f32 %v6351_v23, %v6349_v40  ;;  %v3864_v55 = vpop.eup %3863  ;;  %v6358_v23 = vld [vmem:[#allocation98_spill] sm:$0xff] }
 0x609   : > { %v2510_v33 = vpop.permute.xlu2 %2509  ;;  %v3038_v9 = vmul.f32 %v3864_v55, %v6339_v53  ;;  %v3866_v53 = vpop.eup %3865 }
 0x60a   : > { %v5773_v42 = vsel %vm1077_vm9, %v3860_v61, %v2510_v33  ;;  %v6356_v33 = vld [vmem:[#allocation64_spill] sm:$0xff] }
 0x60b   : > { %6347 = vst [vmem:[#allocation79_spill] sm:$0xff] %v5773_v42  ;;  %v2739_v15 = vsel %vm1077_vm9, %v6357_v0, %v6356_v33 }
 0x60f   : > { %3050 = vrot.lane.b32.xlu2 %v3040_v36, %s4173_s3 }
 0x610   : > { %v2626_v14 = vpop.permute.xlu1 %2625 }
 0x611   : > { %v2610_v21 = vpop.permute.xlu2 %2609 }
 0x612   : > { %v2705_v62 = vsel %vm1077_vm9, %v1969_v37, %v2610_v21  ;;  %v2709_v37 = vsel %vm1077_vm9, %v6358_v23, %v2618_v12 }
 0x613   : > { %v2771_v59 = vadd.f32 %v2769_v58, %v2705_v62  ;;  %v6359_v58 = vld [vmem:[#allocation100_spill] sm:$0xff]  ;;  %v6360_v62 = vld [vmem:[#allocation85_spill] sm:$0xff] }
 0x615   : > { %v2773_v28 = vmul.f32 %v2771_v59, %v2737_v18  ;;  %v2782_v8 = vmul.f32 %v2771_v59, %v6354_v31  ;;  %v6361_v59 = vld [vmem:[#allocation90_spill] sm:$0xff]  ;;  %v6363_v18 = vld [vmem:[#allocation121_spill] sm:$0xff] }
 0x616   : > { %v2741_v43 = vsel %vm1077_vm9, %v6361_v59, %v6360_v62  ;;  %v6370_v62 = vld [vmem:[#allocation102_spill] sm:$0xff] }
 0x617   : > { %v2775_v29 = vadd.f32 %v2774_v32, %v2773_v28  ;;  %v2784_v61 = vadd.f32 %v2782_v8, %v2707_v27  ;;  %3046 = vrot.lane.b32.xlu2 %v3038_v9, %s4173_s3  ;;  %v2742_v28 = vsel %vm1077_vm9, %v6363_v18, %v6362_v63  ;;  %v6364_v9 = vld [vmem:[#allocation113_spill] sm:$0xff]  ;;  %v2714_v59 = vsel %vm1077_vm9, %v6370_v62, %v2628_v1  ;;  %v6371_v18 = vld [vmem:[#allocation87_spill] sm:$0xff]  ;;  %v6377_v62 = vld [vmem:[#allocation44_spill] sm:$0xff] }
 0x618   : > { %v5796_v36 = vpop.permute.xlu1 %2635  ;;  %v6365_v27 = vld [vmem:[#allocation101_spill] sm:$0xff] }
 0x619   : > { %v2786_v6 = vmul.f32 %v2784_v61, %v2739_v15  ;;  %v2795_v40 = vmul.f32 %v2784_v61, %v5651_v16  ;;  %v2620_v2 = vpop.permute.xlu2 %2619  ;;  %v3033_v16 = vadd.f32 1.0, %v3866_v53  ;;  %v6366_v15 = vld [vmem:[#allocation35_spill] sm:$0xff]  ;;  %v6368_v53 = vld [vmem:[#allocation125_spill] sm:$0xff] }
 0x61a   : > { %v2710_v32 = vsel %vm1077_vm9, %v6359_v58, %v2620_v2  ;;  %v6367_v2 = vld [vmem:[#allocation67_spill] sm:$0xff]  ;;  %v6376_v1 = vld [vmem:[#allocation77_spill] sm:$0xff] }
 0x61b   : > { %v2788_v48 = vadd.f32 %v2787_v50, %v2786_v6  ;;  %v2797_v21 = vadd.f32 %v2795_v40, %v2709_v37  ;;  %v2798_v55 = vadd.f32 %v2796_v44, %v2710_v32  ;;  %v2712_v50 = vsel %vm1077_vm9, %v6365_v27, %v2624_v46  ;;  %v5813_v44 = vpop.permute.xlu0 %2639  ;;  %v6369_v58 = vld [vmem:[#allocation99_spill] sm:$0xff]  ;;  %v6373_v27 = vld [vmem:[#allocation89_spill] sm:$0xff] }
 0x61c   : > { %3867 = vrcp.f32 %v3033_v16  ;;  %v1913_v6 = vperm.slane %v6366_v15, 0  ;;  %v1885_v40 = vrot.slane %v6366_v15, 2  ;;  %v2744_v23 = vsel %vm1077_vm9, %v6368_v53, %v6367_v2  ;;  %v6375_v2 = vld [vmem:[#allocation114_spill] sm:$0xff] }
 0x61d   : > { %v2799_v31 = vmul.f32 %v2797_v21, %v2741_v43  ;;  %v2800_v8 = vmul.f32 %v2798_v55, %v2742_v28  ;;  %v2809_v49 = vmul.f32 %v2798_v55, %v6364_v9  ;;  %v2808_v12 = vmul.f32 %v2797_v21, %v5609_v26  ;;  %v6372_v28 = vld [vmem:[#allocation123_spill] sm:$0xff]  ;;  %v6379_v55 = vld [vmem:[#allocation36_spill] sm:$0xff] }
 0x61e   : > { %v2776_v43 = vrot.slane %v2775_v29, 4  ;;  %v2743_v16 = vsel %vm1077_vm9, %v6372_v28, %v6371_v18 }
 0x61f   : > { %v2801_v61 = vadd.f32 %v2800_v8, %v2799_v31  ;;  %v2811_v33 = vadd.f32 %v2809_v49, %v2712_v50  ;;  %v2789_v31 = vrot.slane %v2788_v48, 4  ;;  %v6374_v50 = vld [vmem:[#allocation92_spill] sm:$0xff]  ;;  %v6378_v49 = vld [vmem:[#allocation46_spill] sm:$0xff] }
 0x620   : > { %v5815_v0 = vpop.permute.xlu1 %2637 }
 0x621   : > { %v2622_v37 = vpop.permute.xlu2 %2621  ;;  %v2813_v32 = vmul.f32 %v2811_v33, %v2744_v23  ;;  %v2822_v21 = vmul.f32 %v2811_v33, %v5667_v52  ;;  %v2802_v8 = vrot.slane %v2801_v61, 4  ;;  %v2746_v52 = vsel %vm1077_vm9, %v6374_v50, %v6373_v27 }
 0x622   : > { %v2711_v46 = vsel %vm1077_vm9, %v6369_v58, %v2622_v37  ;;  %v1915_v23 = vperm.slane %v1885_v40, 0  ;;  %v5845_v27 = vmul.f32 %v6379_v55, %v6378_v49  ;;  %v2790_v50 = vadd.f32 %v2789_v31, %v2788_v48  ;;  %v6384_v55 = vld [vmem:[#allocation49_spill] sm:$0xff]  ;;  %v6386_v31 = vld [vmem:[#allocation103_spill] sm:$0xff] }
 0x623   : > { %v2810_v63 = vadd.f32 %v2808_v12, %v2711_v46  ;;  %v2824_v9 = vadd.f32 %v2822_v21, %v2714_v59  ;;  %v2713_v12 = vsel %vm1077_vm9, %v6376_v1, %v2626_v14  ;;  %v5840_v46 = vpop.eup %3867  ;;  %v1985_v21 = vmul.f32 %v1913_v6, %v6377_v62 }
 0x624   : > { %v2777_v59 = vadd.f32 %v2776_v43, %v2775_v29  ;;  %v2803_v14 = vadd.f32 %v2802_v8, %v2801_v61  ;;  %v6383_v43 = vld [vmem:[#allocation48_spill] sm:$0xff]  ;;  %v5858_v49 = vmul.f32 %v1915_v23, %v6384_v55  ;;  %v2642_v61 = vpop.permute.xlu0 %2641 }
 0x625   : > { %v2812_v33 = vmul.f32 %v2810_v63, %v2743_v16  ;;  %v2821_v53 = vmul.f32 %v2810_v63, %v6375_v2  ;;  %v2826_v37 = vmul.f32 %v2824_v9, %v2746_v52  ;;  %v2835_v58 = vmul.f32 %v2824_v9, %v5628_v30  ;;  %v6380_v16 = vld [vmem:[#allocation84_spill] sm:$0xff]  ;;  %v6381_v63 = vld [vmem:[#allocation127_spill] sm:$0xff] }
 0x626   : > { %v2745_v40 = vsel %vm1077_vm9, %v6381_v63, %v6380_v16  ;;  %v6382_v30 = vld [vmem:[#allocation47_spill] sm:$0xff]  ;;  %v2778_v16 = vrot.slane %v2777_v59, 2  ;;  %v6389_v63 = vld [vmem:[#allocation93_spill] sm:$0xff] }
 0x627   : > { %v2814_v18 = vadd.f32 %v2813_v32, %v2812_v33  ;;  %v2823_v28 = vadd.f32 %v2821_v53, %v2713_v12  ;;  %v5853_v9 = vmul.f32 %v1913_v6, %v6382_v30  ;;  %v1990_v33 = vmul.f32 %v1915_v23, %v6383_v43  ;;  %v6385_v53 = vld [vmem:[#allocation105_spill] sm:$0xff]  ;;  %v6387_v6 = vld [vmem:[#allocation86_spill] sm:$0xff]  ;;  %v6388_v12 = vld [vmem:[#allocation128_spill] sm:$0xff] }
 0x628   : > { %v5850_v52 = vpop.permute.xlu1 %2647  ;;  %v2715_v48 = vsel %vm1077_vm9, %v6385_v53, %v5788_v3  ;;  %v2747_v62 = vsel %vm1077_vm9, %v6388_v12, %v6387_v6  ;;  %v2791_v30 = vrot.slane %v2790_v50, 2  ;;  %v2804_v43 = vrot.slane %v2803_v14, 2  ;;  %v6393_v6 = vld [vmem:[#allocation106_spill] sm:$0xff] }
 0x629   : > { %v2815_v2 = vrot.slane %v2814_v18, 4  ;;  %v2825_v1 = vmul.f32 %v2823_v28, %v2745_v40  ;;  %v2834_v29 = vmul.f32 %v2823_v28, %v5684_v24  ;;  %v2632_v32 = vpop.permute.xlu2 %2631  ;;  %v6390_v40 = vld [vmem:[#allocation130_spill] sm:$0xff] }
 0x62a   : > { %v2716_v8 = vsel %vm1077_vm9, %v6386_v31, %v2632_v32  ;;  %v2748_v23 = vsel %vm1077_vm9, %v6390_v40, %v6389_v63  ;;  %v6391_v32 = vld [vmem:[#allocation104_spill] sm:$0xff]  ;;  %v6392_v31 = vld [vmem:[#allocation58_spill] sm:$0xff]  ;;  %v6396_v63 = vld [vmem:[#allocation109_spill] sm:$0xff]  ;;  %v2792_v54 = vadd.f32 %v2791_v30, %v2790_v50 }
 0x62b   : > { %v2827_v24 = vadd.f32 %v2826_v37, %v2825_v1  ;;  %v2836_v28 = vadd.f32 %v2834_v29, %v2715_v48  ;;  %v2837_v55 = vadd.f32 %v2835_v58, %v2716_v8  ;;  %v2816_v26 = vadd.f32 %v2815_v2, %v2814_v18  ;;  %v6394_v37 = vld [vmem:[#allocation62_spill] sm:$0xff]  ;;  %v6395_v48 = vld [vmem:[#allocation116_spill] sm:$0xff]  ;;  %v6397_v58 = vld [vmem:[#allocation65_spill] sm:$0xff] }
 0x62c   : > { %v5875_v42 = vsel %vm1077_vm9, %v6392_v31, %v6391_v32  ;;  %v5880_v1 = vsel %vm1077_vm9, %v6394_v37, %v6393_v6  ;;  %v5886_v18 = vsel %vm1077_vm9, %v6397_v58, %v6396_v63  ;;  %v6398_v2 = vld [vmem:[#allocation70_spill] sm:$0xff]  ;;  %v6401_v32 = vld [vmem:[#allocation88_spill] sm:$0xff]  ;;  %v6402_v31 = vld [vmem:[#allocation133_spill] sm:$0xff] }
 0x62d   : > { %v2828_v3 = vrot.slane %v2827_v24, 4  ;;  %v2838_v53 = vmul.f32 %v2836_v28, %v2747_v62  ;;  %v2847_v25 = vmul.f32 %v2836_v28, %v5648_v35  ;;  %v2839_v29 = vmul.f32 %v2837_v55, %v2748_v23  ;;  %v6399_v35 = vld [vmem:[#allocation131_spill] sm:$0xff]  ;;  %v6400_v28 = vld [vmem:[#allocation78_spill] sm:$0xff]  ;;  %v6407_v50 = vld [vmem:[#allocation108_spill] sm:$0xff] }
 0x62e   : > { %v2848_v12 = vmul.f32 %v2837_v55, %v6395_v48  ;;  %v2749_v8 = vsel %vm1077_vm9, %v6399_v35, %v6398_v2  ;;  %v2779_v62 = vadd.f32 %v2778_v16, %v2777_v59  ;;  %v2718_v40 = vsel %vm1077_vm9, %v6400_v28, %v5796_v36  ;;  %v6403_v63 = vld [vmem:[#allocation91_spill] sm:$0xff]  ;;  %v6404_v58 = vld [vmem:[#allocation134_spill] sm:$0xff] }
 0x62f   : > { %v2750_v23 = vsel %vm1077_vm9, %v6402_v31, %v6401_v32  ;;  %v2829_v6 = vadd.f32 %v2828_v3, %v2827_v24  ;;  %v2840_v55 = vadd.f32 %v2839_v29, %v2838_v53  ;;  %v2752_v47 = vsel %vm1077_vm9, %v6404_v58, %v6403_v63  ;;  %v6406_v24 = vld [vmem:[#allocation111_spill] sm:$0xff] }
 0x630   : > { %v2850_v37 = vadd.f32 %v2848_v12, %v2718_v40  ;;  %v5897_v48 = vpop.permute.xlu1 %2649  ;;  %v2805_v2 = vadd.f32 %v2804_v43, %v2803_v14  ;;  %v2817_v59 = vrot.slane %v2816_v26, 2  ;;  %v2720_v3 = vsel %vm1077_vm9, %v6406_v24, %v5813_v44  ;;  %v2652_v40 = vpop.permute.xlu0 %2651 }
 0x631   : > { %v2634_v16 = vpop.permute.xlu2 %2633  ;;  %v2841_v35 = vrot.slane %v2840_v55, 4  ;;  %v2721_v53 = vsel %vm1077_vm9, %v1985_v21, %v2642_v61  ;;  %v2780_v29 = vrot.slane %v2779_v62, 1  ;;  %v2719_v14 = vsel %vm1077_vm9, %v6407_v50, %v5815_v0  ;;  %v6409_v61 = vld [vmem:[#allocation59_spill] sm:$0xff] }
 0x632   : > { %v2717_v36 = vsel %vm1077_vm9, %v6405_v5, %v2634_v16  ;;  %v2852_v28 = vmul.f32 %v2850_v37, %v2750_v23  ;;  %v2861_v32 = vmul.f32 %v2850_v37, %v5701_v19  ;;  %v2830_v30 = vrot.slane %v2829_v6, 2  ;;  %v6408_v19 = vld [vmem:[#allocation119_spill] sm:$0xff] }
 0x633   : > { %v2849_v12 = vadd.f32 %v2847_v25, %v2717_v36  ;;  %v2842_v43 = vadd.f32 %v2841_v35, %v2840_v55  ;;  %v2793_v5 = vrot.slane %v2792_v54, 1  ;;  %v2806_v23 = vrot.slane %v2805_v2, 1  ;;  %v6410_v55 = vld [vmem:[#allocation42_spill] sm:$0xff] }
 0x634   : > { %v2863_v31 = vadd.f32 %v2861_v32, %v2720_v3  ;;  %v2818_v58 = vadd.f32 %v2817_v59, %v2816_v26  ;;  %v2726_v25 = vsel %vm1077_vm9, %v1990_v33, %v2652_v40  ;;  %v2753_v36 = vsel %vm1077_vm9, %v6409_v61, %v5535_v57 }
 0x635   : > { %v2851_v63 = vmul.f32 %v2849_v12, %v2749_v8  ;;  %v2860_v37 = vmul.f32 %v2849_v12, %v6408_v19  ;;  %v2843_v16 = vrot.slane %v2842_v43, 2  ;;  %v2756_v35 = vsel %vm1077_vm9, %v6410_v55, %v5543_v34 }
 0x636   : > { %v2865_v44 = vmul.f32 %v2863_v31, %v2752_v47  ;;  %v2874_v21 = vmul.f32 %v2863_v31, %v5664_v41  ;;  %v2781_v8 = vadd.f32 %v2780_v29, %v2779_v62  ;;  %v2831_v32 = vadd.f32 %v2830_v30, %v2829_v6  ;;  %v6411_v41 = vld [vmem:[#allocation95_spill] sm:$0xff] }
 0x637   : > { %v2853_v0 = vadd.f32 %v2852_v28, %v2851_v63  ;;  %v2862_v24 = vadd.f32 %v2860_v37, %v2719_v14  ;;  %v2844_v3 = vadd.f32 %v2843_v16, %v2842_v43  ;;  %v2794_v47 = vadd.f32 %v2793_v5, %v2792_v54 }
 0x638   : > { %v5921_v26 = vpop.permute.xlu1 %2659  ;;  %v2807_v50 = vadd.f32 %v2806_v23, %v2805_v2  ;;  %v2819_v57 = vrot.slane %v2818_v58, 1  ;;  %v2724_v28 = vsel %vm1077_vm9, %v5845_v27, %v5850_v52  ;;  %v2832_v30 = vrot.slane %v2831_v32, 1  ;;  %v6412_v23 = vld [vmem:[#allocation122_spill] sm:$0xff] }
 0x639   : > { %v2854_v59 = vrot.slane %v2853_v0, 4  ;;  %v2864_v12 = vmul.f32 %v2862_v24, %v6411_v41  ;;  %v2873_v33 = vmul.f32 %v2862_v24, %v5718_v56  ;;  %v2644_v40 = vpop.permute.xlu2 %2643  ;;  %v2845_v54 = vrot.slane %v2844_v3, 1  ;;  %v6413_v24 = vld [vmem:[#allocation37_spill] sm:$0xff] }
 0x63a   : > { %v2722_v34 = vsel %vm1077_vm9, %v5853_v9, %v2644_v40  ;;  %v2820_v5 = vadd.f32 %v2819_v57, %v2818_v58  ;;  %v2978_v52 = vsel %vm2977_vm10, %v2781_v8, %v2794_v47 }
 0x63b   : > { %v2855_v62 = vadd.f32 %v2854_v59, %v2853_v0  ;;  %v2866_v6 = vadd.f32 %v2865_v44, %v2864_v12  ;;  %v2875_v29 = vadd.f32 %v2873_v33, %v2721_v53  ;;  %v2876_v14 = vadd.f32 %v2874_v21, %v2722_v34  ;;  %v2654_v59 = vpop.permute.xlu0 %2653 }
 0x63c   : > { %v2980_v37 = vsel %vm2979_vm11, %v2978_v52, %v2807_v50  ;;  %v2833_v21 = vadd.f32 %v2832_v30, %v2831_v32  ;;  %v2846_v61 = vadd.f32 %v2845_v54, %v2844_v3  ;;  %v2725_v32 = vsel %vm1077_vm9, %v5858_v49, %v5897_v48  ;;  %v6416_v30 = vld [vmem:[#allocation51_spill] sm:$0xff] }
 0x63d   : > { %v2856_v43 = vrot.slane %v2855_v62, 2  ;;  %v2867_v56 = vrot.slane %v2866_v6, 4  ;;  %v2877_v31 = vmul.f32 %v2875_v29, %v2753_v36  ;;  %v2878_v2 = vmul.f32 %v2876_v14, %v5875_v42 }
 0x63e   : > { %v2887_v63 = vmul.f32 %v2876_v14, %v6412_v23  ;;  %v2886_v27 = vmul.f32 %v2875_v29, %v5681_v13  ;;  %v2982_v47 = vsel %vm2981_vm12, %v2980_v37, %v2820_v5  ;;  %v6421_v37 = vld [vmem:[#allocation39_spill] sm:$0xff] }
 0x63f   : > { %v2857_v9 = vadd.f32 %v2856_v43, %v2855_v62  ;;  %v2879_v19 = vadd.f32 %v2878_v2, %v2877_v31  ;;  %v2868_v53 = vadd.f32 %v2867_v56, %v2866_v6  ;;  %v2984_v50 = vsel %vm2983_vm13, %v2982_v47, %v2833_v21  ;;  %v6418_v56 = vld [vmem:[#allocation60_spill] sm:$0xff] }
 0x640   : > { %v2889_v16 = vadd.f32 %v2887_v63, %v2724_v28  ;;  %v5935_v44 = vpop.permute.xlu1 %2661  ;;  %v2986_v6 = vsel %vm2985_vm14, %v2984_v50, %v2846_v61  ;;  %v2757_v31 = vsel %vm1077_vm9, %v6418_v56, %v5546_v11  ;;  %v6419_v2 = vrot.slane %v6366_v15, 5 }
 0x641   : > { %v2880_v36 = vrot.slane %v2879_v19, 4  ;;  %v2646_v42 = vpop.permute.xlu2 %2645  ;;  %v2858_v58 = vrot.slane %v2857_v9, 1  ;;  %v2869_v0 = vrot.slane %v2868_v53, 2 }
 0x642   : > { %v2723_v13 = vsel %vm1077_vm9, %v6413_v24, %v2646_v42  ;;  %v2891_v55 = vmul.f32 %v2889_v16, %v2756_v35  ;;  %v2900_v8 = vmul.f32 %v2889_v16, %v5730_v60  ;;  %v6414_v35 = vld [vmem:[#allocation126_spill] sm:$0xff]  ;;  %v1918_v5 = vperm.slane %v6419_v2, 0 }
 0x643   : > { %v2881_v41 = vadd.f32 %v2880_v36, %v2879_v19  ;;  %v2888_v12 = vadd.f32 %v2886_v27, %v2723_v13  ;;  %v2870_v33 = vadd.f32 %v2869_v0, %v2868_v53  ;;  %v2859_v40 = vadd.f32 %v2858_v58, %v2857_v9  ;;  %v2664_v21 = vpop.permute.xlu0 %2663  ;;  %v6423_v0 = vld [vmem:[#allocation63_spill] sm:$0xff]  ;;  %v6424_v13 = vld [vmem:[#allocation68_spill] sm:$0xff] }
 0x644   : > { %v2902_v3 = vadd.f32 %v2900_v8, %v2726_v25  ;;  %v6415_v25 = vrot.slane %v6366_v15, 4  ;;  %v6420_v9 = vrot.slane %v6366_v15, 7  ;;  %v2759_v24 = vsel %vm1077_vm9, %v6423_v0, %v5554_v4  ;;  %v3068_v0 = vld [vmem:[%s4479_s28 + $0x30] sm:$0xff] }
 0x645   : > { %v2890_v57 = vmul.f32 %v2888_v12, %v5880_v1  ;;  %v2899_v28 = vmul.f32 %v2888_v12, %v6414_v35  ;;  %v2871_v60 = vrot.slane %v2870_v33, 1  ;;  %v2882_v29 = vrot.slane %v2881_v41, 2  ;;  %v6417_v1 = vld [vmem:[#allocation38_spill] sm:$0xff] }
 0x646   : > { %v2904_v34 = vmul.f32 %v2902_v3, %v5886_v18  ;;  %v2913_v62 = vmul.f32 %v2902_v3, %v5698_v7  ;;  %v1917_v54 = vperm.slane %v6415_v25, 0  ;;  %v1991_v43 = vmul.f32 %v6417_v1, %v6416_v30 }
 0x647   : > { %v2892_v14 = vadd.f32 %v2891_v55, %v2890_v57  ;;  %v2901_v49 = vadd.f32 %v2899_v28, %v2725_v32  ;;  %v2872_v48 = vadd.f32 %v2871_v60, %v2870_v33  ;;  %v2988_v7 = vsel %vm2987_vm15, %v2986_v6, %v2859_v40  ;;  %v6425_v33 = vld [vmem:[#allocation55_spill] sm:$0xff]  ;;  %v6426_v40 = vld [vmem:[#allocation129_spill] sm:$0xff]  ;;  %v6427_v60 = vld [vmem:[#allocation50_spill] sm:$0xff] }
 0x648   : > { %v5957_v18 = vpop.permute.xlu1 %2665  ;;  %v5965_v19 = vperm.slane %v6420_v9, 0  ;;  %v2727_v53 = vsel %vm1077_vm9, %v1991_v43, %v2654_v59  ;;  %v2883_v61 = vadd.f32 %v2882_v29, %v2881_v41  ;;  %v2760_v55 = vsel %vm1077_vm9, %v6424_v13, %v5559_v38 }
 0x649   : > { %v2893_v23 = vrot.slane %v2892_v14, 4  ;;  %v2903_v63 = vmul.f32 %v2901_v49, %v2757_v31  ;;  %v2912_v27 = vmul.f32 %v2901_v49, %v5743_v17  ;;  %v2656_v52 = vpop.permute.xlu2 %2655  ;;  %v5971_v16 = vsel %vm2989_vm0, %v2988_v7, %v2872_v48  ;;  %v6422_v17 = vld [vmem:[#allocation53_spill] sm:$0xff]  ;;  %v6429_v49 = vld [vmem:[#allocation66_spill] sm:$0xff] }
 0x64a   : > { %v2728_v11 = vsel %vm1077_vm9, %v6421_v37, %v2656_v52  ;;  %3000 = vrot.lane.b32.xlu0 %v5971_v16, %s4173_s3  ;;  %v1994_v15 = vmul.f32 %v1917_v54, %v6422_v17  ;;  %v1996_v32 = vmul.f32 %v1918_v5, %v6425_v33  ;;  %v3041_v57 = vmul.f32 %v5840_v46, %v6348_v20  ;;  %v6438_v33 = vld [vmem:[#allocation72_spill] sm:$0xff] }
 0x64b   : > { %v2894_v36 = vadd.f32 %v2893_v23, %v2892_v14  ;;  %v2905_v42 = vadd.f32 %v2904_v34, %v2903_v63  ;;  %v2914_v58 = vadd.f32 %v2912_v27, %v2727_v53  ;;  %v2915_v8 = vadd.f32 %v2913_v62, %v2728_v11  ;;  %v6428_v62 = vld [vmem:[#allocation52_spill] sm:$0xff]  ;;  %v6432_v63 = vld [vmem:[#allocation69_spill] sm:$0xff]  ;;  %v2672_v53 = vpop.permute.xlu0 %2671 }
 0x64c   : > { %v2730_v4 = vsel %vm1077_vm9, %v1994_v15, %v5921_v26  ;;  %v2884_v35 = vrot.slane %v2883_v61, 1  ;;  %v1993_v34 = vmul.f32 %v1917_v54, %v6427_v60  ;;  %v1995_v6 = vmul.f32 %v1918_v5, %v6428_v62  ;;  %v6431_v5 = vld [vmem:[#allocation43_spill] sm:$0xff]  ;;  %v6433_v11 = vld [vmem:[#allocation132_spill] sm:$0xff] }
 0x64d   : > { %v2895_v47 = vrot.slane %v2894_v36, 2  ;;  %v2906_v59 = vrot.slane %v2905_v42, 4  ;;  %v2916_v41 = vmul.f32 %v2914_v58, %v2759_v24  ;;  %v2925_v12 = vmul.f32 %v2914_v58, %v5715_v22  ;;  %v3069_v15 = vld [vmem:[%s4479_s28 + $0x38] sm:$0xff] }
 0x64e   : > { %v2917_v3 = vmul.f32 %v2915_v8, %v2760_v55  ;;  %v2926_v50 = vmul.f32 %v2915_v8, %v6426_v40  ;;  %v2762_v48 = vsel %vm1077_vm9, %v6429_v49, %v5566_v10  ;;  %v2732_v20 = vsel %vm1077_vm9, %v1996_v32, %v2664_v21  ;;  %v6430_v10 = vld [vmem:[#allocation110_spill] sm:$0xff]  ;;  %3090 = vmatpush.msrb.mxu1 %v3069_v15  ;;  %v6435_v8 = vld [vmem:[#allocation40_spill] sm:$0xff] }
 0x64f   : > { %v2896_v28 = vadd.f32 %v2895_v47, %v2894_v36  ;;  %v2907_v38 = vadd.f32 %v2906_v59, %v2905_v42  ;;  %v2885_v56 = vadd.f32 %v2884_v35, %v2883_v61  ;;  %v2761_v23 = vsel %vm1077_vm9, %v6431_v5, %v6430_v10  ;;  %3487 = vmatpush.msra.mxu2 %v3069_v15  ;;  %v6434_v55 = vld [vmem:[#allocation54_spill] sm:$0xff]  ;;  %v6436_v59 = vld [vmem:[#allocation56_spill] sm:$0xff] }
 0x650   : > { %v2918_v29 = vadd.f32 %v2917_v3, %v2916_v41  ;;  %v2928_v22 = vadd.f32 %v2926_v50, %v2730_v4  ;;  %v5991_v14 = vpop.permute.xlu1 %2669  ;;  %v2764_v27 = vsel %vm1077_vm9, %v6432_v63, %v5581_v51  ;;  %v2731_v36 = vsel %vm1077_vm9, %v1995_v6, %v5935_v44  ;;  %v6439_v3 = vld [vmem:[#allocation57_spill] sm:$0xff]  ;;  %3091 = vmatpush.msrb.mxu1 %v3068_v0  ;;  %v6446_v10 = vld [vmem:[#allocation28_spill] sm:$0xff] }
 0x651   : > { %v2897_v46 = vrot.slane %v2896_v28, 1  ;;  %v2908_v25 = vrot.slane %v2907_v38, 2  ;;  %v2658_v26 = vpop.permute.xlu2 %2657  ;;  %v1998_v47 = vmul.f32 %v6435_v8, %v6434_v55  ;;  %v2000_v41 = vmul.f32 %v5965_v19, %v6436_v59  ;;  %v6440_v4 = vld [vmem:[#allocation61_spill] sm:$0xff]  ;;  %3488 = vmatpush.msra.mxu2 %v3068_v0 }
 0x652   : > { %v2919_v30 = vrot.slane %v2918_v29, 4  ;;  %v2729_v1 = vsel %vm1077_vm9, %v1993_v34, %v2658_v26  ;;  %v2930_v43 = vmul.f32 %v2928_v22, %v2762_v48  ;;  %v2939_v54 = vmul.f32 %v2928_v22, %v5753_v45  ;;  %3052 = vrot.lane.b32.xlu0 %v3041_v57, %s4173_s3  ;;  %v6441_v34 = vld [vmem:[#allocation41_spill] sm:$0xff] }
 0x653   : > { %v2898_v31 = vadd.f32 %v2897_v46, %v2896_v28  ;;  %v2909_v7 = vadd.f32 %v2908_v25, %v2907_v38  ;;  %v2927_v2 = vadd.f32 %v2925_v12, %v2729_v1  ;;  %v6437_v12 = vld [vmem:[#allocation137_spill] sm:$0xff]  ;;  %v1999_v40 = vmul.f32 %v5965_v19, %v6439_v3  ;;  %v6442_v46 = vld [vmem:[#allocation138_spill] sm:$0xff]  ;;  %v6443_v25 = vld [vmem:[#allocation75_spill] sm:$0xff] }
 0x654   : > { %v2920_v52 = vadd.f32 %v2919_v30, %v2918_v29  ;;  %v2941_v9 = vadd.f32 %v2939_v54, %v2732_v20  ;;  %v2763_v44 = vsel %vm1077_vm9, %v6438_v33, %v6437_v12  ;;  %v2733_v62 = vsel %vm1077_vm9, %v6441_v34, %v5957_v18  ;;  %v3066_v22 = vld [vmem:[%s4479_s28 + $0x20] sm:$0xff]  ;;  %v3065_v54 = vld [vmem:[%s4479_s28 + $0x18] sm:$0xff] }
 0x655   : > { %v2910_v45 = vrot.slane %v2909_v7, 1  ;;  %v2929_v37 = vmul.f32 %v2927_v2, %v2761_v23  ;;  %v2938_v21 = vmul.f32 %v2927_v2, %v6433_v11  ;;  %v2991_v61 = vsel %vm2977_vm10, %v2885_v56, %v2898_v31  ;;  %v6445_v31 = vld [vmem:[#allocation79_spill] sm:$0xff] }
 0x656   : > { %v2921_v42 = vrot.slane %v2920_v52, 2  ;;  %v2943_v58 = vmul.f32 %v2941_v9, %v2764_v27  ;;  %v2952_v17 = vmul.f32 %v2941_v9, %v5727_v39  ;;  %v3067_v39 = vld [vmem:[%s4479_s28 + $0x28] sm:$0xff]  ;;  %v2765_v26 = vsel %vm1077_vm9, %v6443_v25, %v6442_v46  ;;  %v3064_v9 = vld [vmem:[%s4479_s28 + $0x10] sm:$0xff] }
 0x657   : > { %v2911_v51 = vadd.f32 %v2910_v45, %v2909_v7  ;;  %v2931_v24 = vadd.f32 %v2930_v43, %v2929_v37  ;;  %v2940_v13 = vadd.f32 %v2938_v21, %v2731_v36  ;;  %3092 = vmatpush.msrb.mxu1 %v3067_v39  ;;  %v2736_v30 = vsel %vm1077_vm9, %v2000_v41, %v2672_v53  ;;  %v6444_v43 = vld [vmem:[#allocation45_spill] sm:$0xff]  ;;  %v2410_v53 = vpop.permute.xlu0 %2409  ;;  %v3063_v36 = vld [vmem:[%s4479_s28 + $0x8] sm:$0xff] }
 0x658   : > { %v2922_v32 = vadd.f32 %v2921_v42, %v2920_v52  ;;  %v2404_v38 = vpop.permute.xlu1 %2403  ;;  %3489 = vmatpush.msra.mxu2 %v3067_v39  ;;  %v2735_v23 = vsel %vm1077_vm9, %v1999_v40, %v5991_v14  ;;  %v6447_v14 = vld [vmem:[#allocation73_spill] sm:$0xff] }
 0x659   : > { %v2932_v50 = vrot.slane %v2931_v24, 4  ;;  %v2942_v57 = vmul.f32 %v2940_v13, %v2763_v44  ;;  %v2951_v35 = vmul.f32 %v2940_v13, %v6440_v4  ;;  %v2668_v28 = vpop.permute.xlu2 %2667  ;;  %v2992_v29 = vsel %vm2979_vm11, %v2991_v61, %v2911_v51  ;;  %3093 = vmatpush.msrb.mxu1 %v3066_v22  ;;  %v6448_v51 = vld [vmem:[#allocation76_spill] sm:$0xff]  ;;  %v3062_v13 = vld [vmem:[%s4479_s28] sm:$0xff] }
 0x65a   : > { %v2923_v60 = vrot.slane %v2922_v32, 1  ;;  %v2734_v6 = vsel %vm1077_vm9, %v1998_v47, %v2668_v28  ;;  %v2766_v18 = vsel %vm1077_vm9, %v6444_v43, %v2404_v38  ;;  %3490 = vmatpush.msra.mxu2 %v3066_v22  ;;  %v2767_v15 = vsel %vm1077_vm9, %v6447_v14, %v2410_v53  ;;  %v3682_v38 = vld [vmem:[%s720_s0] ss:$0 sm:$0xff] }
 0x65b   : > { %v2933_v19 = vadd.f32 %v2932_v50, %v2931_v24  ;;  %v2953_v49 = vadd.f32 %v2951_v35, %v2733_v62  ;;  %v2944_v48 = vadd.f32 %v2943_v58, %v2942_v57  ;;  %v2954_v20 = vadd.f32 %v2952_v17, %v2734_v6  ;;  %3094 = vmatpush.msrb.mxu1 %v3065_v54  ;;  %v6449_v6 = vld [vmem:[#allocation33_spill] sm:$0xff] }
 0x65c   : > { %v2924_v1 = vadd.f32 %v2923_v60, %v2922_v32  ;;  %3491 = vmatpush.msra.mxu2 %v3065_v54 }
 0x65d   : > { %v2934_v56 = vrot.slane %v2933_v19, 2  ;;  %v2964_v7 = vmul.f32 %v2953_v49, %v6445_v31  ;;  %v2945_v2 = vrot.slane %v2944_v48, 4  ;;  %v2965_v5 = vmul.f32 %v2954_v20, %v6446_v10  ;;  %3095 = vmatpush.msrb.mxu1 %v3064_v9 }
 0x65e   : > { %v2955_v63 = vmul.f32 %v2953_v49, %v2765_v26  ;;  %v2956_v27 = vmul.f32 %v2954_v20, %v2766_v18  ;;  %v2993_v52 = vsel %vm2981_vm12, %v2992_v29, %v2924_v1  ;;  %3492 = vmatpush.msra.mxu2 %v3064_v9  ;;  %v3010_v29 = vmul.f32 %v3682_v38, %v6449_v6  ;;  %v6450_v20 = vld [vmem:[#allocation31_spill] sm:$0xff]  ;;  %v6451_v18 = vld [vmem:[#allocation32_spill] sm:$0xff] }
 0x65f   : > { %v2935_v45 = vadd.f32 %v2934_v56, %v2933_v19  ;;  %v2966_v37 = vadd.f32 %v2964_v7, %v2735_v23  ;;  %v2946_v11 = vadd.f32 %v2945_v2, %v2944_v48  ;;  %v2967_v21 = vadd.f32 %v2965_v5, %v2736_v30  ;;  %3096 = vmatpush.msrb.mxu1 %v3063_v36  ;;  %v6452_v7 = vld [vmem:[#allocation34_spill] sm:$0xff] }
 0x660   : > { %v2957_v61 = vadd.f32 %v2956_v27, %v2955_v63  ;;  %3493 = vmatpush.msra.mxu2 %v3063_v36  ;;  %v3014_v19 = vadd.f32 %v3010_v29, %v5971_v16  ;;  %v3011_v46 = vmul.f32 %v3682_v38, %v6450_v20  ;;  %v3049_v1 = vpop.permute.xlu1 %3048  ;;  %v3012_v54 = vmul.f32 %v3682_v38, %v6451_v18 }
 0x661   : > { %v2936_v42 = vrot.slane %v2935_v45, 1  ;;  %v2947_v58 = vrot.slane %v2946_v11, 2  ;;  %v2416_v17 = vpop.permute.xlu2 %2415  ;;  %v2968_v8 = vmul.f32 %v2966_v37, %v2767_v15  ;;  %3097 = vmatpush.msrb.mxu1 %v3062_v13  ;;  %v3013_v2 = vmul.f32 %v3682_v38, %v6452_v7 }
 0x662   : > { %v2958_v0 = vrot.slane %v2957_v61, 4  ;;  %v2768_v24 = vsel %vm1077_vm9, %v6448_v51, %v2416_v17  ;;  %3494 = vmatpush.msra.mxu2 %v3062_v13 }
 0x663   : > { %v2937_v55 = vadd.f32 %v2936_v42, %v2935_v45  ;;  %v2969_v47 = vmul.f32 %v2967_v21, %v2768_v24  ;;  %v2948_v59 = vadd.f32 %v2947_v58, %v2946_v11 }
 0x664   : > { %v2959_v41 = vadd.f32 %v2958_v0, %v2957_v61 }
 0x665   : > { %v2970_v12 = vadd.f32 %v2969_v47, %v2968_v8  ;;  %v2949_v33 = vrot.slane %v2948_v59, 1  ;;  %v2994_v44 = vsel %vm2983_vm13, %v2993_v52, %v2937_v55 }
 0x666   : > { %v2960_v32 = vrot.slane %v2959_v41, 2 }
 0x667   : > { %v2971_v39 = vrot.slane %v2970_v12, 4  ;;  %v2950_v3 = vadd.f32 %v2949_v33, %v2948_v59 }
 0x668   : > { %v2961_v40 = vadd.f32 %v2960_v32, %v2959_v41 }
 0x669   : > { %v2972_v50 = vadd.f32 %v2971_v39, %v2970_v12  ;;  %v2995_v57 = vsel %vm2985_vm14, %v2994_v44, %v2950_v3  ;;  %v3051_v4 = vpop.permute.xlu2 %3050 }
 0x66a   : > { %v2962_v35 = vrot.slane %v2961_v40, 1 }
 0x66b   : > { %v2973_v28 = vrot.slane %v2972_v50, 2 }
 0x66c   : > { %v2963_v60 = vadd.f32 %v2962_v35, %v2961_v40 }
 0x66d   : > { %v2974_v34 = vadd.f32 %v2973_v28, %v2972_v50 }
 0x66e   : > { %v2996_v62 = vsel %vm2987_vm15, %v2995_v57, %v2963_v60 }
 0x66f   : > { %v2975_v22 = vrot.slane %v2974_v34, 1 }
 0x671   : > { %v2976_v49 = vadd.f32 %v2975_v22, %v2974_v34  ;;  %v3047_v48 = vpop.permute.xlu2 %3046 }
 0x672   : > { %v3058_v25 = vmul.f32 %v3047_v48, %v3014_v19 }
 0x673   : > { %v2997_v26 = vsel %vm2989_vm0, %v2996_v62, %v2976_v49 }
 0x674   : > { %v3015_v30 = vadd.f32 %v3011_v46, %v2997_v26  ;;  %3466 = vmatmul.msk.f32.vlgmr.msrb.gmra.mxu1 %vm1077_vm9, %v3058_v25  ;;  %3002 = vrot.lane.b32.xlu1 %v2997_v26, %s4173_s3 }
 0x676   : > { %v3059_v43 = vmul.f32 %v3049_v1, %v3015_v30 }
 0x678   : > { %3467 = vmatmul.msk.f32.vlgmr.msra.gmra.mxu2 %vm1077_vm9, %v3059_v43 }
 0x6bc   : > { %v3001_v56 = vpop.permute.xlu0 %3000 }
 0x6bd   : > { %v3016_v16 = vadd.f32 %v3012_v54, %v3001_v56 }
 0x6bf   : > { %v3060_v31 = vmul.f32 %v3051_v4, %v3016_v16 }
 0x6c1   : > { %3468 = vmatmul.msk.f32.gmra.mxu2 %vm1077_vm9, %v3060_v31 }
 0x6c4   : > { %v3053_v23 = vpop.permute.xlu0 %3052 }
 0x6e6   : > { %v3003_v10 = vpop.permute.xlu1 %3002 }
 0x6e7   : > { %v3017_v5 = vadd.f32 %v3013_v2, %v3003_v10 }
 0x6e9   : > { %v3061_v63 = vmul.f32 %v3053_v23, %v3017_v5 }
 0x6eb   : > { %3469 = vmatmul.msk.f32.gmra.mxu2 %vm1077_vm9, %v3061_v63 }
 0x6f1   : > { %v3099_v27 = vpop.f32.mrf.mxu1 }
 0x6f2   : > { %3111 = vst.msk [vmem:[#allocation2] sm:$0xff] %vm759_vm1, %v3099_v27 }
 0x6fb   : > { %v3102_v52 = vpop.f32.mrf.mxu2 }
 0x6fc   : > { %3112 = vst.msk [vmem:[#allocation2 + $0x8] sm:$0xff] %vm759_vm1, %v3102_v52 }
 0x744   : > { %v3105_v9 = vpop.f32.mrf.mxu2 }
 0x745   : > { %3113 = vst.msk [vmem:[#allocation2 + $0x10] sm:$0xff] %vm759_vm1, %v3105_v9 }
 0x76b   : > { %3118 = sbr.rel (%p3470_p6) target bundleno = 2185 (0x889), region = 112 }
 0x76e   : > { %v3108_v53 = vpop.f32.mrf.mxu2 }
 0x76f   : > { %3114 = vst.msk [vmem:[#allocation2 + $0x18] sm:$0xff] %vm759_vm1, %v3108_v53 }
 0x770   : > { %v6453_v45 = vld [vmem:[#allocation24_spill] sm:$0xff]  ;;  %v6454_v11 = vld [vmem:[#allocation22_spill] sm:$0xff]  ;;  %v6455_v42 = vld [vmem:[#allocation25_spill] sm:$0xff] }
 0x771   : > { %v3121_v37 = vadd.f32 %v3105_v9, %v6453_v45  ;;  %v3119_v21 = vadd.f32 %v3099_v27, %v6454_v11  ;;  %v3122_v58 = vadd.f32 %v3108_v53, %v6455_v42  ;;  %v6456_v17 = vld [vmem:[#allocation23_spill] sm:$0xff]  ;;  %v6457_v13 = vld [vmem:[#allocation26_spill] sm:$0xff]  ;;  %v3871_v63 = vld [vmem:[%s6458_s20] ss:$0 sm:$0xff] }
 0x772   : > { %v3120_v14 = vadd.f32 %v3102_v52, %v6456_v17  ;;  %v3872_v45 = vld [vmem:[%s6459_s15] ss:$0 sm:$0xff] }
 0x773   : > { %v3131_v61 = vsel %vm759_vm1, %v3121_v37, 0.0  ;;  %v3125_v36 = vsel %vm759_vm1, %v3119_v21, 0.0  ;;  %v3134_v15 = vsel %vm759_vm1, %v3122_v58, 0.0 }
 0x774   : > { %3132 = vadd.xlane.f32.xlu1 %v3131_v61  ;;  %3126 = vadd.xlane.f32.xlu0 %v3125_v36  ;;  %v3128_v0 = vsel %vm759_vm1, %v3120_v14, 0.0 }
 0x77c   : > { %3135 = vadd.xlane.f32.xlu1 %v3134_v15  ;;  %3129 = vadd.xlane.f32.xlu0 %v3128_v0 }
 0x7e7   : > { %v3133_v51 = vpop.xlane.xlu1 %3132  ;;  %v3127_v24 = vpop.xlane.xlu0 %3126 }
 0x7e8   : > { %v3139_v55 = vmul.f32 %v3133_v51, %v6457_v13  ;;  %v3137_v8 = vmul.f32 %v3127_v24, %v6457_v13 }
 0x7ea   : > { %v6083_v47 = vsub.f32 %v3121_v37, %v3139_v55  ;;  %v3141_v59 = vsub.f32 %v3119_v21, %v3137_v8 }
 0x7ec   : > { %v3147_v41 = vmul.f32 %v6083_v47, %v6083_v47  ;;  %v3145_v12 = vmul.f32 %v3141_v59, %v3141_v59 }
 0x7ee   : > { %v3155_v33 = vsel %vm759_vm1, %v3147_v41, 0.0  ;;  %v3149_v44 = vsel %vm759_vm1, %v3145_v12, 0.0 }
 0x7ef   : > { %v3136_v32 = vpop.xlane.xlu1 %3135  ;;  %3156 = vadd.xlane.f32.xlu0 %v3155_v33  ;;  %3150 = vadd.xlane.f32.xlu2 %v3149_v44  ;;  %v3130_v39 = vpop.xlane.xlu0 %3129 }
 0x7f0   : > { %v3140_v3 = vmul.f32 %v3136_v32, %v6457_v13  ;;  %v3138_v40 = vmul.f32 %v3130_v39, %v6457_v13 }
 0x7f2   : > { %v6091_v50 = vsub.f32 %v3122_v58, %v3140_v3  ;;  %v6093_v57 = vsub.f32 %v3120_v14, %v3138_v40 }
 0x7f4   : > { %v3148_v4 = vmul.f32 %v6091_v50, %v6091_v50  ;;  %v3146_v35 = vmul.f32 %v6093_v57, %v6093_v57 }
 0x7f6   : > { %v3158_v28 = vsel %vm759_vm1, %v3148_v4, 0.0  ;;  %v3152_v38 = vsel %vm759_vm1, %v3146_v35, 0.0 }
 0x7f7   : > { %3159 = vadd.xlane.f32.xlu1 %v3158_v28  ;;  %3153 = vadd.xlane.f32.xlu2 %v3152_v38 }
 0x862   : > { %v3151_v60 = vpop.xlane.xlu2 %3150  ;;  %v3157_v34 = vpop.xlane.xlu0 %3156 }
 0x863   : > { %v3161_v62 = vmul.f32 %v3151_v60, %v6457_v13  ;;  %v3163_v6 = vmul.f32 %v3157_v34, %v6457_v13 }
 0x865   : > { %v3165_v29 = vadd.f32 1e-05, %v3161_v62  ;;  %v3167_v22 = vadd.f32 1e-05, %v3163_v6 }
 0x867   : > { %3873 = vrsqrt.f32 %v3165_v29  ;;  %vm3175_vm4 = vweird.f32 %v3165_v29  ;;  %vm3195_vm6 = vweird.f32 %v3167_v22 }
 0x868   : > { %3875 = vrsqrt.f32 %v3167_v22 }
 0x86a   : > { %v3160_v19 = vpop.xlane.xlu1 %3159  ;;  %v3154_v49 = vpop.xlane.xlu2 %3153 }
 0x86b   : > { %v3164_v48 = vmul.f32 %v3160_v19, %v6457_v13  ;;  %v3162_v20 = vmul.f32 %v3154_v49, %v6457_v13 }
 0x86d   : > { %v3874_v46 = vpop.eup %3873  ;;  %v3168_v25 = vadd.f32 1e-05, %v3164_v48  ;;  %v3166_v26 = vadd.f32 1e-05, %v3162_v20 }
 0x86e   : > { %v3876_v30 = vpop.eup %3875  ;;  %v3170_v1 = vmul.f32 %v3874_v46, %v3165_v29  ;;  %vm3176_vm2 = vweird.f32 %v3874_v46 }
 0x86f   : > { %v3190_v43 = vmul.f32 %v3876_v30, %v3167_v22  ;;  %3877 = vrsqrt.f32 %v3168_v25  ;;  %vm3196_vm3 = vweird.f32 %v3876_v30  ;;  %vm3177_vm5 = vmor %vm3175_vm4, %vm3176_vm2  ;;  %vm3205_vm10 = vweird.f32 %v3168_v25 }
 0x870   : > { %v3171_v18 = vmul.f32 %v3874_v46, %v3170_v1  ;;  %3879 = vrsqrt.f32 %v3166_v26  ;;  %vm3197_vm7 = vmor %vm3195_vm6, %vm3196_vm3  ;;  %vm3185_vm12 = vweird.f32 %v3166_v26 }
 0x871   : > { %v3191_v54 = vmul.f32 %v3876_v30, %v3190_v43 }
 0x872   : > { %v3172_v56 = vmul.f32 0.5, %v3171_v18 }
 0x873   : > { %v3192_v16 = vmul.f32 0.5, %v3191_v54 }
 0x874   : > { %v3173_v31 = vsub.f32 1.5, %v3172_v56 }
 0x875   : > { %v3878_v7 = vpop.eup %3877  ;;  %v3193_v2 = vsub.f32 1.5, %v3192_v16 }
 0x876   : > { %v3880_v10 = vpop.eup %3879  ;;  %v3174_v5 = vmul.f32 %v3874_v46, %v3173_v31  ;;  %v3200_v23 = vmul.f32 %v3878_v7, %v3168_v25  ;;  %vm3206_vm8 = vweird.f32 %v3878_v7 }
 0x877   : > { %v3194_v27 = vmul.f32 %v3876_v30, %v3193_v2  ;;  %v3180_v52 = vmul.f32 %v3880_v10, %v3166_v26  ;;  %vm3186_vm9 = vweird.f32 %v3880_v10  ;;  %vm3207_vm11 = vmor %vm3205_vm10, %vm3206_vm8 }
 0x878   : > { %v3178_v9 = vsel %vm3177_vm5, %v3874_v46, %v3174_v5  ;;  %v3201_v53 = vmul.f32 %v3878_v7, %v3200_v23  ;;  %vm3187_vm13 = vmor %vm3185_vm12, %vm3186_vm9 }
 0x879   : > { %v3209_v37 = vmul.f32 %v3178_v9, %v3141_v59  ;;  %v3198_v11 = vsel %vm3197_vm7, %v3876_v30, %v3194_v27  ;;  %v3181_v21 = vmul.f32 %v3880_v10, %v3180_v52 }
 0x87a   : > { %v3211_v61 = vmul.f32 %v3198_v11, %v6083_v47  ;;  %v3202_v36 = vmul.f32 0.5, %v3201_v53 }
 0x87b   : > { %v3216_v42 = vmul.f32 %v3871_v63, %v3209_v37  ;;  %v3182_v58 = vmul.f32 0.5, %v3181_v21 }
 0x87c   : > { %v3218_v17 = vmul.f32 %v3871_v63, %v3211_v61  ;;  %v3203_v14 = vsub.f32 1.5, %v3202_v36 }
 0x87d   : > { %v3223_v15 = vadd.f32 %v3872_v45, %v3216_v42  ;;  %v3183_v0 = vsub.f32 1.5, %v3182_v58 }
 0x87e   : > { %v3225_v51 = vadd.f32 %v3872_v45, %v3218_v17  ;;  %v3204_v24 = vmul.f32 %v3878_v7, %v3203_v14 }
 0x87f   : > { %3227 = vst.msk [vmem:[#allocation14] sm:$0xff] %vm759_vm1, %v3223_v15  ;;  %v3184_v13 = vmul.f32 %v3880_v10, %v3183_v0 }
 0x880   : > { %3229 = vst.msk [vmem:[#allocation14 + $0x10] sm:$0xff] %vm759_vm1, %v3225_v51  ;;  %v3208_v55 = vsel %vm3207_vm11, %v3878_v7, %v3204_v24 }
 0x881   : > { %v3212_v8 = vmul.f32 %v3208_v55, %v6091_v50  ;;  %v3188_v47 = vsel %vm3187_vm13, %v3880_v10, %v3184_v13 }
 0x882   : > { %v3210_v59 = vmul.f32 %v3188_v47, %v6093_v57 }
 0x883   : > { %v3219_v41 = vmul.f32 %v3871_v63, %v3212_v8 }
 0x884   : > { %v3217_v12 = vmul.f32 %v3871_v63, %v3210_v59 }
 0x885   : > { %v3226_v33 = vadd.f32 %v3872_v45, %v3219_v41 }
 0x886   : > { %v3224_v44 = vadd.f32 %v3872_v45, %v3217_v12 }
 0x887   : > { %3230 = vst.msk [vmem:[#allocation14 + $0x18] sm:$0xff] %vm759_vm1, %v3226_v33 }
 0x888   : > { %3228 = vst.msk [vmem:[#allocation14 + $0x8] sm:$0xff] %vm759_vm1, %v3224_v44 }
 0x889 PF: > { %p3545_p0 = scmp.eq.s32.totalorder %s4271_s17, 1  ;;  %s4174_s0 = smov [#allocation14]  }
 0x88a   : > { %s3236_s25 = sshll.u32 %s4174_s0, 4  ;;  %s6460_s26 = sld [smem:[#allocation146_spill]]  ;;  %s3237_s25 = int_to_ptr.vmem [resolvable:$true] %s3236_s25 }
 0x88b   : > { %s4175_s22 = smov 128   ;;  %s4176_s2 = smov 8  }
 0x890   : > { %s3238_s11 = sshll.u32 %s6460_s26, 4  ;;  %s3239_s11 = int_to_ptr.hbm [resolvable:$true] %s3238_s11 }
 0x891   : > { %3514 = dma.vmem_to_hbm [thread:$0]  (%p3545_p0), %s3237_s25, 512, %s3239_s11, [#allocation6], %s4175_s22, %s4175_s22, %s4176_s2  }
 0x892   : > { %4148 = dma.done.wait (%p3545_p0), [#allocation6], 512  }
 0x893   : > { %4150 = vsyncadd (%p3545_p0), [#allocation6], 4294966784 }
 0x894 PF: > { %s6461_s16 = sld [smem:[#allocation20_spill]]  ;;  %s6464_s29 = smov %s4157_s30 }
 0x895   : > { %s6462_s28 = sld [smem:[#allocation19_spill]] }
 0x896   : > { %s6463_s15 = sld [smem:[#allocation21_spill]] }
 0x89a   : > { %p24_p3 = scmp.ge.s32.totalorder %s6461_s16, 4  }
 0x89b   : > { %s6465_s30 = smov %s6462_s28 }
 0x89c   :  { %26 = sbr.rel (!%p24_p3) target bundleno = 13 (0xd), region = 187 }
 0x8a1   :  { %3255 = vsyncpa [#allocation5], 1 }
 0x8a2   :  { %3257 = vsyncpa [#allocation5 + $0x1], 1 }
 0x8a3   :  { %3258 = vsyncpa [#allocation8], 1 }
 0x8a4   :  { %3259 = vsyncpa [#allocation6], 1 }
 0x8a5   :  { %3261 = vsyncpa [#allocation6 + $0x1], 1 }

</bundles_post_ra>
